<compile_context>
chip_gen: v6e
topology: v6e:2x2x1
jax: 0.10.0
libtpu: 0.0.40
codegen_flags: <defaults>
</compile_context>

<pallas_src>
import functools

import jax
import jax.numpy as jnp
import numpy as np
from jax.experimental import pallas as pl
from jax.experimental.pallas import tpu as pltpu


def _round_up(x, m):
    return ((x + m - 1) // m) * m


def _pad2(a, rows, cols):
    pr, pc = rows - a.shape[0], cols - a.shape[1]
    if pr == 0 and pc == 0:
        return a
    return jnp.pad(a, ((0, pr), (0, pc)))


# -----------------------------------------------------------------------------
# Pallas kernel:
#   out = film?(relu?( x @ Wm^T + bm + sqrt(x^2 @ exp(Wv)^T + exp(bv) + eps0)*z ))
#   z ~ N(0,1) streamed in; FiLM scale/shift = onehot(task) @ (tasks, N) tables.
# -----------------------------------------------------------------------------
def _mf_kernel(x_ref, wm_ref, wv_ref, bm_ref, bv_ref, oh_ref, sc_ref, sh_ref,
               eps_ref, o_ref, acc_m, acc_v, *,
               var_eps, apply_relu, apply_film, k_steps):
    k = pl.program_id(2)          # top-level only (safe for interpret lowering)

    @pl.when(k == 0)
    def _():
        # Fold biases (and var epsilon) into the accumulator init.
        acc_m[...] = jnp.broadcast_to(bm_ref[...], acc_m.shape)
        v0 = jnp.broadcast_to(bv_ref[...], acc_v.shape)
        if var_eps:
            v0 = v0 + var_eps
        acc_v[...] = v0

    xv = x_ref[...]                                          # bf16 (tm, tk)
    acc_m[...] += jnp.dot(xv, wm_ref[...], preferred_element_type=jnp.float32)
    acc_v[...] += jnp.dot(xv * xv, wv_ref[...],
                          preferred_element_type=jnp.float32)

    @pl.when(k == k_steps - 1)
    def _():
        out = acc_m[...] + jnp.sqrt(acc_v[...]) * eps_ref[...]
        if apply_film:
            # One-hot FiLM gather on the MXU: (tm, TP) @ (TP, tn).
            oh = oh_ref[...]
            scale = jnp.dot(oh, sc_ref[...], preferred_element_type=jnp.float32)
            shift = jnp.dot(oh, sh_ref[...], preferred_element_type=jnp.float32)
            out = out * scale + shift
        if apply_relu:
            out = jnp.maximum(out, 0.0)
        o_ref[...] = out.astype(o_ref.dtype)


# -----------------------------------------------------------------------------
# Per-parameter-set preprocessing (hoisted out of the forward pass).
# -----------------------------------------------------------------------------
def prepare_mf(w_mean, w_logvar, b_mean, b_logvar, scales=None, shifts=None,
               tn_max=512, tk_max=512):
    N, K = w_mean.shape
    tn = min(tn_max, _round_up(N, 128))
    tk = min(tk_max, _round_up(K, 128))
    Np = _round_up(N, tn)
    Kp = _round_up(K, tk)

    wmT = _pad2(w_mean.T.astype(jnp.float32), Kp, Np).astype(jnp.bfloat16)
    wvT = _pad2(jnp.exp(w_logvar).T.astype(jnp.float32), Kp, Np).astype(jnp.bfloat16)
    bm = _pad2(b_mean.astype(jnp.float32)[None, :], 1, Np)
    bv = _pad2(jnp.exp(b_logvar).astype(jnp.float32)[None, :], 1, Np)

    if scales is None:                                 # identity FiLM (heads)
        num_tasks = 1
        scales = jnp.ones((1, N), jnp.float32)
        shifts = jnp.zeros((1, N), jnp.float32)
    else:
        num_tasks = scales.shape[0]
    TP = _round_up(num_tasks, 8)
    sc_tbl = _pad2(scales.astype(jnp.float32), TP, Np)
    sh_tbl = _pad2(shifts.astype(jnp.float32), TP, Np)

    return dict(wmT=wmT, wvT=wvT, bm=bm, bv=bv, sc=sc_tbl, sh=sh_tbl,
                N=N, K=K, Np=Np, Kp=Kp, tn=tn, tk=tk,
                TP=TP, num_tasks=num_tasks)


def mf_layer(x, prep, task_rows, eps_key, *, var_eps, apply_relu, apply_film,
             out_dtype=jnp.bfloat16, tm_max=512):
    """x:(M,K), prep: prepared weights, task_rows:(M,) int32, eps_key: PRNG key."""
    M, K = x.shape
    assert K == prep['K']
    tn, tk, Np, Kp, TP = prep['tn'], prep['tk'], prep['Np'], prep['Kp'], prep['TP']
    # tm multiple of 16 so bf16 input/output blocks are always tile-friendly;
    # 512-caps keep the VMEM footprint (~8 MiB worst case incl. f32 scratch)
    # well inside v7x's 64 MiB physical / 32 MiB default scoped budget.
    tm = min(tm_max, _round_up(M, 16))
    Mp = _round_up(M, tm)

    xp = _pad2(x.astype(jnp.bfloat16), Mp, Kp)
    onehot = _pad2(jax.nn.one_hot(task_rows.astype(jnp.int32), TP,
                                  dtype=jnp.float32), Mp, TP)
    eps = jax.random.normal(eps_key, (Mp, Np), jnp.float32)

    grid = (Mp // tm, Np // tn, Kp // tk)
    kernel = functools.partial(_mf_kernel, var_eps=var_eps,
                               apply_relu=apply_relu, apply_film=apply_film,
                               k_steps=grid[2])

    # Deeper weight buffering only pays off when the K reduction has >=3 steps.
    wkw = dict(pipeline_mode=pl.Buffered(3)) if grid[2] >= 3 else {}

    out = pl.pallas_call(
        kernel,
        out_shape=jax.ShapeDtypeStruct((Mp, Np), out_dtype),
        grid=grid,
        in_specs=[
            pl.BlockSpec((tm, tk), lambda i, j, k: (i, k)),          # x (bf16)
            pl.BlockSpec((tk, tn), lambda i, j, k: (k, j), **wkw),   # Wm^T
            pl.BlockSpec((tk, tn), lambda i, j, k: (k, j), **wkw),   # exp(Wv)^T
            pl.BlockSpec((1, tn), lambda i, j, k: (0, j)),           # bm
            pl.BlockSpec((1, tn), lambda i, j, k: (0, j)),           # exp(bv)
            pl.BlockSpec((tm, TP), lambda i, j, k: (i, 0)),          # task one-hot
            pl.BlockSpec((TP, tn), lambda i, j, k: (0, j)),          # FiLM scales
            pl.BlockSpec((TP, tn), lambda i, j, k: (0, j)),          # FiLM shifts
            pl.BlockSpec((tm, tn), lambda i, j, k: (i, j)),          # eps
        ],
        out_specs=pl.BlockSpec((tm, tn), lambda i, j, k: (i, j)),
        scratch_shapes=[pltpu.VMEM((tm, tn), jnp.float32),
                        pltpu.VMEM((tm, tn), jnp.float32)],
        compiler_params=pltpu.CompilerParams(
            dimension_semantics=("parallel", "parallel", "arbitrary")),
    )(xp, prep['wmT'], prep['wvT'], prep['bm'], prep['bv'],
      onehot, prep['sc'], prep['sh'], eps)
    return out[:M, :prep['N']]


# -----------------------------------------------------------------------------
# Glue: patch extraction (NHWC), parameter construction, full forward
# -----------------------------------------------------------------------------
def im2col_nhwc(x, k, pad):
    """x: (N, H, W, C) -> patches (N*Ho*Wo, k*k*C), columns in (dy, dx, c) order."""
    N, H, W, C = x.shape
    xp = jnp.pad(x, ((0, 0), (pad, pad), (pad, pad), (0, 0)))
    Ho = H + 2 * pad - k + 1
    Wo = W + 2 * pad - k + 1
    cols = [xp[:, i:i + Ho, j:j + Wo, :] for i in range(k) for j in range(k)]
    p = jnp.stack(cols, axis=3)              # (N, Ho, Wo, k*k, C)
    return p.reshape(N * Ho * Wo, k * k * C), Ho, Wo


def init_params(key, input_shape, conv_sizes, fc_sizes, output_dims,
                init_var=-7.0):
    """Deterministic synthetic initialization mirroring the module shapes."""
    num_tasks = len(output_dims)
    params = {'conv': [], 'conv_film': [], 'fc': [], 'fc_film': [],
              'heads': [], 'pool_after': []}
    prev_c = input_shape[0]
    conv_idx = 0
    for lp in conv_sizes:
        if lp == 'pool':
            params['pool_after'].append(conv_idx - 1)
            continue
        cout, ksz = lp[0], lp[1]
        pad = lp[2] if len(lp) > 2 else (ksz - 1) // 2
        fan_in = prev_c * ksz * ksz
        bound = 1.0 / np.sqrt(fan_in)
        key, kw_, kb_ = jax.random.split(key, 3)
        params['conv'].append({
            'w_mean': jax.random.uniform(kw_, (cout, prev_c, ksz, ksz),
                                         jnp.float32, -bound, bound),
            'b_mean': jax.random.uniform(kb_, (cout,), jnp.float32,
                                         -bound, bound),
            'w_logvar': jnp.full((cout, prev_c, ksz, ksz), init_var,
                                 jnp.float32),
            'b_logvar': jnp.full((cout,), init_var, jnp.float32),
            'padding': pad,
        })
        # PointFiLMLayer init: scales=1, shifts=0
        params['conv_film'].append({
            'scales': jnp.ones((num_tasks, cout), jnp.float32),
            'shifts': jnp.zeros((num_tasks, cout), jnp.float32),
        })
        prev_c = cout
        conv_idx += 1

    # spatial size after convs/pools (same bookkeeping as the module)
    dim = input_shape[1]
    for lp in conv_sizes:
        if lp == 'pool':
            dim = dim // 2
        else:
            ksz = lp[1]
            pad = lp[2] if len(lp) > 2 else (ksz - 1) // 2
            dim = int(np.floor((dim + 2 * pad - (ksz - 1) - 1) / 1.0 + 1))
    params['flatten_c'] = prev_c
    params['flatten_hw'] = dim
    last = prev_c * dim * dim

    for h in fc_sizes:
        bound = 1.0 / np.sqrt(last)
        key, kw_, kb_ = jax.random.split(key, 3)
        params['fc'].append({
            'w_mean': jax.random.uniform(kw_, (h, last), jnp.float32,
                                         -bound, bound),
            'b_mean': jax.random.uniform(kb_, (h,), jnp.float32,
                                         -bound, bound),
            'w_logvar': jnp.full((h, last), init_var, jnp.float32),
            'b_logvar': jnp.full((h,), init_var, jnp.float32),
        })
        params['fc_film'].append({
            'scales': jnp.ones((num_tasks, h), jnp.float32),
            'shifts': jnp.zeros((num_tasks, h), jnp.float32),
        })
        last = h

    for od in output_dims:   # single_head = False -> one head per task
        bound = 1.0 / np.sqrt(last)
        key, kw_, kb_ = jax.random.split(key, 3)
        params['heads'].append({
            'w_mean': jax.random.uniform(kw_, (od, last), jnp.float32,
                                         -bound, bound),
            'b_mean': jax.random.uniform(kb_, (od,), jnp.float32,
                                         -bound, bound),
            'w_logvar': jnp.full((od, last), init_var, jnp.float32),
            'b_logvar': jnp.full((od,), init_var, jnp.float32),
        })
    return params


def prepare_model(params, output_dims):
    """One-time weight-side prep (exp/transpose/pad/bf16/layout permutes)."""
    prep = {'conv': [], 'fc': [], 'pool_after': tuple(params['pool_after']),
            'output_dims': tuple(output_dims)}

    # Conv weights reordered (cout, C, kh, kw) -> (cout, kh*kw*C) so NHWC
    # patches (dy, dx, c) match the GEMM K ordering (no activation transposes).
    for conv, film in zip(params['conv'], params['conv_film']):
        cout = conv['w_mean'].shape[0]
        wm2 = conv['w_mean'].transpose(0, 2, 3, 1).reshape(cout, -1)
        wv2 = conv['w_logvar'].transpose(0, 2, 3, 1).reshape(cout, -1)
        p = prepare_mf(wm2, wv2, conv['b_mean'], conv['b_logvar'],
                       film['scales'], film['shifts'])
        p['ksize'] = conv['w_mean'].shape[2]
        p['padding'] = conv['padding']
        p['cout'] = cout
        prep['conv'].append(p)

    # The flatten now produces (H, W, C)-ordered features; permute the first
    # consumer's weight columns from torch's (C, H, W) order once, at prep time.
    C, S = params['flatten_c'], params['flatten_hw']

    def chw_to_hwc(w):
        return w.reshape(w.shape[0], C, S, S).transpose(0, 2, 3, 1).reshape(
            w.shape[0], -1)

    have_conv = len(params['conv']) > 0
    for idx, (fc, film) in enumerate(zip(params['fc'], params['fc_film'])):
        wm, wv = fc['w_mean'], fc['w_logvar']
        if have_conv and idx == 0:
            wm, wv = chw_to_hwc(wm), chw_to_hwc(wv)
        prep['fc'].append(prepare_mf(wm, wv, fc['b_mean'], fc['b_logvar'],
                                     film['scales'], film['shifts']))

    # Fuse all task heads into a single matmul along N.
    wm = jnp.concatenate([h['w_mean'] for h in params['heads']], axis=0)
    wv = jnp.concatenate([h['w_logvar'] for h in params['heads']], axis=0)
    bm = jnp.concatenate([h['b_mean'] for h in params['heads']], axis=0)
    bv = jnp.concatenate([h['b_logvar'] for h in params['heads']], axis=0)
    if have_conv and len(params['fc']) == 0:
        wm, wv = chw_to_hwc(wm), chw_to_hwc(wv)
    prep['head'] = prepare_mf(wm, wv, bm, bv, None, None)
    return prep


def multihead_film_cnn_forward(prep, x, task_labels, key, num_samples):
    """x: (B, C, H, W) NCHW, task_labels: (B,) int32.  Returns list of
    (num_samples, B, output_dim) arrays, one per task."""
    B = x.shape[0]
    NS = num_samples

    # One-time NCHW -> NHWC on the (tiny) input; conv stack stays NHWC.
    x = jnp.transpose(x, (0, 2, 3, 1)).astype(jnp.bfloat16)
    x = jnp.tile(x, (NS, 1, 1, 1))                      # torch .repeat([NS,1,1,1])
    tl_rep = jnp.tile(task_labels.astype(jnp.int32), (NS,))

    # ---- conv stack (NHWC, no layout round-trips) ---------------------------
    # TODO(synk): layer-0 mean/var matmuls are identical across the NS samples;
    # deduplicating them (noise-only broadcast) is a further ~NSx saving.
    for li, cp in enumerate(prep['conv']):
        nimg = x.shape[0]
        patches, Ho, Wo = im2col_nhwc(x, cp['ksize'], cp['padding'])
        tid_rows = jnp.repeat(tl_rep, Ho * Wo)          # task id per output row
        key, sub = jax.random.split(key)
        out = mf_layer(patches, cp, tid_rows, sub,
                       var_eps=1e-9, apply_relu=True, apply_film=True,
                       out_dtype=jnp.bfloat16)
        x = out.reshape(nimg, Ho, Wo, cp['cout'])       # NHWC, no transpose
        for _ in range(prep['pool_after'].count(li)):   # 2x2 max pool
            n2, h2, w2, c2 = x.shape
            x = x.reshape(n2, h2 // 2, 2, w2 // 2, 2, c2).max(axis=(2, 4))

    # ---- flatten ((H,W,C) order; fc1 weights were permuted to match) --------
    feat = x.reshape(NS * B, -1)

    # ---- fc stack -----------------------------------------------------------
    for fp in prep['fc']:
        key, sub = jax.random.split(key)
        feat = mf_layer(feat, fp, tl_rep, sub,
                        var_eps=0.0, apply_relu=True, apply_film=True,
                        out_dtype=jnp.bfloat16)

    # ---- heads (all tasks fused into one call, no FiLM / ReLU) --------------
    key, sub = jax.random.split(key)
    zero_tid = jnp.zeros((NS * B,), jnp.int32)
    head_out = mf_layer(feat, prep['head'], zero_tid, sub,
                        var_eps=0.0, apply_relu=False, apply_film=False,
                        out_dtype=jnp.float32)
    outputs = []
    off = 0
    for od in prep['output_dims']:
        outputs.append(head_out[:, off:off + od].reshape(NS, B, od))
        off += od
    return outputs


if __name__ == "__main__":
    key = jax.random.PRNGKey(0)
    k_params, k_x, k_noise = jax.random.split(key, 3)

    # Module config (small): input (C=4, H=W=16), convs 4->8->16 with 2x pools,
    # one fc of 32, two task heads of dim 10.
    input_shape = (4, 16)
    conv_sizes = [(8, 3), 'pool', (16, 3), 'pool']
    fc_sizes = [32]
    output_dims = [10, 10]

    params = init_params(k_params, input_shape, conv_sizes, fc_sizes,
                         output_dims)
    prep = prepare_model(params, output_dims)

    batch = 2
    num_samples = 2
    x = jax.random.normal(k_x, (batch, input_shape[0], input_shape[1],
                                input_shape[1]), jnp.float32)
    task_labels = jnp.array([0, 1], dtype=jnp.int32)

    fwd = jax.jit(functools.partial(multihead_film_cnn_forward, prep),
                  static_argnames=("num_samples",))
    outputs = fwd(x, task_labels, k_noise, num_samples=num_samples)
    outputs = [jax.block_until_ready(o) for o in outputs]
    for t, o in enumerate(outputs):
        assert o.shape == (num_samples, batch, output_dims[t])
        assert bool(jnp.all(jnp.isfinite(o)))
    print("KERNEL_OK")
</pallas_src>

<mosaic_0001>
module attributes {stable_mosaic.version = 11 : i64} {
  func.func @_mf_kernel(%arg0: i32, %arg1: i32, %arg2: i32, %arg3: memref<512x128xbf16, #tpu.memory_space<vmem>>, %arg4: memref<128x128xbf16, #tpu.memory_space<vmem>>, %arg5: memref<128x128xbf16, #tpu.memory_space<vmem>>, %arg6: memref<1x128xf32, #tpu.memory_space<vmem>>, %arg7: memref<1x128xf32, #tpu.memory_space<vmem>>, %arg8: memref<512x8xf32, #tpu.memory_space<vmem>>, %arg9: memref<8x128xf32, #tpu.memory_space<vmem>>, %arg10: memref<8x128xf32, #tpu.memory_space<vmem>>, %arg11: memref<512x128xf32, #tpu.memory_space<vmem>>, %arg12: memref<512x128xbf16, #tpu.memory_space<vmem>>, %arg13: memref<512x128xf32, #tpu.memory_space<vmem>>, %arg14: memref<512x128xf32, #tpu.memory_space<vmem>>) attributes {dimension_semantics = [#tpu.dimension_semantics<parallel>, #tpu.dimension_semantics<parallel>, #tpu.dimension_semantics<arbitrary>], iteration_bounds = array<i64: 2, 1, 1>, scalar_prefetch = 0 : i64, scratch_operands = 2 : i64, tpu.core_type = #tpu.core_type<tc>, window_params = [{transform_indices = @transform_0, window_bounds = array<i64: 512, 128>}, {transform_indices = @transform_1, window_bounds = array<i64: 128, 128>}, {transform_indices = @transform_2, window_bounds = array<i64: 128, 128>}, {transform_indices = @transform_3, window_bounds = array<i64: 1, 128>}, {transform_indices = @transform_4, window_bounds = array<i64: 1, 128>}, {transform_indices = @transform_5, window_bounds = array<i64: 512, 8>}, {transform_indices = @transform_6, window_bounds = array<i64: 8, 128>}, {transform_indices = @transform_7, window_bounds = array<i64: 8, 128>}, {transform_indices = @transform_8, window_bounds = array<i64: 512, 128>}, {transform_indices = @transform_9, window_bounds = array<i64: 512, 128>}]} {
    %c0_i32 = arith.constant 0 : i32
    %0 = arith.cmpi eq, %arg2, %c0_i32 : i32
    %1 = arith.extui %0 : i1 to i32
    %c0_i32_0 = arith.constant 0 : i32
    %2 = arith.cmpi ne, %1, %c0_i32_0 : i32
    scf.if %2 {
      %c0_17 = arith.constant 0 : index
      %c0_18 = arith.constant 0 : index
      %18 = vector.load %arg6[%c0_17, %c0_18] : memref<1x128xf32, #tpu.memory_space<vmem>>, vector<1x128xf32>
      %19 = vector.shape_cast %18 : vector<1x128xf32> to vector<1x128xf32>
      %20 = vector.broadcast %19 : vector<1x128xf32> to vector<512x128xf32>
      %c0_19 = arith.constant 0 : index
      %c0_20 = arith.constant 0 : index
      %21 = vector.load %arg13[%c0_19, %c0_20] : memref<512x128xf32, #tpu.memory_space<vmem>>, vector<512x128xf32>
      tpu.vector_store %arg13[%c0_19, %c0_20], %20 {strides = array<i32>} : memref<512x128xf32, #tpu.memory_space<vmem>>, vector<512x128xf32>,
      %c0_21 = arith.constant 0 : index
      %c0_22 = arith.constant 0 : index
      %22 = vector.load %arg7[%c0_21, %c0_22] : memref<1x128xf32, #tpu.memory_space<vmem>>, vector<1x128xf32>
      %23 = vector.shape_cast %22 : vector<1x128xf32> to vector<1x128xf32>
      %24 = vector.broadcast %23 : vector<1x128xf32> to vector<512x128xf32>
      %cst_23 = arith.constant 9.99999971E-10 : f32
      %25 = vector.broadcast %cst_23 : f32 to vector<512x128xf32>
      %26 = arith.addf %24, %25 : vector<512x128xf32>
      %c0_24 = arith.constant 0 : index
      %c0_25 = arith.constant 0 : index
      %27 = vector.load %arg14[%c0_24, %c0_25] : memref<512x128xf32, #tpu.memory_space<vmem>>, vector<512x128xf32>
      tpu.vector_store %arg14[%c0_24, %c0_25], %26 {strides = array<i32>} : memref<512x128xf32, #tpu.memory_space<vmem>>, vector<512x128xf32>,
    } else {
    }
    %c0 = arith.constant 0 : index
    %c0_1 = arith.constant 0 : index
    %3 = vector.load %arg3[%c0, %c0_1] : memref<512x128xbf16, #tpu.memory_space<vmem>>, vector<512x128xbf16>
    %c0_2 = arith.constant 0 : index
    %c0_3 = arith.constant 0 : index
    %4 = vector.load %arg13[%c0_2, %c0_3] : memref<512x128xf32, #tpu.memory_space<vmem>>, vector<512x128xf32>
    %c0_4 = arith.constant 0 : index
    %c0_5 = arith.constant 0 : index
    %5 = vector.load %arg4[%c0_4, %c0_5] : memref<128x128xbf16, #tpu.memory_space<vmem>>, vector<128x128xbf16>
    %cst = arith.constant dense<0.000000e+00> : vector<512x128xf32>
    %6 = tpu.matmul %3, %5, %cst {dimension_numbers = #tpu.dot_dimension_numbers<[1], [0], [0], [1], [0, 0, 1, 1], [], []>} : vector<512x128xbf16>, vector<128x128xbf16>, vector<512x128xf32> -> vector<512x128xf32>
    %7 = arith.addf %4, %6 : vector<512x128xf32>
    %c0_6 = arith.constant 0 : index
    %c0_7 = arith.constant 0 : index
    %8 = vector.load %arg13[%c0_6, %c0_7] : memref<512x128xf32, #tpu.memory_space<vmem>>, vector<512x128xf32>
    tpu.vector_store %arg13[%c0_6, %c0_7], %7 {strides = array<i32>} : memref<512x128xf32, #tpu.memory_space<vmem>>, vector<512x128xf32>,
    %c0_8 = arith.constant 0 : index
    %c0_9 = arith.constant 0 : index
    %9 = vector.load %arg14[%c0_8, %c0_9] : memref<512x128xf32, #tpu.memory_space<vmem>>, vector<512x128xf32>
    %10 = arith.mulf %3, %3 : vector<512x128xbf16>
    %c0_10 = arith.constant 0 : index
    %c0_11 = arith.constant 0 : index
    %11 = vector.load %arg5[%c0_10, %c0_11] : memref<128x128xbf16, #tpu.memory_space<vmem>>, vector<128x128xbf16>
    %cst_12 = arith.constant dense<0.000000e+00> : vector<512x128xf32>
    %12 = tpu.matmul %10, %11, %cst_12 {dimension_numbers = #tpu.dot_dimension_numbers<[1], [0], [0], [1], [0, 0, 1, 1], [], []>} : vector<512x128xbf16>, vector<128x128xbf16>, vector<512x128xf32> -> vector<512x128xf32>
    %13 = arith.addf %9, %12 : vector<512x128xf32>
    %c0_13 = arith.constant 0 : index
    %c0_14 = arith.constant 0 : index
    %14 = vector.load %arg14[%c0_13, %c0_14] : memref<512x128xf32, #tpu.memory_space<vmem>>, vector<512x128xf32>
    tpu.vector_store %arg14[%c0_13, %c0_14], %13 {strides = array<i32>} : memref<512x128xf32, #tpu.memory_space<vmem>>, vector<512x128xf32>,
    %c0_i32_15 = arith.constant 0 : i32
    %15 = arith.cmpi eq, %arg2, %c0_i32_15 : i32
    %16 = arith.extui %15 : i1 to i32
    %c0_i32_16 = arith.constant 0 : i32
    %17 = arith.cmpi ne, %16, %c0_i32_16 : i32
    scf.if %17 {
      %c0_17 = arith.constant 0 : index
      %c0_18 = arith.constant 0 : index
      %18 = vector.load %arg13[%c0_17, %c0_18] : memref<512x128xf32, #tpu.memory_space<vmem>>, vector<512x128xf32>
      %c0_19 = arith.constant 0 : index
      %c0_20 = arith.constant 0 : index
      %19 = vector.load %arg14[%c0_19, %c0_20] : memref<512x128xf32, #tpu.memory_space<vmem>>, vector<512x128xf32>
      %20 = math.sqrt %19 : vector<512x128xf32>
      %c0_21 = arith.constant 0 : index
      %c0_22 = arith.constant 0 : index
      %21 = vector.load %arg11[%c0_21, %c0_22] : memref<512x128xf32, #tpu.memory_space<vmem>>, vector<512x128xf32>
      %22 = arith.mulf %20, %21 : vector<512x128xf32>
      %23 = arith.addf %18, %22 : vector<512x128xf32>
      %c0_23 = arith.constant 0 : index
      %c0_24 = arith.constant 0 : index
      %24 = vector.load %arg8[%c0_23, %c0_24] : memref<512x8xf32, #tpu.memory_space<vmem>>, vector<512x8xf32>
      %c0_25 = arith.constant 0 : index
      %c0_26 = arith.constant 0 : index
      %25 = vector.load %arg9[%c0_25, %c0_26] : memref<8x128xf32, #tpu.memory_space<vmem>>, vector<8x128xf32>
      %cst_27 = arith.constant dense<0.000000e+00> : vector<512x128xf32>
      %26 = tpu.matmul %24, %25, %cst_27 {dimension_numbers = #tpu.dot_dimension_numbers<[1], [0], [0], [1], [0, 0, 1, 1], [], []>} : vector<512x8xf32>, vector<8x128xf32>, vector<512x128xf32> -> vector<512x128xf32>
      %c0_28 = arith.constant 0 : index
      %c0_29 = arith.constant 0 : index
      %27 = vector.load %arg10[%c0_28, %c0_29] : memref<8x128xf32, #tpu.memory_space<vmem>>, vector<8x128xf32>
      %cst_30 = arith.constant dense<0.000000e+00> : vector<512x128xf32>
      %28 = tpu.matmul %24, %27, %cst_30 {dimension_numbers = #tpu.dot_dimension_numbers<[1], [0], [0], [1], [0, 0, 1, 1], [], []>} : vector<512x8xf32>, vector<8x128xf32>, vector<512x128xf32> -> vector<512x128xf32>
      %29 = arith.mulf %23, %26 : vector<512x128xf32>
      %30 = arith.addf %29, %28 : vector<512x128xf32>
      %cst_31 = arith.constant 0.000000e+00 : f32
      %31 = vector.broadcast %cst_31 : f32 to vector<512x128xf32>
      %32 = arith.maximumf %30, %31 : vector<512x128xf32>
      %33 = arith.truncf %32 : vector<512x128xf32> to vector<512x128xbf16>
      %c0_32 = arith.constant 0 : index
      %c0_33 = arith.constant 0 : index
      %34 = vector.load %arg12[%c0_32, %c0_33] : memref<512x128xbf16, #tpu.memory_space<vmem>>, vector<512x128xbf16>
      tpu.vector_store %arg12[%c0_32, %c0_33], %33 {strides = array<i32>} : memref<512x128xbf16, #tpu.memory_space<vmem>>, vector<512x128xbf16>,
    } else {
    }
    return
  }
  func.func @transform_0(%arg0: i32, %arg1: i32, %arg2: i32) -> (i32, i32) {
    %c0_i32 = arith.constant 0 : i32
    return %arg0, %arg2 : i32, i32
  }
  func.func @transform_1(%arg0: i32, %arg1: i32, %arg2: i32) -> (i32, i32) {
    %c0_i32 = arith.constant 0 : i32
    return %arg2, %arg1 : i32, i32
  }
  func.func @transform_2(%arg0: i32, %arg1: i32, %arg2: i32) -> (i32, i32) {
    %c0_i32 = arith.constant 0 : i32
    return %arg2, %arg1 : i32, i32
  }
  func.func @transform_3(%arg0: i32, %arg1: i32, %arg2: i32) -> (i32, i32) {
    %c0_i32 = arith.constant 0 : i32
    %c0_i32_0 = arith.constant 0 : i32
    return %c0_i32, %arg1 : i32, i32
  }
  func.func @transform_4(%arg0: i32, %arg1: i32, %arg2: i32) -> (i32, i32) {
    %c0_i32 = arith.constant 0 : i32
    %c0_i32_0 = arith.constant 0 : i32
    return %c0_i32, %arg1 : i32, i32
  }
  func.func @transform_5(%arg0: i32, %arg1: i32, %arg2: i32) -> (i32, i32) {
    %c0_i32 = arith.constant 0 : i32
    %c0_i32_0 = arith.constant 0 : i32
    return %arg0, %c0_i32 : i32, i32
  }
  func.func @transform_6(%arg0: i32, %arg1: i32, %arg2: i32) -> (i32, i32) {
    %c0_i32 = arith.constant 0 : i32
    %c0_i32_0 = arith.constant 0 : i32
    return %c0_i32, %arg1 : i32, i32
  }
  func.func @transform_7(%arg0: i32, %arg1: i32, %arg2: i32) -> (i32, i32) {
    %c0_i32 = arith.constant 0 : i32
    %c0_i32_0 = arith.constant 0 : i32
    return %c0_i32, %arg1 : i32, i32
  }
  func.func @transform_8(%arg0: i32, %arg1: i32, %arg2: i32) -> (i32, i32) {
    %c0_i32 = arith.constant 0 : i32
    return %arg0, %arg1 : i32, i32
  }
  func.func @transform_9(%arg0: i32, %arg1: i32, %arg2: i32) -> (i32, i32) {
    %c0_i32 = arith.constant 0 : i32
    return %arg0, %arg1 : i32, i32
  }
}

module attributes {stable_mosaic.version = 11 : i64} {
  func.func @_mf_kernel(%arg0: i32, %arg1: i32, %arg2: i32, %arg3: memref<256x128xbf16, #tpu.memory_space<vmem>>, %arg4: memref<128x128xbf16, #tpu.memory_space<vmem>>, %arg5: memref<128x128xbf16, #tpu.memory_space<vmem>>, %arg6: memref<1x128xf32, #tpu.memory_space<vmem>>, %arg7: memref<1x128xf32, #tpu.memory_space<vmem>>, %arg8: memref<256x8xf32, #tpu.memory_space<vmem>>, %arg9: memref<8x128xf32, #tpu.memory_space<vmem>>, %arg10: memref<8x128xf32, #tpu.memory_space<vmem>>, %arg11: memref<256x128xf32, #tpu.memory_space<vmem>>, %arg12: memref<256x128xbf16, #tpu.memory_space<vmem>>, %arg13: memref<256x128xf32, #tpu.memory_space<vmem>>, %arg14: memref<256x128xf32, #tpu.memory_space<vmem>>) attributes {dimension_semantics = [#tpu.dimension_semantics<parallel>, #tpu.dimension_semantics<parallel>, #tpu.dimension_semantics<arbitrary>], iteration_bounds = array<i64: 1, 1, 1>, scalar_prefetch = 0 : i64, scratch_operands = 2 : i64, tpu.core_type = #tpu.core_type<tc>, window_params = [{transform_indices = @transform_0, window_bounds = array<i64: 256, 128>}, {transform_indices = @transform_1, window_bounds = array<i64: 128, 128>}, {transform_indices = @transform_2, window_bounds = array<i64: 128, 128>}, {transform_indices = @transform_3, window_bounds = array<i64: 1, 128>}, {transform_indices = @transform_4, window_bounds = array<i64: 1, 128>}, {transform_indices = @transform_5, window_bounds = array<i64: 256, 8>}, {transform_indices = @transform_6, window_bounds = array<i64: 8, 128>}, {transform_indices = @transform_7, window_bounds = array<i64: 8, 128>}, {transform_indices = @transform_8, window_bounds = array<i64: 256, 128>}, {transform_indices = @transform_9, window_bounds = array<i64: 256, 128>}]} {
    %c0_i32 = arith.constant 0 : i32
    %0 = arith.cmpi eq, %arg2, %c0_i32 : i32
    %1 = arith.extui %0 : i1 to i32
    %c0_i32_0 = arith.constant 0 : i32
    %2 = arith.cmpi ne, %1, %c0_i32_0 : i32
    scf.if %2 {
      %c0_17 = arith.constant 0 : index
      %c0_18 = arith.constant 0 : index
      %18 = vector.load %arg6[%c0_17, %c0_18] : memref<1x128xf32, #tpu.memory_space<vmem>>, vector<1x128xf32>
      %19 = vector.shape_cast %18 : vector<1x128xf32> to vector<1x128xf32>
      %20 = vector.broadcast %19 : vector<1x128xf32> to vector<256x128xf32>
      %c0_19 = arith.constant 0 : index
      %c0_20 = arith.constant 0 : index
      %21 = vector.load %arg13[%c0_19, %c0_20] : memref<256x128xf32, #tpu.memory_space<vmem>>, vector<256x128xf32>
      tpu.vector_store %arg13[%c0_19, %c0_20], %20 {strides = array<i32>} : memref<256x128xf32, #tpu.memory_space<vmem>>, vector<256x128xf32>,
      %c0_21 = arith.constant 0 : index
      %c0_22 = arith.constant 0 : index
      %22 = vector.load %arg7[%c0_21, %c0_22] : memref<1x128xf32, #tpu.memory_space<vmem>>, vector<1x128xf32>
      %23 = vector.shape_cast %22 : vector<1x128xf32> to vector<1x128xf32>
      %24 = vector.broadcast %23 : vector<1x128xf32> to vector<256x128xf32>
      %cst_23 = arith.constant 9.99999971E-10 : f32
      %25 = vector.broadcast %cst_23 : f32 to vector<256x128xf32>
      %26 = arith.addf %24, %25 : vector<256x128xf32>
      %c0_24 = arith.constant 0 : index
      %c0_25 = arith.constant 0 : index
      %27 = vector.load %arg14[%c0_24, %c0_25] : memref<256x128xf32, #tpu.memory_space<vmem>>, vector<256x128xf32>
      tpu.vector_store %arg14[%c0_24, %c0_25], %26 {strides = array<i32>} : memref<256x128xf32, #tpu.memory_space<vmem>>, vector<256x128xf32>,
    } else {
    }
    %c0 = arith.constant 0 : index
    %c0_1 = arith.constant 0 : index
    %3 = vector.load %arg3[%c0, %c0_1] : memref<256x128xbf16, #tpu.memory_space<vmem>>, vector<256x128xbf16>
    %c0_2 = arith.constant 0 : index
    %c0_3 = arith.constant 0 : index
    %4 = vector.load %arg13[%c0_2, %c0_3] : memref<256x128xf32, #tpu.memory_space<vmem>>, vector<256x128xf32>
    %c0_4 = arith.constant 0 : index
    %c0_5 = arith.constant 0 : index
    %5 = vector.load %arg4[%c0_4, %c0_5] : memref<128x128xbf16, #tpu.memory_space<vmem>>, vector<128x128xbf16>
    %cst = arith.constant dense<0.000000e+00> : vector<256x128xf32>
    %6 = tpu.matmul %3, %5, %cst {dimension_numbers = #tpu.dot_dimension_numbers<[1], [0], [0], [1], [0, 0, 1, 1], [], []>} : vector<256x128xbf16>, vector<128x128xbf16>, vector<256x128xf32> -> vector<256x128xf32>
    %7 = arith.addf %4, %6 : vector<256x128xf32>
    %c0_6 = arith.constant 0 : index
    %c0_7 = arith.constant 0 : index
    %8 = vector.load %arg13[%c0_6, %c0_7] : memref<256x128xf32, #tpu.memory_space<vmem>>, vector<256x128xf32>
    tpu.vector_store %arg13[%c0_6, %c0_7], %7 {strides = array<i32>} : memref<256x128xf32, #tpu.memory_space<vmem>>, vector<256x128xf32>,
    %c0_8 = arith.constant 0 : index
    %c0_9 = arith.constant 0 : index
    %9 = vector.load %arg14[%c0_8, %c0_9] : memref<256x128xf32, #tpu.memory_space<vmem>>, vector<256x128xf32>
    %10 = arith.mulf %3, %3 : vector<256x128xbf16>
    %c0_10 = arith.constant 0 : index
    %c0_11 = arith.constant 0 : index
    %11 = vector.load %arg5[%c0_10, %c0_11] : memref<128x128xbf16, #tpu.memory_space<vmem>>, vector<128x128xbf16>
    %cst_12 = arith.constant dense<0.000000e+00> : vector<256x128xf32>
    %12 = tpu.matmul %10, %11, %cst_12 {dimension_numbers = #tpu.dot_dimension_numbers<[1], [0], [0], [1], [0, 0, 1, 1], [], []>} : vector<256x128xbf16>, vector<128x128xbf16>, vector<256x128xf32> -> vector<256x128xf32>
    %13 = arith.addf %9, %12 : vector<256x128xf32>
    %c0_13 = arith.constant 0 : index
    %c0_14 = arith.constant 0 : index
    %14 = vector.load %arg14[%c0_13, %c0_14] : memref<256x128xf32, #tpu.memory_space<vmem>>, vector<256x128xf32>
    tpu.vector_store %arg14[%c0_13, %c0_14], %13 {strides = array<i32>} : memref<256x128xf32, #tpu.memory_space<vmem>>, vector<256x128xf32>,
    %c0_i32_15 = arith.constant 0 : i32
    %15 = arith.cmpi eq, %arg2, %c0_i32_15 : i32
    %16 = arith.extui %15 : i1 to i32
    %c0_i32_16 = arith.constant 0 : i32
    %17 = arith.cmpi ne, %16, %c0_i32_16 : i32
    scf.if %17 {
      %c0_17 = arith.constant 0 : index
      %c0_18 = arith.constant 0 : index
      %18 = vector.load %arg13[%c0_17, %c0_18] : memref<256x128xf32, #tpu.memory_space<vmem>>, vector<256x128xf32>
      %c0_19 = arith.constant 0 : index
      %c0_20 = arith.constant 0 : index
      %19 = vector.load %arg14[%c0_19, %c0_20] : memref<256x128xf32, #tpu.memory_space<vmem>>, vector<256x128xf32>
      %20 = math.sqrt %19 : vector<256x128xf32>
      %c0_21 = arith.constant 0 : index
      %c0_22 = arith.constant 0 : index
      %21 = vector.load %arg11[%c0_21, %c0_22] : memref<256x128xf32, #tpu.memory_space<vmem>>, vector<256x128xf32>
      %22 = arith.mulf %20, %21 : vector<256x128xf32>
      %23 = arith.addf %18, %22 : vector<256x128xf32>
      %c0_23 = arith.constant 0 : index
      %c0_24 = arith.constant 0 : index
      %24 = vector.load %arg8[%c0_23, %c0_24] : memref<256x8xf32, #tpu.memory_space<vmem>>, vector<256x8xf32>
      %c0_25 = arith.constant 0 : index
      %c0_26 = arith.constant 0 : index
      %25 = vector.load %arg9[%c0_25, %c0_26] : memref<8x128xf32, #tpu.memory_space<vmem>>, vector<8x128xf32>
      %cst_27 = arith.constant dense<0.000000e+00> : vector<256x128xf32>
      %26 = tpu.matmul %24, %25, %cst_27 {dimension_numbers = #tpu.dot_dimension_numbers<[1], [0], [0], [1], [0, 0, 1, 1], [], []>} : vector<256x8xf32>, vector<8x128xf32>, vector<256x128xf32> -> vector<256x128xf32>
      %c0_28 = arith.constant 0 : index
      %c0_29 = arith.constant 0 : index
      %27 = vector.load %arg10[%c0_28, %c0_29] : memref<8x128xf32, #tpu.memory_space<vmem>>, vector<8x128xf32>
      %cst_30 = arith.constant dense<0.000000e+00> : vector<256x128xf32>
      %28 = tpu.matmul %24, %27, %cst_30 {dimension_numbers = #tpu.dot_dimension_numbers<[1], [0], [0], [1], [0, 0, 1, 1], [], []>} : vector<256x8xf32>, vector<8x128xf32>, vector<256x128xf32> -> vector<256x128xf32>
      %29 = arith.mulf %23, %26 : vector<256x128xf32>
      %30 = arith.addf %29, %28 : vector<256x128xf32>
      %cst_31 = arith.constant 0.000000e+00 : f32
      %31 = vector.broadcast %cst_31 : f32 to vector<256x128xf32>
      %32 = arith.maximumf %30, %31 : vector<256x128xf32>
      %33 = arith.truncf %32 : vector<256x128xf32> to vector<256x128xbf16>
      %c0_32 = arith.constant 0 : index
      %c0_33 = arith.constant 0 : index
      %34 = vector.load %arg12[%c0_32, %c0_33] : memref<256x128xbf16, #tpu.memory_space<vmem>>, vector<256x128xbf16>
      tpu.vector_store %arg12[%c0_32, %c0_33], %33 {strides = array<i32>} : memref<256x128xbf16, #tpu.memory_space<vmem>>, vector<256x128xbf16>,
    } else {
    }
    return
  }
  func.func @transform_0(%arg0: i32, %arg1: i32, %arg2: i32) -> (i32, i32) {
    %c0_i32 = arith.constant 0 : i32
    return %arg0, %arg2 : i32, i32
  }
  func.func @transform_1(%arg0: i32, %arg1: i32, %arg2: i32) -> (i32, i32) {
    %c0_i32 = arith.constant 0 : i32
    return %arg2, %arg1 : i32, i32
  }
  func.func @transform_2(%arg0: i32, %arg1: i32, %arg2: i32) -> (i32, i32) {
    %c0_i32 = arith.constant 0 : i32
    return %arg2, %arg1 : i32, i32
  }
  func.func @transform_3(%arg0: i32, %arg1: i32, %arg2: i32) -> (i32, i32) {
    %c0_i32 = arith.constant 0 : i32
    %c0_i32_0 = arith.constant 0 : i32
    return %c0_i32, %arg1 : i32, i32
  }
  func.func @transform_4(%arg0: i32, %arg1: i32, %arg2: i32) -> (i32, i32) {
    %c0_i32 = arith.constant 0 : i32
    %c0_i32_0 = arith.constant 0 : i32
    return %c0_i32, %arg1 : i32, i32
  }
  func.func @transform_5(%arg0: i32, %arg1: i32, %arg2: i32) -> (i32, i32) {
    %c0_i32 = arith.constant 0 : i32
    %c0_i32_0 = arith.constant 0 : i32
    return %arg0, %c0_i32 : i32, i32
  }
  func.func @transform_6(%arg0: i32, %arg1: i32, %arg2: i32) -> (i32, i32) {
    %c0_i32 = arith.constant 0 : i32
    %c0_i32_0 = arith.constant 0 : i32
    return %c0_i32, %arg1 : i32, i32
  }
  func.func @transform_7(%arg0: i32, %arg1: i32, %arg2: i32) -> (i32, i32) {
    %c0_i32 = arith.constant 0 : i32
    %c0_i32_0 = arith.constant 0 : i32
    return %c0_i32, %arg1 : i32, i32
  }
  func.func @transform_8(%arg0: i32, %arg1: i32, %arg2: i32) -> (i32, i32) {
    %c0_i32 = arith.constant 0 : i32
    return %arg0, %arg1 : i32, i32
  }
  func.func @transform_9(%arg0: i32, %arg1: i32, %arg2: i32) -> (i32, i32) {
    %c0_i32 = arith.constant 0 : i32
    return %arg0, %arg1 : i32, i32
  }
}

module attributes {stable_mosaic.version = 11 : i64} {
  func.func @_mf_kernel(%arg0: i32, %arg1: i32, %arg2: i32, %arg3: memref<16x128xbf16, #tpu.memory_space<vmem>>, %arg4: memref<128x128xbf16, #tpu.memory_space<vmem>>, %arg5: memref<128x128xbf16, #tpu.memory_space<vmem>>, %arg6: memref<1x128xf32, #tpu.memory_space<vmem>>, %arg7: memref<1x128xf32, #tpu.memory_space<vmem>>, %arg8: memref<16x8xf32, #tpu.memory_space<vmem>>, %arg9: memref<8x128xf32, #tpu.memory_space<vmem>>, %arg10: memref<8x128xf32, #tpu.memory_space<vmem>>, %arg11: memref<16x128xf32, #tpu.memory_space<vmem>>, %arg12: memref<16x128xf32, #tpu.memory_space<vmem>>, %arg13: memref<16x128xf32, #tpu.memory_space<vmem>>, %arg14: memref<16x128xf32, #tpu.memory_space<vmem>>) attributes {dimension_semantics = [#tpu.dimension_semantics<parallel>, #tpu.dimension_semantics<parallel>, #tpu.dimension_semantics<arbitrary>], iteration_bounds = array<i64: 1, 1, 1>, scalar_prefetch = 0 : i64, scratch_operands = 2 : i64, tpu.core_type = #tpu.core_type<tc>, window_params = [{transform_indices = @transform_0, window_bounds = array<i64: 16, 128>}, {transform_indices = @transform_1, window_bounds = array<i64: 128, 128>}, {transform_indices = @transform_2, window_bounds = array<i64: 128, 128>}, {transform_indices = @transform_3, window_bounds = array<i64: 1, 128>}, {transform_indices = @transform_4, window_bounds = array<i64: 1, 128>}, {transform_indices = @transform_5, window_bounds = array<i64: 16, 8>}, {transform_indices = @transform_6, window_bounds = array<i64: 8, 128>}, {transform_indices = @transform_7, window_bounds = array<i64: 8, 128>}, {transform_indices = @transform_8, window_bounds = array<i64: 16, 128>}, {transform_indices = @transform_9, window_bounds = array<i64: 16, 128>}]} {
    %c0_i32 = arith.constant 0 : i32
    %0 = arith.cmpi eq, %arg2, %c0_i32 : i32
    %1 = arith.extui %0 : i1 to i32
    %c0_i32_0 = arith.constant 0 : i32
    %2 = arith.cmpi ne, %1, %c0_i32_0 : i32
    scf.if %2 {
      %c0_17 = arith.constant 0 : index
      %c0_18 = arith.constant 0 : index
      %18 = vector.load %arg6[%c0_17, %c0_18] : memref<1x128xf32, #tpu.memory_space<vmem>>, vector<1x128xf32>
      %19 = vector.shape_cast %18 : vector<1x128xf32> to vector<1x128xf32>
      %20 = vector.broadcast %19 : vector<1x128xf32> to vector<16x128xf32>
      %c0_19 = arith.constant 0 : index
      %c0_20 = arith.constant 0 : index
      %21 = vector.load %arg13[%c0_19, %c0_20] : memref<16x128xf32, #tpu.memory_space<vmem>>, vector<16x128xf32>
      tpu.vector_store %arg13[%c0_19, %c0_20], %20 {strides = array<i32>} : memref<16x128xf32, #tpu.memory_space<vmem>>, vector<16x128xf32>,
      %c0_21 = arith.constant 0 : index
      %c0_22 = arith.constant 0 : index
      %22 = vector.load %arg7[%c0_21, %c0_22] : memref<1x128xf32, #tpu.memory_space<vmem>>, vector<1x128xf32>
      %23 = vector.shape_cast %22 : vector<1x128xf32> to vector<1x128xf32>
      %24 = vector.broadcast %23 : vector<1x128xf32> to vector<16x128xf32>
      %c0_23 = arith.constant 0 : index
      %c0_24 = arith.constant 0 : index
      %25 = vector.load %arg14[%c0_23, %c0_24] : memref<16x128xf32, #tpu.memory_space<vmem>>, vector<16x128xf32>
      tpu.vector_store %arg14[%c0_23, %c0_24], %24 {strides = array<i32>} : memref<16x128xf32, #tpu.memory_space<vmem>>, vector<16x128xf32>,
    } else {
    }
    %c0 = arith.constant 0 : index
    %c0_1 = arith.constant 0 : index
    %3 = vector.load %arg3[%c0, %c0_1] : memref<16x128xbf16, #tpu.memory_space<vmem>>, vector<16x128xbf16>
    %c0_2 = arith.constant 0 : index
    %c0_3 = arith.constant 0 : index
    %4 = vector.load %arg13[%c0_2, %c0_3] : memref<16x128xf32, #tpu.memory_space<vmem>>, vector<16x128xf32>
    %c0_4 = arith.constant 0 : index
    %c0_5 = arith.constant 0 : index
    %5 = vector.load %arg4[%c0_4, %c0_5] : memref<128x128xbf16, #tpu.memory_space<vmem>>, vector<128x128xbf16>
    %cst = arith.constant dense<0.000000e+00> : vector<16x128xf32>
    %6 = tpu.matmul %3, %5, %cst {dimension_numbers = #tpu.dot_dimension_numbers<[1], [0], [0], [1], [0, 0, 1, 1], [], []>} : vector<16x128xbf16>, vector<128x128xbf16>, vector<16x128xf32> -> vector<16x128xf32>
    %7 = arith.addf %4, %6 : vector<16x128xf32>
    %c0_6 = arith.constant 0 : index
    %c0_7 = arith.constant 0 : index
    %8 = vector.load %arg13[%c0_6, %c0_7] : memref<16x128xf32, #tpu.memory_space<vmem>>, vector<16x128xf32>
    tpu.vector_store %arg13[%c0_6, %c0_7], %7 {strides = array<i32>} : memref<16x128xf32, #tpu.memory_space<vmem>>, vector<16x128xf32>,
    %c0_8 = arith.constant 0 : index
    %c0_9 = arith.constant 0 : index
    %9 = vector.load %arg14[%c0_8, %c0_9] : memref<16x128xf32, #tpu.memory_space<vmem>>, vector<16x128xf32>
    %10 = arith.mulf %3, %3 : vector<16x128xbf16>
    %c0_10 = arith.constant 0 : index
    %c0_11 = arith.constant 0 : index
    %11 = vector.load %arg5[%c0_10, %c0_11] : memref<128x128xbf16, #tpu.memory_space<vmem>>, vector<128x128xbf16>
    %cst_12 = arith.constant dense<0.000000e+00> : vector<16x128xf32>
    %12 = tpu.matmul %10, %11, %cst_12 {dimension_numbers = #tpu.dot_dimension_numbers<[1], [0], [0], [1], [0, 0, 1, 1], [], []>} : vector<16x128xbf16>, vector<128x128xbf16>, vector<16x128xf32> -> vector<16x128xf32>
    %13 = arith.addf %9, %12 : vector<16x128xf32>
    %c0_13 = arith.constant 0 : index
    %c0_14 = arith.constant 0 : index
    %14 = vector.load %arg14[%c0_13, %c0_14] : memref<16x128xf32, #tpu.memory_space<vmem>>, vector<16x128xf32>
    tpu.vector_store %arg14[%c0_13, %c0_14], %13 {strides = array<i32>} : memref<16x128xf32, #tpu.memory_space<vmem>>, vector<16x128xf32>,
    %c0_i32_15 = arith.constant 0 : i32
    %15 = arith.cmpi eq, %arg2, %c0_i32_15 : i32
    %16 = arith.extui %15 : i1 to i32
    %c0_i32_16 = arith.constant 0 : i32
    %17 = arith.cmpi ne, %16, %c0_i32_16 : i32
    scf.if %17 {
      %c0_17 = arith.constant 0 : index
      %c0_18 = arith.constant 0 : index
      %18 = vector.load %arg13[%c0_17, %c0_18] : memref<16x128xf32, #tpu.memory_space<vmem>>, vector<16x128xf32>
      %c0_19 = arith.constant 0 : index
      %c0_20 = arith.constant 0 : index
      %19 = vector.load %arg14[%c0_19, %c0_20] : memref<16x128xf32, #tpu.memory_space<vmem>>, vector<16x128xf32>
      %20 = math.sqrt %19 : vector<16x128xf32>
      %c0_21 = arith.constant 0 : index
      %c0_22 = arith.constant 0 : index
      %21 = vector.load %arg11[%c0_21, %c0_22] : memref<16x128xf32, #tpu.memory_space<vmem>>, vector<16x128xf32>
      %22 = arith.mulf %20, %21 : vector<16x128xf32>
      %23 = arith.addf %18, %22 : vector<16x128xf32>
      %c0_23 = arith.constant 0 : index
      %c0_24 = arith.constant 0 : index
      %24 = vector.load %arg12[%c0_23, %c0_24] : memref<16x128xf32, #tpu.memory_space<vmem>>, vector<16x128xf32>
      tpu.vector_store %arg12[%c0_23, %c0_24], %23 {strides = array<i32>} : memref<16x128xf32, #tpu.memory_space<vmem>>, vector<16x128xf32>,
    } else {
    }
    return
  }
  func.func @transform_0(%arg0: i32, %arg1: i32, %arg2: i32) -> (i32, i32) {
    %c0_i32 = arith.constant 0 : i32
    return %arg0, %arg2 : i32, i32
  }
  func.func @transform_1(%arg0: i32, %arg1: i32, %arg2: i32) -> (i32, i32) {
    %c0_i32 = arith.constant 0 : i32
    return %arg2, %arg1 : i32, i32
  }
  func.func @transform_2(%arg0: i32, %arg1: i32, %arg2: i32) -> (i32, i32) {
    %c0_i32 = arith.constant 0 : i32
    return %arg2, %arg1 : i32, i32
  }
  func.func @transform_3(%arg0: i32, %arg1: i32, %arg2: i32) -> (i32, i32) {
    %c0_i32 = arith.constant 0 : i32
    %c0_i32_0 = arith.constant 0 : i32
    return %c0_i32, %arg1 : i32, i32
  }
  func.func @transform_4(%arg0: i32, %arg1: i32, %arg2: i32) -> (i32, i32) {
    %c0_i32 = arith.constant 0 : i32
    %c0_i32_0 = arith.constant 0 : i32
    return %c0_i32, %arg1 : i32, i32
  }
  func.func @transform_5(%arg0: i32, %arg1: i32, %arg2: i32) -> (i32, i32) {
    %c0_i32 = arith.constant 0 : i32
    %c0_i32_0 = arith.constant 0 : i32
    return %arg0, %c0_i32 : i32, i32
  }
  func.func @transform_6(%arg0: i32, %arg1: i32, %arg2: i32) -> (i32, i32) {
    %c0_i32 = arith.constant 0 : i32
    %c0_i32_0 = arith.constant 0 : i32
    return %c0_i32, %arg1 : i32, i32
  }
  func.func @transform_7(%arg0: i32, %arg1: i32, %arg2: i32) -> (i32, i32) {
    %c0_i32 = arith.constant 0 : i32
    %c0_i32_0 = arith.constant 0 : i32
    return %c0_i32, %arg1 : i32, i32
  }
  func.func @transform_8(%arg0: i32, %arg1: i32, %arg2: i32) -> (i32, i32) {
    %c0_i32 = arith.constant 0 : i32
    return %arg0, %arg1 : i32, i32
  }
  func.func @transform_9(%arg0: i32, %arg1: i32, %arg2: i32) -> (i32, i32) {
    %c0_i32 = arith.constant 0 : i32
    return %arg0, %arg1 : i32, i32
  }
}

module attributes {stable_mosaic.version = 11 : i64} {
  func.func @_mf_kernel(%arg0: i32, %arg1: i32, %arg2: i32, %arg3: memref<16x256xbf16, #tpu.memory_space<vmem>>, %arg4: memref<256x128xbf16, #tpu.memory_space<vmem>>, %arg5: memref<256x128xbf16, #tpu.memory_space<vmem>>, %arg6: memref<1x128xf32, #tpu.memory_space<vmem>>, %arg7: memref<1x128xf32, #tpu.memory_space<vmem>>, %arg8: memref<16x8xf32, #tpu.memory_space<vmem>>, %arg9: memref<8x128xf32, #tpu.memory_space<vmem>>, %arg10: memref<8x128xf32, #tpu.memory_space<vmem>>, %arg11: memref<16x128xf32, #tpu.memory_space<vmem>>, %arg12: memref<16x128xbf16, #tpu.memory_space<vmem>>, %arg13: memref<16x128xf32, #tpu.memory_space<vmem>>, %arg14: memref<16x128xf32, #tpu.memory_space<vmem>>) attributes {dimension_semantics = [#tpu.dimension_semantics<parallel>, #tpu.dimension_semantics<parallel>, #tpu.dimension_semantics<arbitrary>], iteration_bounds = array<i64: 1, 1, 1>, scalar_prefetch = 0 : i64, scratch_operands = 2 : i64, tpu.core_type = #tpu.core_type<tc>, window_params = [{transform_indices = @transform_0, window_bounds = array<i64: 16, 256>}, {transform_indices = @transform_1, window_bounds = array<i64: 256, 128>}, {transform_indices = @transform_2, window_bounds = array<i64: 256, 128>}, {transform_indices = @transform_3, window_bounds = array<i64: 1, 128>}, {transform_indices = @transform_4, window_bounds = array<i64: 1, 128>}, {transform_indices = @transform_5, window_bounds = array<i64: 16, 8>}, {transform_indices = @transform_6, window_bounds = array<i64: 8, 128>}, {transform_indices = @transform_7, window_bounds = array<i64: 8, 128>}, {transform_indices = @transform_8, window_bounds = array<i64: 16, 128>}, {transform_indices = @transform_9, window_bounds = array<i64: 16, 128>}]} {
    %c0_i32 = arith.constant 0 : i32
    %0 = arith.cmpi eq, %arg2, %c0_i32 : i32
    %1 = arith.extui %0 : i1 to i32
    %c0_i32_0 = arith.constant 0 : i32
    %2 = arith.cmpi ne, %1, %c0_i32_0 : i32
    scf.if %2 {
      %c0_17 = arith.constant 0 : index
      %c0_18 = arith.constant 0 : index
      %18 = vector.load %arg6[%c0_17, %c0_18] : memref<1x128xf32, #tpu.memory_space<vmem>>, vector<1x128xf32>
      %19 = vector.shape_cast %18 : vector<1x128xf32> to vector<1x128xf32>
      %20 = vector.broadcast %19 : vector<1x128xf32> to vector<16x128xf32>
      %c0_19 = arith.constant 0 : index
      %c0_20 = arith.constant 0 : index
      %21 = vector.load %arg13[%c0_19, %c0_20] : memref<16x128xf32, #tpu.memory_space<vmem>>, vector<16x128xf32>
      tpu.vector_store %arg13[%c0_19, %c0_20], %20 {strides = array<i32>} : memref<16x128xf32, #tpu.memory_space<vmem>>, vector<16x128xf32>,
      %c0_21 = arith.constant 0 : index
      %c0_22 = arith.constant 0 : index
      %22 = vector.load %arg7[%c0_21, %c0_22] : memref<1x128xf32, #tpu.memory_space<vmem>>, vector<1x128xf32>
      %23 = vector.shape_cast %22 : vector<1x128xf32> to vector<1x128xf32>
      %24 = vector.broadcast %23 : vector<1x128xf32> to vector<16x128xf32>
      %c0_23 = arith.constant 0 : index
      %c0_24 = arith.constant 0 : index
      %25 = vector.load %arg14[%c0_23, %c0_24] : memref<16x128xf32, #tpu.memory_space<vmem>>, vector<16x128xf32>
      tpu.vector_store %arg14[%c0_23, %c0_24], %24 {strides = array<i32>} : memref<16x128xf32, #tpu.memory_space<vmem>>, vector<16x128xf32>,
    } else {
    }
    %c0 = arith.constant 0 : index
    %c0_1 = arith.constant 0 : index
    %3 = vector.load %arg3[%c0, %c0_1] : memref<16x256xbf16, #tpu.memory_space<vmem>>, vector<16x256xbf16>
    %c0_2 = arith.constant 0 : index
    %c0_3 = arith.constant 0 : index
    %4 = vector.load %arg13[%c0_2, %c0_3] : memref<16x128xf32, #tpu.memory_space<vmem>>, vector<16x128xf32>
    %c0_4 = arith.constant 0 : index
    %c0_5 = arith.constant 0 : index
    %5 = vector.load %arg4[%c0_4, %c0_5] : memref<256x128xbf16, #tpu.memory_space<vmem>>, vector<256x128xbf16>
    %cst = arith.constant dense<0.000000e+00> : vector<16x128xf32>
    %6 = tpu.matmul %3, %5, %cst {dimension_numbers = #tpu.dot_dimension_numbers<[1], [0], [0], [1], [0, 0, 1, 1], [], []>} : vector<16x256xbf16>, vector<256x128xbf16>, vector<16x128xf32> -> vector<16x128xf32>
    %7 = arith.addf %4, %6 : vector<16x128xf32>
    %c0_6 = arith.constant 0 : index
    %c0_7 = arith.constant 0 : index
    %8 = vector.load %arg13[%c0_6, %c0_7] : memref<16x128xf32, #tpu.memory_space<vmem>>, vector<16x128xf32>
    tpu.vector_store %arg13[%c0_6, %c0_7], %7 {strides = array<i32>} : memref<16x128xf32, #tpu.memory_space<vmem>>, vector<16x128xf32>,
    %c0_8 = arith.constant 0 : index
    %c0_9 = arith.constant 0 : index
    %9 = vector.load %arg14[%c0_8, %c0_9] : memref<16x128xf32, #tpu.memory_space<vmem>>, vector<16x128xf32>
    %10 = arith.mulf %3, %3 : vector<16x256xbf16>
    %c0_10 = arith.constant 0 : index
    %c0_11 = arith.constant 0 : index
    %11 = vector.load %arg5[%c0_10, %c0_11] : memref<256x128xbf16, #tpu.memory_space<vmem>>, vector<256x128xbf16>
    %cst_12 = arith.constant dense<0.000000e+00> : vector<16x128xf32>
    %12 = tpu.matmul %10, %11, %cst_12 {dimension_numbers = #tpu.dot_dimension_numbers<[1], [0], [0], [1], [0, 0, 1, 1], [], []>} : vector<16x256xbf16>, vector<256x128xbf16>, vector<16x128xf32> -> vector<16x128xf32>
    %13 = arith.addf %9, %12 : vector<16x128xf32>
    %c0_13 = arith.constant 0 : index
    %c0_14 = arith.constant 0 : index
    %14 = vector.load %arg14[%c0_13, %c0_14] : memref<16x128xf32, #tpu.memory_space<vmem>>, vector<16x128xf32>
    tpu.vector_store %arg14[%c0_13, %c0_14], %13 {strides = array<i32>} : memref<16x128xf32, #tpu.memory_space<vmem>>, vector<16x128xf32>,
    %c0_i32_15 = arith.constant 0 : i32
    %15 = arith.cmpi eq, %arg2, %c0_i32_15 : i32
    %16 = arith.extui %15 : i1 to i32
    %c0_i32_16 = arith.constant 0 : i32
    %17 = arith.cmpi ne, %16, %c0_i32_16 : i32
    scf.if %17 {
      %c0_17 = arith.constant 0 : index
      %c0_18 = arith.constant 0 : index
      %18 = vector.load %arg13[%c0_17, %c0_18] : memref<16x128xf32, #tpu.memory_space<vmem>>, vector<16x128xf32>
      %c0_19 = arith.constant 0 : index
      %c0_20 = arith.constant 0 : index
      %19 = vector.load %arg14[%c0_19, %c0_20] : memref<16x128xf32, #tpu.memory_space<vmem>>, vector<16x128xf32>
      %20 = math.sqrt %19 : vector<16x128xf32>
      %c0_21 = arith.constant 0 : index
      %c0_22 = arith.constant 0 : index
      %21 = vector.load %arg11[%c0_21, %c0_22] : memref<16x128xf32, #tpu.memory_space<vmem>>, vector<16x128xf32>
      %22 = arith.mulf %20, %21 : vector<16x128xf32>
      %23 = arith.addf %18, %22 : vector<16x128xf32>
      %c0_23 = arith.constant 0 : index
      %c0_24 = arith.constant 0 : index
      %24 = vector.load %arg8[%c0_23, %c0_24] : memref<16x8xf32, #tpu.memory_space<vmem>>, vector<16x8xf32>
      %c0_25 = arith.constant 0 : index
      %c0_26 = arith.constant 0 : index
      %25 = vector.load %arg9[%c0_25, %c0_26] : memref<8x128xf32, #tpu.memory_space<vmem>>, vector<8x128xf32>
      %cst_27 = arith.constant dense<0.000000e+00> : vector<16x128xf32>
      %26 = tpu.matmul %24, %25, %cst_27 {dimension_numbers = #tpu.dot_dimension_numbers<[1], [0], [0], [1], [0, 0, 1, 1], [], []>} : vector<16x8xf32>, vector<8x128xf32>, vector<16x128xf32> -> vector<16x128xf32>
      %c0_28 = arith.constant 0 : index
      %c0_29 = arith.constant 0 : index
      %27 = vector.load %arg10[%c0_28, %c0_29] : memref<8x128xf32, #tpu.memory_space<vmem>>, vector<8x128xf32>
      %cst_30 = arith.constant dense<0.000000e+00> : vector<16x128xf32>
      %28 = tpu.matmul %24, %27, %cst_30 {dimension_numbers = #tpu.dot_dimension_numbers<[1], [0], [0], [1], [0, 0, 1, 1], [], []>} : vector<16x8xf32>, vector<8x128xf32>, vector<16x128xf32> -> vector<16x128xf32>
      %29 = arith.mulf %23, %26 : vector<16x128xf32>
      %30 = arith.addf %29, %28 : vector<16x128xf32>
      %cst_31 = arith.constant 0.000000e+00 : f32
      %31 = vector.broadcast %cst_31 : f32 to vector<16x128xf32>
      %32 = arith.maximumf %30, %31 : vector<16x128xf32>
      %33 = arith.truncf %32 : vector<16x128xf32> to vector<16x128xbf16>
      %c0_32 = arith.constant 0 : index
      %c0_33 = arith.constant 0 : index
      %34 = vector.load %arg12[%c0_32, %c0_33] : memref<16x128xbf16, #tpu.memory_space<vmem>>, vector<16x128xbf16>
      tpu.vector_store %arg12[%c0_32, %c0_33], %33 {strides = array<i32>} : memref<16x128xbf16, #tpu.memory_space<vmem>>, vector<16x128xbf16>,
    } else {
    }
    return
  }
  func.func @transform_0(%arg0: i32, %arg1: i32, %arg2: i32) -> (i32, i32) {
    %c0_i32 = arith.constant 0 : i32
    return %arg0, %arg2 : i32, i32
  }
  func.func @transform_1(%arg0: i32, %arg1: i32, %arg2: i32) -> (i32, i32) {
    %c0_i32 = arith.constant 0 : i32
    return %arg2, %arg1 : i32, i32
  }
  func.func @transform_2(%arg0: i32, %arg1: i32, %arg2: i32) -> (i32, i32) {
    %c0_i32 = arith.constant 0 : i32
    return %arg2, %arg1 : i32, i32
  }
  func.func @transform_3(%arg0: i32, %arg1: i32, %arg2: i32) -> (i32, i32) {
    %c0_i32 = arith.constant 0 : i32
    %c0_i32_0 = arith.constant 0 : i32
    return %c0_i32, %arg1 : i32, i32
  }
  func.func @transform_4(%arg0: i32, %arg1: i32, %arg2: i32) -> (i32, i32) {
    %c0_i32 = arith.constant 0 : i32
    %c0_i32_0 = arith.constant 0 : i32
    return %c0_i32, %arg1 : i32, i32
  }
  func.func @transform_5(%arg0: i32, %arg1: i32, %arg2: i32) -> (i32, i32) {
    %c0_i32 = arith.constant 0 : i32
    %c0_i32_0 = arith.constant 0 : i32
    return %arg0, %c0_i32 : i32, i32
  }
  func.func @transform_6(%arg0: i32, %arg1: i32, %arg2: i32) -> (i32, i32) {
    %c0_i32 = arith.constant 0 : i32
    %c0_i32_0 = arith.constant 0 : i32
    return %c0_i32, %arg1 : i32, i32
  }
  func.func @transform_7(%arg0: i32, %arg1: i32, %arg2: i32) -> (i32, i32) {
    %c0_i32 = arith.constant 0 : i32
    %c0_i32_0 = arith.constant 0 : i32
    return %c0_i32, %arg1 : i32, i32
  }
  func.func @transform_8(%arg0: i32, %arg1: i32, %arg2: i32) -> (i32, i32) {
    %c0_i32 = arith.constant 0 : i32
    return %arg0, %arg1 : i32, i32
  }
  func.func @transform_9(%arg0: i32, %arg1: i32, %arg2: i32) -> (i32, i32) {
    %c0_i32 = arith.constant 0 : i32
    return %arg0, %arg1 : i32, i32
  }
}

</mosaic_0001>

<bundles_post_ra>
// kernel: tile.18
= control target key start
LH: loop header
LB: loop body
LE: loop exit
PB: predicated region body
PF: predicated region fallthrough
CT: control target
= control target key end

     0   :  { %s22_s0 = inlined_call_operand.vmem [shape: s32[2], index: 0, kind: input, shape index: {}]   ;;  %s23_s1 = inlined_call_operand.vmem [shape: s32[2,2], index: 1, kind: output, shape index: {}]  }
   0x1   :  { %v4_v0 = vld [vmem:[%s22_s0] ss:$0 sm:$0xff] }
   0x2   :  { %5 = vst [vmem:[%s23_s1] sm:$0x3] %v4_v0 }

// kernel: tile.19
= control target key start
LH: loop header
LB: loop body
LE: loop exit
PB: predicated region body
PF: predicated region fallthrough
CT: control target
= control target key end

     0   :  { %vm8_vm0 = vcmask 15360   ;;  %vm14_vm1 = vcmask 31760   ;;  %s42_s0 = inlined_call_operand.vmem [shape: s32[2,2], index: 0, kind: input, shape index: {}]   ;;  %s43_s1 = inlined_call_operand.vmem [shape: s32[4], index: 1, kind: output, shape index: {}]  }
   0x1   :  { %v5_v0 = vld [vmem:[%s42_s0] sm:$0x3]  ;;  %s25_s0 = smov 2  }
   0x2   :  { %6 = vst [vmem:[#allocation1] sm:$0x3] %v5_v0 }
   0x9   :  { %v11_v1 = vld [vmem:[#allocation1 + $0x1] sm:$0x1]   ;;  %v7_v2 = vld [vmem:[#allocation1] sm:$0x1]  }
   0xa   :  { %12 = vrot.lane.b32.xlu0 %v11_v1, %s25_s0  ;;  %9 = vst.msk [vmem:[#allocation0] sm:$0x1] %vm8_vm0, %v7_v2  }
  0x7c   :  { %v13_v3 = vpop.permute.xlu0 %12  }
  0x7d   :  { %15 = vst.msk [vmem:[#allocation0] sm:$0x1] %vm14_vm1, %v13_v3  }
  0x84   :  { %v20_v4 = vld [vmem:[#allocation0] sm:$0x1] }
  0x85   :  { %23 = vst [vmem:[%s43_s1] sm:$0x1] %v20_v4 }

// kernel: multihead_film_cnn_forward.4
= control target key start
LH: loop header
LB: loop body
LE: loop exit
PB: predicated region body
PF: predicated region fallthrough
CT: control target
= control target key end

     0   :  { %s6209_s30 = smov 0   ;;  %s6211_s10 = smov 0   ;;  %s7957_s0 = inlined_call_operand.vmem [shape: bf16[1024,128], index: 0, kind: input, shape index: {}]   ;;  %s7958_s1 = inlined_call_operand.vmem [shape: bf16[128,128], index: 1, kind: input, shape index: {}]   ;;  %s7959_s2 = inlined_call_operand.vmem [shape: bf16[128,128], index: 2, kind: input, shape index: {}]   ;;  %s7960_s3 = inlined_call_operand.vmem [shape: f32[1,128], index: 3, kind: input, shape index: {}]   ;;  %s7961_s4 = inlined_call_operand.vmem [shape: f32[1,128], index: 4, kind: input, shape index: {}]   ;;  %s7962_s5 = inlined_call_operand.vmem [shape: f32[1024,8], index: 5, kind: input, shape index: {}]   ;;  %s7963_s6 = inlined_call_operand.vmem [shape: f32[8,128], index: 6, kind: input, shape index: {}]   ;;  %s7964_s7 = inlined_call_operand.vmem [shape: f32[8,128], index: 7, kind: input, shape index: {}]   ;;  %s7965_s8 = inlined_call_operand.vmem [shape: f32[1024,128], index: 8, kind: input, shape index: {}]   ;;  %s7966_s9 = inlined_call_operand.vmem [shape: bf16[1024,128], index: 9, kind: output, shape index: {}]  }
   0x1   :  { %s6213_s11 = smov 0  }
   0x2 LB: > { %s38_s12 = sadd.s32 1, %s6153_s10  ;;  %p4827_p0 = scmp.ge.s32.totalorder %s6157_s11, 1  ;;  %s6157_s11 = sphi %s6213_s11, %s19_s11   ;;  %s6153_s10 = sphi %s6211_s10, %s8126_s10   ;;  %s6149_s30 = sphi %s6209_s30, %s8125_s30  }
   0x3   : > { %p40_p1 = scmp.ge.s32.totalorder %s38_s12, 2  ;;  %p407_p2 = scmp.lt.s32.totalorder %s6157_s11, 3 }
   0x5   : > { %s8128_s12 = smov (%p40_p1, %s38_s12), 0  ;;  %p408_p3 = pnand %p4827_p0, %p407_p2 }
   0x7   : > { %411 = sbr.rel (%p408_p3) target bundleno = 501 (0x1f5), region = 56 }
   0xc   : > { %v5957_v0 = vld [vmem:[%s7958_s1 + $0x38] sm:$0xff]   ;;  %s4828_s15 = sshll.u32 %s6149_s30, 6  ;;  %v5959_v2 = vld [vmem:[%s7958_s1 + $0x30] sm:$0xff]   ;;  %v5961_v4 = vld [vmem:[%s7958_s1 + $0x28] sm:$0xff]   ;;  %vm3143_vm0 = vcmask 64512  }
   0xd   : > { %v5958_v1 = vld [vmem:[%s7959_s2 + $0x38] sm:$0xff]   ;;  %5577 = vmatprep.subr.bf16.mxu0 %v5957_v0  ;;  %p493_p4 = scmp.lt.s32.totalorder %s4828_s15, 127  ;;  %v5960_v3 = vld [vmem:[%s7959_s2 + $0x30] sm:$0xff]   ;;  %v5962_v5 = vld [vmem:[%s7959_s2 + $0x28] sm:$0xff]  }
   0xe   : > { %5657 = vmatprep.subr.bf16.mxu1 %v5958_v1  ;;  %5578 = vmatpush3.bf16.msra.mxu0 %v5957_v0  ;;  %v5963_v6 = vld [vmem:[%s7958_s1 + $0x20] sm:$0xff]   ;;  %v5965_v8 = vld [vmem:[%s7958_s1 + $0x18] sm:$0xff]   ;;  %v5967_v10 = vld [vmem:[%s7958_s1 + $0x10] sm:$0xff]  }
   0xf   : > { %5658 = vmatpush3.bf16.msra.mxu1 %v5958_v1  ;;  %5579 = vmatprep.subr.bf16.mxu0 %v5959_v2  ;;  %s8130_s15 = smov (!%p493_p4, %s4828_s15), 127  ;;  %v5964_v7 = vld [vmem:[%s7959_s2 + $0x20] sm:$0xff]   ;;  %v5966_v9 = vld [vmem:[%s7959_s2 + $0x18] sm:$0xff]   ;;  %v5968_v13 = vld [vmem:[%s7959_s2 + $0x10] sm:$0xff]  }
  0x10   : > { %5659 = vmatprep.subr.bf16.mxu1 %v5960_v3  ;;  %s4829_s30 = sshll.u32 %s8130_s15, 2  ;;  %v5969_v18 = vld [vmem:[%s7958_s1 + $0x8] sm:$0xff]   ;;  %v5971_v20 = vld [vmem:[%s7958_s1] sm:$0xff]   ;;  %s4831_s22 = sshll.u32 %s8130_s15, 3 }
  0x11   : > { %s6265_s20 = scalar_lea.vmem %s7957_s0, %s4829_s30  ;;  %v5970_v19 = vld [vmem:[%s7959_s2 + $0x8] sm:$0xff]   ;;  %v5972_v23 = vld [vmem:[%s7959_s2] sm:$0xff]   ;;  %s6361_s25 = scalar_lea.vmem %s7962_s5, %s4831_s22 }
  0x12   : > { %5580 = vmatpush3.bf16.msra.mxu0 %v5959_v2  ;;  %v705_v11 = vld [vmem:[%s6265_s20] sm:$0xf]  ;;  %v706_v12 = vld [vmem:[%s6265_s20 + $0x4] sm:$0xf]  ;;  %v707_v21 = vld [vmem:[%s6265_s20 + $0x8] sm:$0xf]  ;;  %s6558_s14 = scalar_lea.vmem %s7965_s8, %s4831_s22  ;;  %s7561_s21 = scalar_lea.vmem %s7966_s9, %s4829_s30 }
  0x13   : > { %5660 = vmatpush3.bf16.msra.mxu1 %v5960_v3  ;;  %5581 = vmatprep.subr.bf16.mxu0 %v5961_v4  ;;  %v4838_v14 = vcombine.low %v705_v11, %v706_v12  ;;  %v1570_v15 = vmul.bf16 %v705_v11, %v705_v11  ;;  %v1571_v16 = vmul.bf16 %v706_v12, %v706_v12  ;;  %v708_v22 = vld [vmem:[%s6265_s20 + $0xc] sm:$0xf]  ;;  %v709_v24 = vld [vmem:[%s6265_s20 + $0x10] sm:$0xf]  ;;  %v710_v25 = vld [vmem:[%s6265_s20 + $0x14] sm:$0xf] }
  0x14   : > { %5661 = vmatprep.subr.bf16.mxu1 %v5962_v5  ;;  %v1572_v26 = vmul.bf16 %v707_v21, %v707_v21  ;;  %v1573_v27 = vmul.bf16 %v708_v22, %v708_v22  ;;  %v3142_v28 = vld [vmem:[%s7963_s6] sm:$0xff]  ;;  %v1574_v29 = vmul.bf16 %v709_v24, %v709_v24  ;;  %v1575_v30 = vmul.bf16 %v710_v25, %v710_v25  ;;  %v711_v35 = vld [vmem:[%s6265_s20 + $0x18] sm:$0xf]  ;;  %v712_v36 = vld [vmem:[%s6265_s20 + $0x1c] sm:$0xf] }
  0x15   : > { %5593 = vmatprep.mubr.bf16.mxu0 %v4838_v14  ;;  %v4878_v17 = vcombine.low %v1570_v15, %v1571_v16  ;;  %v4839_v31 = vcombine.low %v707_v21, %v708_v22  ;;  %v3721_v32 = vld [vmem:[%s7964_s7] sm:$0xff]  ;;  %v4840_v34 = vcombine.low %v709_v24, %v710_v25  ;;  %v1576_v40 = vmul.bf16 %v711_v35, %v711_v35  ;;  %v715_v48 = vld [vmem:[%s6265_s20 + $0x28] sm:$0xf]  ;;  %v716_v49 = vld [vmem:[%s6265_s20 + $0x2c] sm:$0xf] }
  0x16   : > { %5582 = vmatpush3.bf16.msra.mxu0 %v5961_v4  ;;  %v4879_v33 = vcombine.low %v1572_v26, %v1573_v27  ;;  %v4880_v37 = vcombine.low %v1574_v29, %v1575_v30  ;;  %v713_v38 = vld [vmem:[%s6265_s20 + $0x20] sm:$0xf]  ;;  %v714_v39 = vld [vmem:[%s6265_s20 + $0x24] sm:$0xf]  ;;  %v1577_v41 = vmul.bf16 %v712_v36, %v712_v36  ;;  %v4841_v44 = vcombine.low %v711_v35, %v712_v36  ;;  %v717_v50 = vld [vmem:[%s6265_s20 + $0x30] sm:$0xf] }
  0x17   : > { %5662 = vmatpush3.bf16.msra.mxu1 %v5962_v5  ;;  %5583 = vmatprep.subr.bf16.mxu0 %v5963_v6  ;;  %v1578_v42 = vmul.bf16 %v713_v38, %v713_v38  ;;  %v1579_v43 = vmul.bf16 %v714_v39, %v714_v39  ;;  %v4842_v46 = vcombine.low %v713_v38, %v714_v39  ;;  %v718_v51 = vld [vmem:[%s6265_s20 + $0x34] sm:$0xf]  ;;  %v719_v60 = vld [vmem:[%s6265_s20 + $0x38] sm:$0xf]  ;;  %v720_v61 = vld [vmem:[%s6265_s20 + $0x3c] sm:$0xf] }
  0x18   : > { %5663 = vmatprep.subr.bf16.mxu1 %v5964_v7  ;;  %5673 = vmatprep.mubr.bf16.mxu1 %v4878_v17  ;;  %v4881_v45 = vcombine.low %v1576_v40, %v1577_v41  ;;  %v1580_v52 = vmul.bf16 %v715_v48, %v715_v48  ;;  %v1581_v53 = vmul.bf16 %v716_v49, %v716_v49  ;;  %v721_v62 = vld [vmem:[%s6265_s20 + $0x40] sm:$0xf]  ;;  %v722_v63 = vld [vmem:[%s6265_s20 + $0x44] sm:$0xf]  ;;  %v726_v11 = vld [vmem:[%s6265_s20 + $0x54] sm:$0xf] }
  0x19   : > { %v4882_v47 = vcombine.low %v1578_v42, %v1579_v43  ;;  %v1582_v54 = vmul.bf16 %v717_v50, %v717_v50  ;;  %v1583_v55 = vmul.bf16 %v718_v51, %v718_v51  ;;  %v4843_v56 = vcombine.low %v715_v48, %v716_v49  ;;  %v728_v21 = vld [vmem:[%s6265_s20 + $0x5c] sm:$0xf]  ;;  %v729_v22 = vld [vmem:[%s6265_s20 + $0x60] sm:$0xf]  ;;  %v734_v35 = vld [vmem:[%s6265_s20 + $0x74] sm:$0xf] }
  0x1a   : > { %5584 = vmatpush3.bf16.msra.mxu0 %v5963_v6  ;;  %v4883_v57 = vcombine.low %v1580_v52, %v1581_v53  ;;  %v4844_v58 = vcombine.low %v717_v50, %v718_v51  ;;  %v1584_v0 = vmul.bf16 %v719_v60, %v719_v60  ;;  %v1585_v1 = vmul.bf16 %v720_v61, %v720_v61 }
  0x1b   : > { %5664 = vmatpush3.bf16.msra.mxu1 %v5964_v7  ;;  %5585 = vmatprep.subr.bf16.mxu0 %v5965_v8  ;;  %v4884_v59 = vcombine.low %v1582_v54, %v1583_v55  ;;  %v1586_v2 = vmul.bf16 %v721_v62, %v721_v62  ;;  %v1587_v3 = vmul.bf16 %v722_v63, %v722_v63 }
  0x1c   : > { %5665 = vmatprep.subr.bf16.mxu1 %v5966_v9  ;;  %v4845_v4 = vcombine.low %v719_v60, %v720_v61  ;;  %v4885_v5 = vcombine.low %v1584_v0, %v1585_v1  ;;  %v4846_v6 = vcombine.low %v721_v62, %v722_v63  ;;  %v1591_v15 = vmul.bf16 %v726_v11, %v726_v11 }
  0x1d   : > { %v4886_v7 = vcombine.low %v1586_v2, %v1587_v3  ;;  %v1593_v25 = vmul.bf16 %v728_v21, %v728_v21  ;;  %v1594_v26 = vmul.bf16 %v729_v22, %v729_v22  ;;  %v1599_v39 = vmul.bf16 %v734_v35, %v734_v35 }
  0x1e   : > { %5586 = vmatpush3.bf16.msra.mxu0 %v5965_v8  ;;  %v723_v8 = vld [vmem:[%s6265_s20 + $0x48] sm:$0xf] }
  0x1f   : > { %5666 = vmatpush3.bf16.msra.mxu1 %v5966_v9  ;;  %5587 = vmatprep.subr.bf16.mxu0 %v5967_v10  ;;  %v724_v9 = vld [vmem:[%s6265_s20 + $0x4c] sm:$0xf]  ;;  %v1588_v12 = vmul.bf16 %v723_v8, %v723_v8 }
  0x20   : > { %5667 = vmatprep.subr.bf16.mxu1 %v5968_v13  ;;  %v4847_v16 = vcombine.low %v723_v8, %v724_v9 }
  0x22   : > { %5588 = vmatpush3.bf16.msra.mxu0 %v5967_v10  ;;  %v725_v10 = vld [vmem:[%s6265_s20 + $0x50] sm:$0xf] }
  0x23   : > { %5668 = vmatpush3.bf16.msra.mxu1 %v5968_v13  ;;  %5589 = vmatprep.subr.bf16.mxu0 %v5969_v18  ;;  %v1589_v13 = vmul.bf16 %v724_v9, %v724_v9  ;;  %v1590_v14 = vmul.bf16 %v725_v10, %v725_v10 }
  0x24   : > { %5669 = vmatprep.subr.bf16.mxu1 %v5970_v19 }
  0x25   : > { %v4887_v17 = vcombine.low %v1588_v12, %v1589_v13 }
  0x26   : > { %5590 = vmatpush3.bf16.msra.mxu0 %v5969_v18  ;;  %v4848_v18 = vcombine.low %v725_v10, %v726_v11 }
  0x27   : > { %5670 = vmatpush3.bf16.msra.mxu1 %v5970_v19  ;;  %5591 = vmatprep.subr.bf16.mxu0 %v5971_v20  ;;  %v4888_v19 = vcombine.low %v1590_v14, %v1591_v15 }
  0x28   : > { %5671 = vmatprep.subr.bf16.mxu1 %v5972_v23 }
  0x2a   : > { %5592 = vmatpush3.bf16.msra.mxu0 %v5971_v20  ;;  %v727_v20 = vld [vmem:[%s6265_s20 + $0x58] sm:$0xf] }
  0x2b   : > { %5672 = vmatpush3.bf16.msra.mxu1 %v5972_v23  ;;  %5737 = vmatprep.subr.mxu0 %v3142_v28  ;;  %v730_v23 = vld [vmem:[%s6265_s20 + $0x64] sm:$0xf]  ;;  %v1592_v24 = vmul.bf16 %v727_v20, %v727_v20 }
  0x2c   : > { %5835 = vmatprep.subr.mxu1 %v3721_v32  ;;  %v1595_v27 = vmul.bf16 %v730_v23, %v730_v23  ;;  %v4850_v30 = vcombine.low %v729_v22, %v730_v23 }
  0x2d   : > { %5594 = vmatmul.mubr.bf16.vlgmr.msra.gmra.mxu0 %v4839_v31  ;;  %v4889_v29 = vcombine.low %v1592_v24, %v1593_v25 }
  0x2e   : > { %5674 = vmatmul.mubr.bf16.vlgmr.msra.gmra.mxu1 %v4879_v33  ;;  %5738 = vmatpush3.msra.mxu0 %v3142_v28  ;;  %v4849_v28 = vcombine.low %v727_v20, %v728_v21  ;;  %v4890_v31 = vcombine.low %v1594_v26, %v1595_v27  ;;  %v732_v33 = vld [vmem:[%s6265_s20 + $0x6c] sm:$0xf] }
  0x2f   : > { %5836 = vmatpush3.msra.mxu1 %v3721_v32  ;;  %5597 = vmatprep.mubr.bf16.mxu0 %v4840_v34  ;;  %v731_v32 = vld [vmem:[%s6265_s20 + $0x68] sm:$0xf]  ;;  %v733_v34 = vld [vmem:[%s6265_s20 + $0x70] sm:$0xf] }
  0x30   : > { %5677 = vmatprep.mubr.bf16.mxu1 %v4880_v37  ;;  %v1596_v36 = vmul.bf16 %v731_v32, %v731_v32  ;;  %v1597_v37 = vmul.bf16 %v732_v33, %v732_v33  ;;  %v1598_v38 = vmul.bf16 %v733_v34, %v733_v34  ;;  %v4851_v40 = vcombine.low %v731_v32, %v732_v33 }
  0x31   : > { %v4852_v42 = vcombine.low %v733_v34, %v734_v35 }
  0x32   : > { %v4891_v41 = vcombine.low %v1596_v36, %v1597_v37  ;;  %v4892_v43 = vcombine.low %v1598_v38, %v1599_v39 }
  0x35   : > { %5598 = vmatmul.mubr.bf16.gmra.mxu0 %v4841_v44  ;;  %v735_v44 = vld [vmem:[%s6265_s20 + $0x78] sm:$0xf] }
  0x36   : > { %5678 = vmatmul.mubr.bf16.gmra.mxu1 %v4881_v45  ;;  %5601 = vmatprep.mubr.bf16.mxu0 %v4842_v46  ;;  %v736_v45 = vld [vmem:[%s6265_s20 + $0x7c] sm:$0xf]  ;;  %v737_v46 = vld [vmem:[%s6265_s20 + $0x80] sm:$0xf]  ;;  %v1600_v48 = vmul.bf16 %v735_v44, %v735_v44 }
  0x37   : > { %5681 = vmatprep.mubr.bf16.mxu1 %v4882_v47  ;;  %v738_v47 = vld [vmem:[%s6265_s20 + $0x84] sm:$0xf]  ;;  %v1601_v49 = vmul.bf16 %v736_v45, %v736_v45  ;;  %v1602_v50 = vmul.bf16 %v737_v46, %v737_v46  ;;  %v4853_v52 = vcombine.low %v735_v44, %v736_v45 }
  0x38   : > { %v1603_v51 = vmul.bf16 %v738_v47, %v738_v47  ;;  %v4854_v54 = vcombine.low %v737_v46, %v738_v47 }
  0x39   : > { %v4893_v53 = vcombine.low %v1600_v48, %v1601_v49 }
  0x3a   : > { %v4894_v55 = vcombine.low %v1602_v50, %v1603_v51 }
  0x3d   : > { %5602 = vmatmul.mubr.bf16.gmra.mxu0 %v4843_v56  ;;  %v739_v56 = vld [vmem:[%s6265_s20 + $0x88] sm:$0xf] }
  0x3e   : > { %5682 = vmatmul.mubr.bf16.gmra.mxu1 %v4883_v57  ;;  %5605 = vmatprep.mubr.bf16.mxu0 %v4844_v58  ;;  %v740_v57 = vld [vmem:[%s6265_s20 + $0x8c] sm:$0xf]  ;;  %v741_v58 = vld [vmem:[%s6265_s20 + $0x90] sm:$0xf]  ;;  %v1604_v60 = vmul.bf16 %v739_v56, %v739_v56 }
  0x3f   : > { %5685 = vmatprep.mubr.bf16.mxu1 %v4884_v59  ;;  %v742_v59 = vld [vmem:[%s6265_s20 + $0x94] sm:$0xf]  ;;  %v1605_v61 = vmul.bf16 %v740_v57, %v740_v57  ;;  %v1606_v62 = vmul.bf16 %v741_v58, %v741_v58  ;;  %v4855_v0 = vcombine.low %v739_v56, %v740_v57 }
  0x40   : > { %v1607_v63 = vmul.bf16 %v742_v59, %v742_v59  ;;  %v4856_v2 = vcombine.low %v741_v58, %v742_v59 }
  0x41   : > { %v4895_v1 = vcombine.low %v1604_v60, %v1605_v61 }
  0x42   : > { %v4896_v3 = vcombine.low %v1606_v62, %v1607_v63 }
  0x45   : > { %5606 = vmatmul.mubr.bf16.gmra.mxu0 %v4845_v4  ;;  %v743_v4 = vld [vmem:[%s6265_s20 + $0x98] sm:$0xf] }
  0x46   : > { %5686 = vmatmul.mubr.bf16.gmra.mxu1 %v4885_v5  ;;  %5609 = vmatprep.mubr.bf16.mxu0 %v4846_v6  ;;  %v744_v5 = vld [vmem:[%s6265_s20 + $0x9c] sm:$0xf]  ;;  %v745_v6 = vld [vmem:[%s6265_s20 + $0xa0] sm:$0xf]  ;;  %v1608_v8 = vmul.bf16 %v743_v4, %v743_v4 }
  0x47   : > { %5689 = vmatprep.mubr.bf16.mxu1 %v4886_v7  ;;  %v746_v7 = vld [vmem:[%s6265_s20 + $0xa4] sm:$0xf]  ;;  %v1609_v9 = vmul.bf16 %v744_v5, %v744_v5  ;;  %v1610_v10 = vmul.bf16 %v745_v6, %v745_v6  ;;  %v4857_v12 = vcombine.low %v743_v4, %v744_v5 }
  0x48   : > { %v1611_v11 = vmul.bf16 %v746_v7, %v746_v7  ;;  %v4858_v14 = vcombine.low %v745_v6, %v746_v7 }
  0x49   : > { %v4897_v13 = vcombine.low %v1608_v8, %v1609_v9 }
  0x4a   : > { %v4898_v15 = vcombine.low %v1610_v10, %v1611_v11 }
  0x4d   : > { %5610 = vmatmul.mubr.bf16.gmra.mxu0 %v4847_v16  ;;  %v747_v16 = vld [vmem:[%s6265_s20 + $0xa8] sm:$0xf] }
  0x4e   : > { %5690 = vmatmul.mubr.bf16.gmra.mxu1 %v4887_v17  ;;  %5613 = vmatprep.mubr.bf16.mxu0 %v4848_v18  ;;  %v748_v17 = vld [vmem:[%s6265_s20 + $0xac] sm:$0xf]  ;;  %v749_v18 = vld [vmem:[%s6265_s20 + $0xb0] sm:$0xf]  ;;  %v1612_v20 = vmul.bf16 %v747_v16, %v747_v16 }
  0x4f   : > { %5693 = vmatprep.mubr.bf16.mxu1 %v4888_v19  ;;  %v750_v19 = vld [vmem:[%s6265_s20 + $0xb4] sm:$0xf]  ;;  %v1613_v21 = vmul.bf16 %v748_v17, %v748_v17  ;;  %v1614_v22 = vmul.bf16 %v749_v18, %v749_v18  ;;  %v4859_v24 = vcombine.low %v747_v16, %v748_v17 }
  0x50   : > { %v1615_v23 = vmul.bf16 %v750_v19, %v750_v19  ;;  %v4860_v26 = vcombine.low %v749_v18, %v750_v19  ;;  %v3078_v18 = vld [vmem:[%s6361_s25] sm:$0xff]  ;;  %v3079_v19 = vld [vmem:[%s6361_s25 + $0x8] sm:$0xff] }
  0x51   : > { %v4899_v25 = vcombine.low %v1612_v20, %v1613_v21  ;;  %v3080_v20 = vld [vmem:[%s6361_s25 + $0x10] sm:$0xff]  ;;  %v3081_v21 = vld [vmem:[%s6361_s25 + $0x18] sm:$0xff] }
  0x52   : > { %v4900_v27 = vcombine.low %v1614_v22, %v1615_v23  ;;  %v3082_v22 = vld [vmem:[%s6361_s25 + $0x20] sm:$0xff]  ;;  %v3083_v23 = vld [vmem:[%s6361_s25 + $0x28] sm:$0xff] }
  0x55   : > { %5614 = vmatmul.mubr.bf16.gmra.mxu0 %v4849_v28  ;;  %v751_v28 = vld [vmem:[%s6265_s20 + $0xb8] sm:$0xf] }
  0x56   : > { %5694 = vmatmul.mubr.bf16.gmra.mxu1 %v4889_v29  ;;  %5617 = vmatprep.mubr.bf16.mxu0 %v4850_v30  ;;  %v752_v29 = vld [vmem:[%s6265_s20 + $0xbc] sm:$0xf]  ;;  %v753_v30 = vld [vmem:[%s6265_s20 + $0xc0] sm:$0xf]  ;;  %v1616_v32 = vmul.bf16 %v751_v28, %v751_v28 }
  0x57   : > { %5697 = vmatprep.mubr.bf16.mxu1 %v4890_v31  ;;  %v754_v31 = vld [vmem:[%s6265_s20 + $0xc4] sm:$0xf]  ;;  %v1617_v33 = vmul.bf16 %v752_v29, %v752_v29  ;;  %v1618_v34 = vmul.bf16 %v753_v30, %v753_v30  ;;  %v4861_v36 = vcombine.low %v751_v28, %v752_v29  ;;  %v3088_v28 = vld [vmem:[%s6361_s25 + $0x50] sm:$0xff]  ;;  %v3089_v29 = vld [vmem:[%s6361_s25 + $0x58] sm:$0xff] }
  0x58   : > { %v1619_v35 = vmul.bf16 %v754_v31, %v754_v31  ;;  %v4862_v38 = vcombine.low %v753_v30, %v754_v31  ;;  %v3090_v30 = vld [vmem:[%s6361_s25 + $0x60] sm:$0xff]  ;;  %v3091_v31 = vld [vmem:[%s6361_s25 + $0x68] sm:$0xff] }
  0x59   : > { %v4901_v37 = vcombine.low %v1616_v32, %v1617_v33  ;;  %v3092_v32 = vld [vmem:[%s6361_s25 + $0x70] sm:$0xff]  ;;  %v3093_v33 = vld [vmem:[%s6361_s25 + $0x78] sm:$0xff] }
  0x5a   : > { %v4902_v39 = vcombine.low %v1618_v34, %v1619_v35  ;;  %v3094_v34 = vld [vmem:[%s6361_s25 + $0x80] sm:$0xff]  ;;  %v3095_v35 = vld [vmem:[%s6361_s25 + $0x88] sm:$0xff] }
  0x5d   : > { %5618 = vmatmul.mubr.bf16.gmra.mxu0 %v4851_v40  ;;  %v755_v40 = vld [vmem:[%s6265_s20 + $0xc8] sm:$0xf] }
  0x5e   : > { %5698 = vmatmul.mubr.bf16.gmra.mxu1 %v4891_v41  ;;  %5621 = vmatprep.mubr.bf16.mxu0 %v4852_v42  ;;  %v756_v41 = vld [vmem:[%s6265_s20 + $0xcc] sm:$0xf]  ;;  %v757_v42 = vld [vmem:[%s6265_s20 + $0xd0] sm:$0xf]  ;;  %v1620_v44 = vmul.bf16 %v755_v40, %v755_v40 }
  0x5f   : > { %5701 = vmatprep.mubr.bf16.mxu1 %v4892_v43  ;;  %v758_v43 = vld [vmem:[%s6265_s20 + $0xd4] sm:$0xf]  ;;  %v1621_v45 = vmul.bf16 %v756_v41, %v756_v41  ;;  %v1622_v46 = vmul.bf16 %v757_v42, %v757_v42  ;;  %v4863_v48 = vcombine.low %v755_v40, %v756_v41  ;;  %v3101_v41 = vld [vmem:[%s6361_s25 + $0xb8] sm:$0xff] }
  0x60   : > { %v1623_v47 = vmul.bf16 %v758_v43, %v758_v43  ;;  %v4864_v50 = vcombine.low %v757_v42, %v758_v43  ;;  %v3100_v40 = vld [vmem:[%s6361_s25 + $0xb0] sm:$0xff]  ;;  %v3102_v42 = vld [vmem:[%s6361_s25 + $0xc0] sm:$0xff]  ;;  %v3103_v43 = vld [vmem:[%s6361_s25 + $0xc8] sm:$0xff] }
  0x61   : > { %v4903_v49 = vcombine.low %v1620_v44, %v1621_v45  ;;  %v3104_v44 = vld [vmem:[%s6361_s25 + $0xd0] sm:$0xff]  ;;  %v3105_v45 = vld [vmem:[%s6361_s25 + $0xd8] sm:$0xff] }
  0x62   : > { %v4904_v51 = vcombine.low %v1622_v46, %v1623_v47  ;;  %v3106_v46 = vld [vmem:[%s6361_s25 + $0xe0] sm:$0xff]  ;;  %v3107_v47 = vld [vmem:[%s6361_s25 + $0xe8] sm:$0xff] }
  0x65   : > { %5622 = vmatmul.mubr.bf16.gmra.mxu0 %v4853_v52  ;;  %v759_v52 = vld [vmem:[%s6265_s20 + $0xd8] sm:$0xf] }
  0x66   : > { %5702 = vmatmul.mubr.bf16.gmra.mxu1 %v4893_v53  ;;  %5625 = vmatprep.mubr.bf16.mxu0 %v4854_v54  ;;  %v760_v53 = vld [vmem:[%s6265_s20 + $0xdc] sm:$0xf]  ;;  %v761_v54 = vld [vmem:[%s6265_s20 + $0xe0] sm:$0xf]  ;;  %v1624_v56 = vmul.bf16 %v759_v52, %v759_v52 }
  0x67   : > { %5705 = vmatprep.mubr.bf16.mxu1 %v4894_v55  ;;  %v762_v55 = vld [vmem:[%s6265_s20 + $0xe4] sm:$0xf]  ;;  %v1625_v57 = vmul.bf16 %v760_v53, %v760_v53  ;;  %v1626_v58 = vmul.bf16 %v761_v54, %v761_v54  ;;  %v4865_v60 = vcombine.low %v759_v52, %v760_v53  ;;  %v3111_v52 = vld [vmem:[%s6361_s25 + $0x108] sm:$0xff] }
  0x68   : > { %v1627_v59 = vmul.bf16 %v762_v55, %v762_v55  ;;  %v4866_v62 = vcombine.low %v761_v54, %v762_v55  ;;  %v3112_v54 = vld [vmem:[%s6361_s25 + $0x110] sm:$0xff] }
  0x69   : > { %v4905_v61 = vcombine.low %v1624_v56, %v1625_v57  ;;  %v3113_v57 = vld [vmem:[%s6361_s25 + $0x118] sm:$0xff] }
  0x6a   : > { %v4906_v63 = vcombine.low %v1626_v58, %v1627_v59 }
  0x6d   : > { %5626 = vmatmul.mubr.bf16.gmra.mxu0 %v4855_v0  ;;  %v763_v0 = vld [vmem:[%s6265_s20 + $0xe8] sm:$0xf] }
  0x6e   : > { %5706 = vmatmul.mubr.bf16.gmra.mxu1 %v4895_v1  ;;  %5629 = vmatprep.mubr.bf16.mxu0 %v4856_v2  ;;  %v764_v1 = vld [vmem:[%s6265_s20 + $0xec] sm:$0xf]  ;;  %v765_v2 = vld [vmem:[%s6265_s20 + $0xf0] sm:$0xf]  ;;  %v1628_v4 = vmul.bf16 %v763_v0, %v763_v0 }
  0x6f   : > { %5709 = vmatprep.mubr.bf16.mxu1 %v4896_v3  ;;  %v766_v3 = vld [vmem:[%s6265_s20 + $0xf4] sm:$0xf]  ;;  %v1629_v5 = vmul.bf16 %v764_v1, %v764_v1  ;;  %v1630_v6 = vmul.bf16 %v765_v2, %v765_v2  ;;  %v4867_v8 = vcombine.low %v763_v0, %v764_v1  ;;  %v3115_v1 = vld [vmem:[%s6361_s25 + $0x128] sm:$0xff] }
  0x70   : > { %v1631_v7 = vmul.bf16 %v766_v3, %v766_v3  ;;  %v4868_v10 = vcombine.low %v765_v2, %v766_v3 }
  0x71   : > { %v4907_v9 = vcombine.low %v1628_v4, %v1629_v5  ;;  %v3116_v4 = vld [vmem:[%s6361_s25 + $0x130] sm:$0xff] }
  0x72   : > { %v4908_v11 = vcombine.low %v1630_v6, %v1631_v7 }
  0x75   : > { %5630 = vmatmul.mubr.bf16.gmra.mxu0 %v4857_v12  ;;  %v767_v12 = vld [vmem:[%s6265_s20 + $0xf8] sm:$0xf] }
  0x76   : > { %5710 = vmatmul.mubr.bf16.gmra.mxu1 %v4897_v13  ;;  %5633 = vmatprep.mubr.bf16.mxu0 %v4858_v14  ;;  %v768_v13 = vld [vmem:[%s6265_s20 + $0xfc] sm:$0xf]  ;;  %v1632_v14 = vmul.bf16 %v767_v12, %v767_v12 }
  0x77   : > { %5713 = vmatprep.mubr.bf16.mxu1 %v4898_v15  ;;  %v1633_v15 = vmul.bf16 %v768_v13, %v768_v13  ;;  %v4869_v16 = vcombine.low %v767_v12, %v768_v13  ;;  %v3118_v13 = vld [vmem:[%s6361_s25 + $0x140] sm:$0xff] }
  0x79   : > { %v4909_v17 = vcombine.low %v1632_v14, %v1633_v15 }
  0x7d   : > { %5634 = vmatmul.mubr.bf16.gmra.mxu0 %v4859_v24  ;;  %v3084_v24 = vld [vmem:[%s6361_s25 + $0x30] sm:$0xff] }
  0x7e   : > { %5714 = vmatmul.mubr.bf16.gmra.mxu1 %v4899_v25  ;;  %5637 = vmatprep.mubr.bf16.mxu0 %v4860_v26  ;;  %v3085_v25 = vld [vmem:[%s6361_s25 + $0x38] sm:$0xff]  ;;  %v3086_v26 = vld [vmem:[%s6361_s25 + $0x40] sm:$0xff] }
  0x7f   : > { %5717 = vmatprep.mubr.bf16.mxu1 %v4900_v27  ;;  %v3087_v27 = vld [vmem:[%s6361_s25 + $0x48] sm:$0xff] }
  0x85   : > { %5638 = vmatmul.mubr.bf16.gmra.mxu0 %v4861_v36  ;;  %v3096_v36 = vld [vmem:[%s6361_s25 + $0x90] sm:$0xff] }
  0x86   : > { %5718 = vmatmul.mubr.bf16.gmra.mxu1 %v4901_v37  ;;  %5641 = vmatprep.mubr.bf16.mxu0 %v4862_v38  ;;  %v3097_v37 = vld [vmem:[%s6361_s25 + $0x98] sm:$0xff]  ;;  %v3098_v38 = vld [vmem:[%s6361_s25 + $0xa0] sm:$0xff] }
  0x87   : > { %5721 = vmatprep.mubr.bf16.mxu1 %v4902_v39  ;;  %v3099_v39 = vld [vmem:[%s6361_s25 + $0xa8] sm:$0xff] }
  0x8d   : > { %5642 = vmatmul.mubr.bf16.gmra.mxu0 %v4863_v48  ;;  %v3108_v48 = vld [vmem:[%s6361_s25 + $0xf0] sm:$0xff] }
  0x8e   : > { %5722 = vmatmul.mubr.bf16.gmra.mxu1 %v4903_v49  ;;  %5645 = vmatprep.mubr.bf16.mxu0 %v4864_v50  ;;  %v3109_v49 = vld [vmem:[%s6361_s25 + $0xf8] sm:$0xff]  ;;  %v3110_v50 = vld [vmem:[%s6361_s25 + $0x100] sm:$0xff] }
  0x8f   : > { %5725 = vmatprep.mubr.bf16.mxu1 %v4904_v51  ;;  %v4837_v51 = vld [vmem:[%s7961_s4] ss:$0 sm:$0xff] }
  0x90   : > { %v6465_v53 = vadd.f32 1e-09, %v4837_v51 }
  0x95   : > { %5646 = vmatmul.mubr.bf16.gmra.mxu0 %v4865_v60  ;;  %v3114_v60 = vld [vmem:[%s6361_s25 + $0x120] sm:$0xff] }
  0x96   : > { %5726 = vmatmul.mubr.bf16.gmra.mxu1 %v4905_v61  ;;  %5649 = vmatprep.mubr.bf16.mxu0 %v4866_v62 }
  0x97   : > { %5729 = vmatprep.mubr.bf16.mxu1 %v4906_v63 }
  0x9d   : > { %5650 = vmatmul.mubr.bf16.gmra.mxu0 %v4867_v8 }
  0x9e   : > { %5730 = vmatmul.mubr.bf16.gmra.mxu1 %v4907_v9  ;;  %5653 = vmatprep.mubr.bf16.mxu0 %v4868_v10  ;;  %v3117_v9 = vld [vmem:[%s6361_s25 + $0x138] sm:$0xff]  ;;  %v6503_v10 = vld [vmem:[%s7960_s3] ss:$0 sm:$0xff] }
  0x9f   : > { %5733 = vmatprep.mubr.bf16.mxu1 %v4908_v11 }
  0xa5   : > { %5654 = vmatmul.mubr.bf16.gmra.mxu0 %v4869_v16 }
  0xa6   : > { %5734 = vmatmul.mubr.bf16.gmra.mxu1 %v4909_v17  ;;  %5739 = vmatprep.mubr.msk.f32.mxu0 %vm3143_vm0, %v3078_v18 }
  0xa7   : > { %5837 = vmatprep.mubr.msk.f32.mxu1 %vm3143_vm0, %v3078_v18 }
  0xad   : > { %5740 = vmatmul.mubr.msk.f32.vlgmr.msra.gmra.mxu0 %vm3143_vm0, %v3079_v19 }
  0xae   : > { %5838 = vmatmul.mubr.msk.f32.vlgmr.msra.gmra.mxu1 %vm3143_vm0, %v3079_v19  ;;  %5742 = vmatprep.mubr.msk.f32.mxu0 %vm3143_vm0, %v3080_v20  ;;  %v3119_v19 = vld [vmem:[%s6361_s25 + $0x148] sm:$0xff] }
  0xaf   : > { %5840 = vmatprep.mubr.msk.f32.mxu1 %vm3143_vm0, %v3080_v20 }
  0xb1   : > { %5743 = vmatmul.mubr.msk.f32.gmra.mxu0 %vm3143_vm0, %v3081_v21 }
  0xb2   : > { %5841 = vmatmul.mubr.msk.f32.gmra.mxu1 %vm3143_vm0, %v3081_v21  ;;  %5745 = vmatprep.mubr.msk.f32.mxu0 %vm3143_vm0, %v3082_v22 }
  0xb3   : > { %5843 = vmatprep.mubr.msk.f32.mxu1 %vm3143_vm0, %v3082_v22 }
  0xb5   : > { %5746 = vmatmul.mubr.msk.f32.gmra.mxu0 %vm3143_vm0, %v3083_v23 }
  0xb6   : > { %5844 = vmatmul.mubr.msk.f32.gmra.mxu1 %vm3143_vm0, %v3083_v23  ;;  %5748 = vmatprep.mubr.msk.f32.mxu0 %vm3143_vm0, %v3084_v24  ;;  %v3120_v23 = vld [vmem:[%s6361_s25 + $0x150] sm:$0xff] }
  0xb7   : > { %5846 = vmatprep.mubr.msk.f32.mxu1 %vm3143_vm0, %v3084_v24 }
  0xb9   : > { %5749 = vmatmul.mubr.msk.f32.gmra.mxu0 %vm3143_vm0, %v3085_v25 }
  0xba   : > { %5847 = vmatmul.mubr.msk.f32.gmra.mxu1 %vm3143_vm0, %v3085_v25  ;;  %5751 = vmatprep.mubr.msk.f32.mxu0 %vm3143_vm0, %v3086_v26 }
  0xbb   : > { %5849 = vmatprep.mubr.msk.f32.mxu1 %vm3143_vm0, %v3086_v26 }
  0xbd   : > { %5752 = vmatmul.mubr.msk.f32.gmra.mxu0 %vm3143_vm0, %v3087_v27 }
  0xbe   : > { %5850 = vmatmul.mubr.msk.f32.gmra.mxu1 %vm3143_vm0, %v3087_v27  ;;  %5754 = vmatprep.mubr.msk.f32.mxu0 %vm3143_vm0, %v3088_v28 }
  0xbf   : > { %5852 = vmatprep.mubr.msk.f32.mxu1 %vm3143_vm0, %v3088_v28 }
  0xc1   : > { %5755 = vmatmul.mubr.msk.f32.gmra.mxu0 %vm3143_vm0, %v3089_v29 }
  0xc2   : > { %5853 = vmatmul.mubr.msk.f32.gmra.mxu1 %vm3143_vm0, %v3089_v29  ;;  %5757 = vmatprep.mubr.msk.f32.mxu0 %vm3143_vm0, %v3090_v30 }
  0xc3   : > { %5855 = vmatprep.mubr.msk.f32.mxu1 %vm3143_vm0, %v3090_v30 }
  0xc5   : > { %5758 = vmatmul.mubr.msk.f32.gmra.mxu0 %vm3143_vm0, %v3091_v31 }
  0xc6   : > { %5856 = vmatmul.mubr.msk.f32.gmra.mxu1 %vm3143_vm0, %v3091_v31  ;;  %5760 = vmatprep.mubr.msk.f32.mxu0 %vm3143_vm0, %v3092_v32 }
  0xc7   : > { %5858 = vmatprep.mubr.msk.f32.mxu1 %vm3143_vm0, %v3092_v32 }
  0xc9   : > { %5761 = vmatmul.mubr.msk.f32.gmra.mxu0 %vm3143_vm0, %v3093_v33 }
  0xca   : > { %5859 = vmatmul.mubr.msk.f32.gmra.mxu1 %vm3143_vm0, %v3093_v33  ;;  %5763 = vmatprep.mubr.msk.f32.mxu0 %vm3143_vm0, %v3094_v34  ;;  %v3121_v33 = vld [vmem:[%s6361_s25 + $0x158] sm:$0xff] }
  0xcb   : > { %5861 = vmatprep.mubr.msk.f32.mxu1 %vm3143_vm0, %v3094_v34 }
  0xcd   : > { %5764 = vmatmul.mubr.msk.f32.gmra.mxu0 %vm3143_vm0, %v3095_v35 }
  0xce   : > { %5862 = vmatmul.mubr.msk.f32.gmra.mxu1 %vm3143_vm0, %v3095_v35  ;;  %5766 = vmatprep.mubr.msk.f32.mxu0 %vm3143_vm0, %v3096_v36 }
  0xcf   : > { %5864 = vmatprep.mubr.msk.f32.mxu1 %vm3143_vm0, %v3096_v36 }
  0xd1   : > { %5767 = vmatmul.mubr.msk.f32.gmra.mxu0 %vm3143_vm0, %v3097_v37 }
  0xd2   : > { %5865 = vmatmul.mubr.msk.f32.gmra.mxu1 %vm3143_vm0, %v3097_v37  ;;  %5769 = vmatprep.mubr.msk.f32.mxu0 %vm3143_vm0, %v3098_v38  ;;  %v3122_v37 = vld [vmem:[%s6361_s25 + $0x160] sm:$0xff] }
  0xd3   : > { %5867 = vmatprep.mubr.msk.f32.mxu1 %vm3143_vm0, %v3098_v38 }
  0xd5   : > { %5770 = vmatmul.mubr.msk.f32.gmra.mxu0 %vm3143_vm0, %v3099_v39 }
  0xd6   : > { %5868 = vmatmul.mubr.msk.f32.gmra.mxu1 %vm3143_vm0, %v3099_v39  ;;  %5772 = vmatprep.mubr.msk.f32.mxu0 %vm3143_vm0, %v3100_v40 }
  0xd7   : > { %5870 = vmatprep.mubr.msk.f32.mxu1 %vm3143_vm0, %v3100_v40 }
  0xd9   : > { %5773 = vmatmul.mubr.msk.f32.gmra.mxu0 %vm3143_vm0, %v3101_v41 }
  0xda   : > { %5871 = vmatmul.mubr.msk.f32.gmra.mxu1 %vm3143_vm0, %v3101_v41  ;;  %5775 = vmatprep.mubr.msk.f32.mxu0 %vm3143_vm0, %v3102_v42 }
  0xdb   : > { %5873 = vmatprep.mubr.msk.f32.mxu1 %vm3143_vm0, %v3102_v42 }
  0xdd   : > { %5776 = vmatmul.mubr.msk.f32.gmra.mxu0 %vm3143_vm0, %v3103_v43 }
  0xde   : > { %5874 = vmatmul.mubr.msk.f32.gmra.mxu1 %vm3143_vm0, %v3103_v43  ;;  %5778 = vmatprep.mubr.msk.f32.mxu0 %vm3143_vm0, %v3104_v44 }
  0xdf   : > { %5876 = vmatprep.mubr.msk.f32.mxu1 %vm3143_vm0, %v3104_v44 }
  0xe1   : > { %5779 = vmatmul.mubr.msk.f32.gmra.mxu0 %vm3143_vm0, %v3105_v45 }
  0xe2   : > { %5877 = vmatmul.mubr.msk.f32.gmra.mxu1 %vm3143_vm0, %v3105_v45  ;;  %5781 = vmatprep.mubr.msk.f32.mxu0 %vm3143_vm0, %v3106_v46 }
  0xe3   : > { %5879 = vmatprep.mubr.msk.f32.mxu1 %vm3143_vm0, %v3106_v46 }
  0xe5   : > { %5782 = vmatmul.mubr.msk.f32.gmra.mxu0 %vm3143_vm0, %v3107_v47 }
  0xe6   : > { %5880 = vmatmul.mubr.msk.f32.gmra.mxu1 %vm3143_vm0, %v3107_v47  ;;  %5784 = vmatprep.mubr.msk.f32.mxu0 %vm3143_vm0, %v3108_v48 }
  0xe7   : > { %5882 = vmatprep.mubr.msk.f32.mxu1 %vm3143_vm0, %v3108_v48 }
  0xe9   : > { %5785 = vmatmul.mubr.msk.f32.gmra.mxu0 %vm3143_vm0, %v3109_v49 }
  0xea   : > { %5883 = vmatmul.mubr.msk.f32.gmra.mxu1 %vm3143_vm0, %v3109_v49  ;;  %5787 = vmatprep.mubr.msk.f32.mxu0 %vm3143_vm0, %v3110_v50 }
  0xeb   : > { %5885 = vmatprep.mubr.msk.f32.mxu1 %vm3143_vm0, %v3110_v50  ;;  %v2888_v50 = vld [vmem:[%s6558_s14 + $0x10] sm:$0xff] }
  0xed   : > { %v5595_v55 = vpop.f32.mrf.mxu0  ;;  %5788 = vmatmul.mubr.msk.f32.gmra.mxu0 %vm3143_vm0, %v3111_v52 }
  0xee   : > { %v5675_v56 = vpop.f32.mrf.mxu1  ;;  %5886 = vmatmul.mubr.msk.f32.gmra.mxu1 %vm3143_vm0, %v3111_v52  ;;  %5790 = vmatprep.mubr.msk.f32.mxu0 %vm3143_vm0, %v3112_v54  ;;  %v6517_v17 = vadd.f32 %v5595_v55, %v6503_v10 }
  0xef   : > { %v6474_v58 = vadd.f32 %v5675_v56, %v6465_v53  ;;  %v1123_v59 = vpop.f32.mrf.mxu0  ;;  %5888 = vmatprep.mubr.msk.f32.mxu1 %vm3143_vm0, %v3112_v54  ;;  %v3123_v56 = vld [vmem:[%s6361_s25 + $0x168] sm:$0xff] }
  0xf0   : > { %v1924_v61 = vpop.f32.mrf.mxu1  ;;  %v6523_v20 = vadd.f32 %v6503_v10, %v1123_v59 }
  0xf1   : > { %6005 = vrsqrt.f32 %v6474_v58  ;;  %v6480_v62 = vadd.f32 %v1924_v61, %v6465_v53  ;;  %v5596_v63 = vpop.f32.mrf.mxu0  ;;  %5791 = vmatmul.mubr.msk.f32.gmra.mxu0 %vm3143_vm0, %v3113_v57  ;;  %vm2454_vm1 = vcmp.eq.f32.partialorder %v6474_v58, inf  ;;  %vm2456_vm3 = vcmp.eq.f32.partialorder %v6474_v58, 0.0 }
  0xf2   : > { %v5676_v0 = vpop.f32.mrf.mxu1  ;;  %5889 = vmatmul.mubr.msk.f32.gmra.mxu1 %vm3143_vm0, %v3113_v57  ;;  %5793 = vmatprep.mubr.msk.f32.mxu0 %vm3143_vm0, %v3114_v60  ;;  %v6533_v24 = vadd.f32 %v5596_v63, %v6503_v10  ;;  %v2457_v26 = vand.u32 2147483648, %v6474_v58  ;;  %v2886_v57 = vld [vmem:[%s6558_s14] sm:$0xff] }
  0xf3   : > { %6007 = vrsqrt.f32 %v6480_v62  ;;  %v6488_v2 = vadd.f32 %v5676_v0, %v6465_v53  ;;  %v1126_v3 = vpop.f32.mrf.mxu0  ;;  %5891 = vmatprep.mubr.msk.f32.mxu1 %vm3143_vm0, %v3114_v60  ;;  %vm2440_vm2 = vcmp.eq.f32.partialorder %v6480_v62, inf  ;;  %vm2442_vm4 = vcmp.eq.f32.partialorder %v6480_v62, 0.0  ;;  %v3124_v0 = vld [vmem:[%s6361_s25 + $0x170] sm:$0xff] }
  0xf4   : > { %v1927_v5 = vpop.f32.mrf.mxu1  ;;  %v6539_v27 = vadd.f32 %v6503_v10, %v1126_v3  ;;  %v2443_v34 = vand.u32 2147483648, %v6480_v62 }
  0xf5   : > { %6009 = vrsqrt.f32 %v6488_v2  ;;  %v6494_v6 = vadd.f32 %v1927_v5, %v6465_v53  ;;  %v5599_v7 = vpop.f32.mrf.mxu0  ;;  %5794 = vmatmul.mubr.msk.f32.gmra.mxu0 %vm3143_vm0, %v3115_v1  ;;  %vm2461_vm5 = vcmp.eq.f32.partialorder %v6488_v2, inf  ;;  %v2464_v35 = vand.u32 2147483648, %v6488_v2 }
  0xf6   : > { %v5679_v8 = vpop.f32.mrf.mxu1  ;;  %5892 = vmatmul.mubr.msk.f32.gmra.mxu1 %vm3143_vm0, %v3115_v1  ;;  %5796 = vmatprep.mubr.msk.f32.mxu0 %vm3143_vm0, %v3116_v4  ;;  %v6548_v31 = vadd.f32 %v5599_v7, %v6503_v10  ;;  %vm2463_vm8 = vcmp.eq.f32.partialorder %v6488_v2, 0.0 }
  0xf7   : > { %6011 = vrsqrt.f32 %v6494_v6  ;;  %v6507_v11 = vadd.f32 %v5679_v8, %v6465_v53  ;;  %v1139_v12 = vpop.f32.mrf.mxu0  ;;  %5894 = vmatprep.mubr.msk.f32.mxu1 %vm3143_vm0, %v3116_v4  ;;  %vm2447_vm6 = vcmp.eq.f32.partialorder %v6494_v6, inf  ;;  %vm2449_vm7 = vcmp.eq.f32.partialorder %v6494_v6, 0.0 }
  0xf8   : > { %v1940_v14 = vpop.f32.mrf.mxu1  ;;  %v6571_v40 = vadd.f32 %v6503_v10, %v1139_v12  ;;  %v2450_v43 = vand.u32 2147483648, %v6494_v6 }
  0xf9   : > { %6013 = vrsqrt.f32 %v6507_v11  ;;  %v6513_v15 = vadd.f32 %v1940_v14, %v6465_v53  ;;  %v5600_v16 = vpop.f32.mrf.mxu0  ;;  %5797 = vmatmul.mubr.msk.f32.gmra.mxu0 %vm3143_vm0, %v3117_v9  ;;  %v2485_v44 = vand.u32 2147483648, %v6507_v11  ;;  %vm2482_vm9 = vcmp.eq.f32.partialorder %v6507_v11, inf }
  0xfa   : > { %v5680_v18 = vpop.f32.mrf.mxu1  ;;  %5895 = vmatmul.mubr.msk.f32.gmra.mxu1 %vm3143_vm0, %v3117_v9  ;;  %5799 = vmatprep.mubr.msk.f32.mxu0 %vm3143_vm0, %v3118_v13  ;;  %v6574_v41 = vadd.f32 %v5600_v16, %v6503_v10  ;;  %vm2484_vm13 = vcmp.eq.f32.partialorder %v6507_v11, 0.0 }
  0xfb   : > { %6015 = vrsqrt.f32 %v6513_v15  ;;  %v6527_v21 = vadd.f32 %v5680_v18, %v6465_v53  ;;  %v1142_v22 = vpop.f32.mrf.mxu0  ;;  %5897 = vmatprep.mubr.msk.f32.mxu1 %vm3143_vm0, %v3118_v13  ;;  %v2471_v60 = vand.u32 2147483648, %v6513_v15  ;;  %vm2468_vm10 = vcmp.eq.f32.partialorder %v6513_v15, inf }
  0xfc   : > { %v1943_v25 = vpop.f32.mrf.mxu1  ;;  %v6579_v45 = vadd.f32 %v6503_v10, %v1142_v22  ;;  %vm2470_vm11 = vcmp.eq.f32.partialorder %v6513_v15, 0.0  ;;  %v2887_v22 = vld [vmem:[%s6558_s14 + $0x8] sm:$0xff] }
  0xfd   : > { %6017 = vrsqrt.f32 %v6527_v21  ;;  %v6543_v28 = vadd.f32 %v1943_v25, %v6465_v53  ;;  %v5603_v29 = vpop.f32.mrf.mxu0  ;;  %5800 = vmatmul.mubr.msk.f32.gmra.mxu0 %vm3143_vm0, %v3119_v19  ;;  %v2492_v9 = vand.u32 2147483648, %v6527_v21  ;;  %vm2489_vm12 = vcmp.eq.f32.partialorder %v6527_v21, inf  ;;  %v2889_v25 = vld [vmem:[%s6558_s14 + $0x18] sm:$0xff] }
  0xfe   : > { %v6006_v30 = vpop.eup %6005  ;;  %v5683_v32 = vpop.f32.mrf.mxu1  ;;  %5898 = vmatmul.mubr.msk.f32.gmra.mxu1 %vm3143_vm0, %v3119_v19  ;;  %5802 = vmatprep.mubr.msk.f32.mxu0 %vm3143_vm0, %v3120_v23  ;;  %v6591_v52 = vadd.f32 %v5603_v29, %v6503_v10  ;;  %v3125_v19 = vld [vmem:[%s6361_s25 + $0x178] sm:$0xff]  ;;  %vm2491_vm15 = vcmp.eq.f32.partialorder %v6527_v21, 0.0 }
  0xff   : > { %6019 = vrsqrt.f32 %v6543_v28  ;;  %v1155_v36 = vpop.f32.mrf.mxu0  ;;  %5900 = vmatprep.mubr.msk.f32.mxu1 %vm3143_vm0, %v3120_v23  ;;  %v2453_v38 = vmul.f32 %v6006_v30, %v6474_v58  ;;  %v6594_v54 = vadd.f32 %v5683_v32, %v6465_v53  ;;  %vm2475_vm14 = vcmp.eq.f32.partialorder %v6543_v28, inf }
 0x100   : > { %v6008_v39 = vpop.eup %6007  ;;  %v1956_v42 = vpop.f32.mrf.mxu1  ;;  %v6616_v4 = vadd.f32 %v6503_v10, %v1155_v36  ;;  %v2478_v29 = vand.u32 2147483648, %v6543_v28 }
 0x101   : > { %v6582_v46 = vadd.f32 %v1956_v42, %v6465_v53  ;;  %v5604_v47 = vpop.f32.mrf.mxu0  ;;  %5803 = vmatmul.mubr.msk.f32.gmra.mxu0 %vm3143_vm0, %v3121_v33  ;;  %v2439_v48 = vmul.f32 %v6008_v39, %v6480_v62  ;;  %v2455_v49 = vsel %vm2454_vm1, %v6474_v58, %v2453_v38  ;;  %vm2477_vm1 = vcmp.eq.f32.partialorder %v6543_v28, 0.0 }
 0x102   : > { %v6010_v51 = vpop.eup %6009  ;;  %v5684_v55 = vpop.f32.mrf.mxu1  ;;  %5901 = vmatmul.mubr.msk.f32.gmra.mxu1 %vm3143_vm0, %v3121_v33  ;;  %5805 = vmatprep.mubr.msk.f32.mxu0 %vm3143_vm0, %v3122_v37  ;;  %v2458_v59 = vsel %vm2456_vm3, %v2457_v26, %v2455_v49  ;;  %v3126_v33 = vld [vmem:[%s6361_s25 + $0x180] sm:$0xff] }
 0x103   : > { %6021 = vrsqrt.f32 %v6582_v46  ;;  %v6606_v61 = vadd.f32 %v5684_v55, %v6465_v53  ;;  %v1158_v63 = vpop.f32.mrf.mxu0  ;;  %5903 = vmatprep.mubr.msk.f32.mxu1 %vm3143_vm0, %v3122_v37  ;;  %v2441_v1 = vsel %vm2440_vm2, %v6480_v62, %v2439_v48  ;;  %v2460_v58 = vmul.f32 %v6010_v51, %v6488_v2  ;;  %v3127_v55 = vld [vmem:[%s6361_s25 + $0x188] sm:$0xff] }
 0x104   : > { %v6012_v3 = vpop.eup %6011  ;;  %v1959_v5 = vpop.f32.mrf.mxu1  ;;  %v2444_v7 = vsel %vm2442_vm4, %v2443_v34, %v2441_v1  ;;  %v2952_v8 = vmul.f32 %v2888_v50, %v2458_v59  ;;  %v6659_v37 = vadd.f32 %v5604_v47, %v6503_v10  ;;  %v6671_v48 = vadd.f32 %v6503_v10, %v1158_v63  ;;  %v3128_v63 = vld [vmem:[%s6361_s25 + $0x190] sm:$0xff] }
 0x105   : > { %6023 = vrsqrt.f32 %v6606_v61  ;;  %v6624_v12 = vadd.f32 %v1959_v5, %v6465_v53  ;;  %v5607_v13 = vpop.f32.mrf.mxu0  ;;  %5806 = vmatmul.mubr.msk.f32.gmra.mxu0 %vm3143_vm0, %v3123_v56  ;;  %v2446_v14 = vmul.f32 %v6012_v3, %v6494_v6  ;;  %v2950_v62 = vmul.f32 %v2886_v57, %v2444_v7 }
 0x106   : > { %v6014_v16 = vpop.eup %6013  ;;  %6025 = vrsqrt.f32 %v6594_v54  ;;  %v5687_v18 = vpop.f32.mrf.mxu1  ;;  %5904 = vmatmul.mubr.msk.f32.gmra.mxu1 %vm3143_vm0, %v3123_v56  ;;  %5808 = vmatprep.mubr.msk.f32.mxu0 %vm3143_vm0, %v3124_v0  ;;  %v2462_v23 = vsel %vm2461_vm5, %v6488_v2, %v2460_v58  ;;  %v6640_v26 = vadd.f32 %v2952_v8, %v6517_v17  ;;  %v6678_v2 = vadd.f32 %v5607_v13, %v6503_v10  ;;  %v2890_v58 = vld [vmem:[%s6558_s14 + $0x20] sm:$0xff] }
 0x107   : > { %6027 = vrsqrt.f32 %v6624_v12  ;;  %v6647_v30 = vadd.f32 %v5687_v18, %v6465_v53  ;;  %v1171_v32 = vpop.f32.mrf.mxu0  ;;  %5906 = vmatprep.mubr.msk.f32.mxu1 %vm3143_vm0, %v3124_v0  ;;  %v2448_v17 = vsel %vm2447_vm6, %v6494_v6, %v2446_v14  ;;  %v6655_v34 = vadd.f32 %v2950_v62, %v6523_v20 }
 0x108   : > { %7987 = vst [vmem:[#allocation4_spill] sm:$0xff] %v6640_v26  ;;  %v6016_v36 = vpop.eup %6015  ;;  %v1972_v38 = vpop.f32.mrf.mxu1  ;;  %v2451_v39 = vsel %vm2449_vm7, %v2450_v43, %v2448_v17  ;;  %v2465_v42 = vsel %vm2463_vm8, %v2464_v35, %v2462_v23  ;;  %v2481_v20 = vmul.f32 %v6014_v16, %v6507_v11  ;;  %v6682_v35 = vadd.f32 %v6503_v10, %v1171_v32  ;;  %v3129_v23 = vld [vmem:[%s6361_s25 + $0x198] sm:$0xff] }
 0x109   : > { %v6674_v47 = vadd.f32 %v1972_v38, %v6465_v53  ;;  %v5608_v49 = vpop.f32.mrf.mxu0  ;;  %5809 = vmatmul.mubr.msk.f32.gmra.mxu0 %vm3143_vm0, %v3125_v19  ;;  %v2951_v6 = vmul.f32 %v2887_v22, %v2451_v39  ;;  %v2953_v43 = vmul.f32 %v2889_v25, %v2465_v42  ;;  %6029 = vrsqrt.f32 %v6647_v30  ;;  %v2891_v25 = vld [vmem:[%s6558_s14 + $0x28] sm:$0xff]  ;;  %v3130_v38 = vld [vmem:[%s6361_s25 + $0x1a0] sm:$0xff] }
 0x10a   : > { %v6018_v50 = vpop.eup %6017  ;;  %v5688_v51 = vpop.f32.mrf.mxu1  ;;  %5907 = vmatmul.mubr.msk.f32.gmra.mxu1 %vm3143_vm0, %v3125_v19  ;;  %5811 = vmatprep.mubr.msk.f32.mxu0 %vm3143_vm0, %v3126_v33  ;;  %v2467_v56 = vmul.f32 %v6016_v36, %v6513_v15  ;;  %v2483_v3 = vsel %vm2482_vm9, %v6507_v11, %v2481_v20  ;;  %vm2496_vm2 = vcmp.eq.f32.partialorder %v6582_v46, inf  ;;  %v6706_v7 = vadd.f32 %v5608_v49, %v6503_v10  ;;  %v2893_v19 = vld [vmem:[%s6558_s14 + $0x38] sm:$0xff] }
 0x10b   : > { %v6689_v57 = vadd.f32 %v5688_v51, %v6465_v53  ;;  %v1174_v59 = vpop.f32.mrf.mxu0  ;;  %5909 = vmatprep.mubr.msk.f32.mxu1 %vm3143_vm0, %v3126_v33  ;;  %v6694_v0 = vadd.f32 %v2951_v6, %v6539_v27  ;;  %v6697_v1 = vadd.f32 %v2953_v43, %v6533_v24  ;;  %6031 = vrsqrt.f32 %v6674_v47 }
 0x10c   : > { %v6020_v5 = vpop.eup %6019  ;;  %v1975_v27 = vpop.f32.mrf.mxu1  ;;  %v2469_v24 = vsel %vm2468_vm10, %v6513_v15, %v2467_v56  ;;  %v2488_v8 = vmul.f32 %v6018_v50, %v6527_v21  ;;  %v6713_v13 = vadd.f32 %v6503_v10, %v1174_v59  ;;  %vm2498_vm3 = vcmp.eq.f32.partialorder %v6582_v46, 0.0 }
 0x10d   : > { %v6716_v14 = vadd.f32 %v1975_v27, %v6465_v53  ;;  %v5611_v62 = vpop.f32.mrf.mxu0  ;;  %5812 = vmatmul.mubr.msk.f32.gmra.mxu0 %vm3143_vm0, %v3127_v55  ;;  %v2474_v16 = vmul.f32 %v6020_v5, %v6543_v28  ;;  %v2472_v18 = vsel %vm2470_vm11, %v2471_v60, %v2469_v24  ;;  %6033 = vrsqrt.f32 %v6689_v57  ;;  %v2892_v60 = vld [vmem:[%s6558_s14 + $0x30] sm:$0xff] }
 0x10e   : > { %v5691_v22 = vpop.f32.mrf.mxu1  ;;  %5910 = vmatmul.mubr.msk.f32.gmra.mxu1 %vm3143_vm0, %v3127_v55  ;;  %5814 = vmatprep.mubr.msk.f32.mxu0 %vm3143_vm0, %v3128_v63  ;;  %v2954_v32 = vmul.f32 %v2890_v58, %v2472_v18  ;;  %v2490_v33 = vsel %vm2489_vm12, %v6527_v21, %v2488_v8  ;;  %v2486_v15 = vsel %vm2484_vm13, %v2485_v44, %v2483_v3  ;;  %vm2503_vm4 = vcmp.eq.f32.partialorder %v6624_v12, inf  ;;  %v3131_v55 = vld [vmem:[%s6361_s25 + $0x1a8] sm:$0xff]  ;;  %v3132_v27 = vld [vmem:[%s6361_s25 + $0x1b0] sm:$0xff] }
 0x10f   : > { %6035 = vrsqrt.f32 %v6716_v14  ;;  %v6742_v17 = vadd.f32 %v5691_v22, %v6465_v53  ;;  %v1187_v36 = vpop.f32.mrf.mxu0  ;;  %5912 = vmatprep.mubr.msk.f32.mxu1 %vm3143_vm0, %v3128_v63  ;;  %v2476_v39 = vsel %vm2475_vm14, %v6543_v28, %v2474_v16  ;;  %v2493_v11 = vsel %vm2491_vm15, %v2492_v9, %v2490_v33  ;;  %v2894_v22 = vld [vmem:[%s6558_s14 + $0x40] sm:$0xff] }
 0x110   : > { %v6022_v44 = vpop.eup %6021  ;;  %v6754_v42 = vadd.f32 %v5611_v62, %v6503_v10  ;;  %v1988_v20 = vpop.f32.mrf.mxu1  ;;  %v2479_v49 = vsel %vm2477_vm1, %v2478_v29, %v2476_v39  ;;  %v6761_v6 = vadd.f32 %v2954_v32, %v6571_v40  ;;  %v2957_v43 = vmul.f32 %v2893_v19, %v2493_v11 }
 0x111   : > { %v6764_v50 = vadd.f32 %v1988_v20, %v6465_v53  ;;  %v5612_v21 = vpop.f32.mrf.mxu0  ;;  %5815 = vmatmul.mubr.msk.f32.gmra.mxu0 %vm3143_vm0, %v3129_v23  ;;  %v2955_v9 = vmul.f32 %v2891_v25, %v2479_v49  ;;  %v2956_v51 = vmul.f32 %v2892_v60, %v2486_v15  ;;  %vm2505_vm5 = vcmp.eq.f32.partialorder %v6624_v12, 0.0  ;;  %v3133_v60 = vld [vmem:[%s6361_s25 + $0x1b8] sm:$0xff]  ;;  %v3134_v20 = vld [vmem:[%s6361_s25 + $0x1c0] sm:$0xff] }
 0x112   : > { %7988 = vst [vmem:[#allocation5_spill] sm:$0xff] %v6761_v6  ;;  %vm2510_vm6 = vcmp.eq.f32.partialorder %v6594_v54, inf  ;;  %v6024_v28 = vpop.eup %6023  ;;  %6037 = vrsqrt.f32 %v6742_v17  ;;  %v6771_v40 = vadd.f32 %v6503_v10, %v1187_v36  ;;  %v5692_v29 = vpop.f32.mrf.mxu1  ;;  %5913 = vmatmul.mubr.msk.f32.gmra.mxu1 %vm3143_vm0, %v3129_v23  ;;  %5817 = vmatprep.mubr.msk.f32.mxu0 %vm3143_vm0, %v3130_v38  ;;  %v6777_v56 = vadd.f32 %v2957_v43, %v6574_v41  ;;  %v2895_v36 = vld [vmem:[%s6558_s14 + $0x48] sm:$0xff] }
 0x113   : > { %v2495_v59 = vmul.f32 %v6022_v44, %v6582_v46  ;;  %v6026_v63 = vpop.eup %6025  ;;  %v6781_v58 = vadd.f32 %v5612_v21, %v6503_v10  ;;  %v6784_v3 = vadd.f32 %v5692_v29, %v6465_v53  ;;  %v1190_v5 = vpop.f32.mrf.mxu0  ;;  %5915 = vmatprep.mubr.msk.f32.mxu1 %vm3143_vm0, %v3130_v38  ;;  %v6789_v24 = vadd.f32 %v2955_v9, %v6579_v45 }
 0x114   : > { %7989 = vst [vmem:[#allocation6_spill] sm:$0xff] %v6777_v56  ;;  %v6792_v41 = vadd.f32 %v2956_v51, %v6548_v31  ;;  %vm2512_vm7 = vcmp.eq.f32.partialorder %v6594_v54, 0.0  ;;  %v6028_v8 = vpop.eup %6027  ;;  %v1991_v62 = vpop.f32.mrf.mxu1  ;;  %v2506_v16 = vand.u32 2147483648, %v6624_v12  ;;  %v2499_v19 = vand.u32 2147483648, %v6582_v46 }
 0x115   : > { %7990 = vst [vmem:[#allocation7_spill] sm:$0xff] %v6789_v24  ;;  %v2497_v18 = vsel %vm2496_vm2, %v6582_v46, %v2495_v59  ;;  %v2516_v45 = vmul.f32 %v6024_v28, %v6606_v61  ;;  %6039 = vrsqrt.f32 %v6764_v50  ;;  %v6804_v31 = vadd.f32 %v6503_v10, %v1190_v5  ;;  %v5615_v25 = vpop.f32.mrf.mxu0  ;;  %5818 = vmatmul.mubr.msk.f32.gmra.mxu0 %vm3143_vm0, %v3131_v55  ;;  %v2897_v28 = vld [vmem:[%s6558_s14 + $0x58] sm:$0xff] }
 0x116   : > { %7991 = vst [vmem:[#allocation8_spill] sm:$0xff] %v6792_v41  ;;  %v6807_v23 = vadd.f32 %v1991_v62, %v6465_v53  ;;  %v2502_v32 = vmul.f32 %v6028_v8, %v6624_v12  ;;  %6041 = vrsqrt.f32 %v6784_v3  ;;  %v6813_v33 = vadd.f32 %v5615_v25, %v6503_v10  ;;  %v5695_v15 = vpop.f32.mrf.mxu1  ;;  %5916 = vmatmul.mubr.msk.f32.gmra.mxu1 %vm3143_vm0, %v3131_v55  ;;  %v6822_v39 = vpop.eup %6029  ;;  %v3136_v25 = vld [vmem:[%s6361_s25 + $0x1d0] sm:$0xff] }
 0x117   : > { %5820 = vmatprep.mubr.msk.f32.mxu0 %vm3143_vm0, %v3132_v27  ;;  %v2500_v38 = vsel %vm2498_vm3, %v2499_v19, %v2497_v18  ;;  %vm2517_vm8 = vcmp.eq.f32.partialorder %v6606_v61, inf  ;;  %v6825_v11 = vadd.f32 %v5695_v15, %v6465_v53  ;;  %v1203_v44 = vpop.f32.mrf.mxu0  ;;  %5918 = vmatprep.mubr.msk.f32.mxu1 %vm3143_vm0, %v3132_v27  ;;  %v2520_v51 = vand.u32 2147483648, %v6606_v61  ;;  %v2896_v19 = vld [vmem:[%s6558_s14 + $0x50] sm:$0xff] }
 0x118   : > { %v2504_v49 = vsel %vm2503_vm4, %v6624_v12, %v2502_v32  ;;  %v2958_v43 = vmul.f32 %v2894_v22, %v2500_v38  ;;  %v2518_v21 = vsel %vm2517_vm8, %v6606_v61, %v2516_v45  ;;  %6043 = vrsqrt.f32 %v6807_v23  ;;  %v2004_v46 = vpop.f32.mrf.mxu1  ;;  %v6032_v55 = vpop.eup %6031  ;;  %v2904_v41 = vld [vmem:[%s6558_s14 + $0x90] sm:$0xff] }
 0x119   : > { %v2507_v9 = vsel %vm2505_vm5, %v2506_v16, %v2504_v49  ;;  %v2509_v29 = vmul.f32 %v6026_v63, %v6594_v54  ;;  %v6840_v59 = vadd.f32 %v2004_v46, %v6465_v53  ;;  %v5616_v5 = vpop.f32.mrf.mxu0  ;;  %5821 = vmatmul.mubr.msk.f32.gmra.mxu0 %vm3143_vm0, %v3133_v60  ;;  %vm2519_vm9 = vcmp.eq.f32.partialorder %v6606_v61, 0.0  ;;  %v3135_v63 = vld [vmem:[%s6361_s25 + $0x1c8] sm:$0xff] }
 0x11a   : > { %v2959_v27 = vmul.f32 %v2895_v36, %v2507_v9  ;;  %v6844_v8 = vadd.f32 %v2958_v43, %v6616_v4  ;;  %v6848_v12 = vadd.f32 %v6503_v10, %v1203_v44  ;;  %v5696_v62 = vpop.f32.mrf.mxu1  ;;  %5919 = vmatmul.mubr.msk.f32.gmra.mxu1 %vm3143_vm0, %v3133_v60  ;;  %5823 = vmatprep.mubr.msk.f32.mxu0 %vm3143_vm0, %v3134_v20  ;;  %v2513_v4 = vand.u32 2147483648, %v6594_v54  ;;  %v6034_v22 = vpop.eup %6033 }
 0x11b   : > { %v2521_v16 = vsel %vm2519_vm9, %v2520_v51, %v2518_v21  ;;  %v2511_v18 = vsel %vm2510_vm6, %v6594_v54, %v2509_v29  ;;  %6045 = vrsqrt.f32 %v6825_v11  ;;  %v6860_v61 = vadd.f32 %v5696_v62, %v6465_v53  ;;  %v1206_v45 = vpop.f32.mrf.mxu0  ;;  %5921 = vmatprep.mubr.msk.f32.mxu1 %vm3143_vm0, %v3134_v20  ;;  %v3137_v54 = vld [vmem:[%s6361_s25 + $0x1d8] sm:$0xff] }
 0x11c   : > { %7992 = vst [vmem:[#allocation9_spill] sm:$0xff] %v6844_v8  ;;  %v6865_v32 = vadd.f32 %v2959_v27, %v6671_v48  ;;  %v2961_v15 = vmul.f32 %v2897_v28, %v2521_v16  ;;  %v6036_v60 = vpop.eup %6035  ;;  %6047 = vrsqrt.f32 %v6840_v59  ;;  %v6869_v36 = vadd.f32 %v5616_v5, %v6503_v10  ;;  %v2007_v44 = vpop.f32.mrf.mxu1  ;;  %v3138_v5 = vld [vmem:[%s6361_s25 + $0x1e0] sm:$0xff] }
 0x11d   : > { %v6872_v38 = vadd.f32 %v6503_v10, %v1206_v45  ;;  %v2514_v49 = vsel %vm2512_vm7, %v2513_v4, %v2511_v18  ;;  %v6877_v20 = vadd.f32 %v2007_v44, %v6465_v53  ;;  %v5619_v48 = vpop.f32.mrf.mxu0  ;;  %5824 = vmatmul.mubr.msk.f32.gmra.mxu0 %vm3143_vm0, %v3135_v63  ;;  %vm2531_vm10 = vcmp.eq.f32.partialorder %v6716_v14, inf }
 0x11e   : > { %7993 = vst [vmem:[#allocation10_spill] sm:$0xff] %v6865_v32  ;;  %v6881_v43 = vadd.f32 %v2961_v15, %v6659_v37  ;;  %v2960_v21 = vmul.f32 %v2896_v19, %v2514_v49  ;;  %6049 = vrsqrt.f32 %v6860_v61  ;;  %v5699_v46 = vpop.f32.mrf.mxu1  ;;  %5922 = vmatmul.mubr.msk.f32.gmra.mxu1 %vm3143_vm0, %v3135_v63  ;;  %5826 = vmatprep.mubr.msk.f32.mxu0 %vm3143_vm0, %v3136_v25  ;;  %vm2533_vm11 = vcmp.eq.f32.partialorder %v6716_v14, 0.0  ;;  %v2899_v63 = vld [vmem:[%s6558_s14 + $0x68] sm:$0xff] }
 0x11f   : > { %v2530_v9 = vmul.f32 %v6036_v60, %v6716_v14  ;;  %v2523_v51 = vmul.f32 %v6032_v55, %v6674_v47  ;;  %v6891_v37 = vpop.eup %6037  ;;  %v6894_v28 = vadd.f32 %v5699_v46, %v6465_v53  ;;  %v1219_v29 = vpop.f32.mrf.mxu0  ;;  %5924 = vmatprep.mubr.msk.f32.mxu1 %vm3143_vm0, %v3136_v25  ;;  %v2534_v62 = vand.u32 2147483648, %v6716_v14  ;;  %v2898_v60 = vld [vmem:[%s6558_s14 + $0x60] sm:$0xff] }
 0x120   : > { %7994 = vst [vmem:[#allocation11_spill] sm:$0xff] %v6881_v43  ;;  %v6899_v27 = vadd.f32 %v2960_v21, %v6591_v52  ;;  %vm2524_vm12 = vcmp.eq.f32.partialorder %v6674_v47, inf  ;;  %6051 = vrsqrt.f32 %v6877_v20  ;;  %v6906_v55 = vadd.f32 %v5619_v48, %v6503_v10  ;;  %v2020_v16 = vpop.f32.mrf.mxu1  ;;  %v3139_v48 = vld [vmem:[%s6361_s25 + $0x1e8] sm:$0xff] }
 0x121   : > { %v2532_v18 = vsel %vm2531_vm10, %v6716_v14, %v2530_v9  ;;  %v2525_v4 = vsel %vm2524_vm12, %v6674_v47, %v2523_v51  ;;  %v6913_v52 = vadd.f32 %v6503_v10, %v1219_v29  ;;  %v6916_v19 = vadd.f32 %v2020_v16, %v6465_v53  ;;  %v5620_v45 = vpop.f32.mrf.mxu0  ;;  %5827 = vmatmul.mubr.msk.f32.gmra.mxu0 %vm3143_vm0, %v3137_v54  ;;  %v2903_v43 = vld [vmem:[%s6558_s14 + $0x88] sm:$0xff] }
 0x122   : > { %7995 = vst [vmem:[#allocation12_spill] sm:$0xff] %v6899_v27  ;;  %v2535_v25 = vsel %vm2533_vm11, %v2534_v62, %v2532_v18  ;;  %v2527_v15 = vand.u32 2147483648, %v6674_v47  ;;  %v6923_v44 = vpop.eup %6039  ;;  %6053 = vrsqrt.f32 %v6894_v28  ;;  %v5700_v49 = vpop.f32.mrf.mxu1  ;;  %5925 = vmatmul.mubr.msk.f32.gmra.mxu1 %vm3143_vm0, %v3137_v54  ;;  %5829 = vmatprep.mubr.msk.f32.mxu0 %vm3143_vm0, %v3138_v5  ;;  %vm2526_vm13 = vcmp.eq.f32.partialorder %v6674_v47, 0.0  ;;  %v3140_v54 = vld [vmem:[%s6361_s25 + $0x1f0] sm:$0xff] }
 0x123   : > { %v2963_v21 = vmul.f32 %v2899_v63, %v2535_v25  ;;  %v2544_v14 = vmul.f32 %v6034_v22, %v6689_v57  ;;  %v6931_v46 = vpop.eup %6041  ;;  %v6934_v9 = vadd.f32 %v5620_v45, %v6503_v10  ;;  %v6937_v51 = vadd.f32 %v5700_v49, %v6465_v53  ;;  %v1222_v29 = vpop.f32.mrf.mxu0  ;;  %5927 = vmatprep.mubr.msk.f32.mxu1 %vm3143_vm0, %v3138_v5  ;;  %v3141_v49 = vld [vmem:[%s6361_s25 + $0x1f8] sm:$0xff] }
 0x124   : > { %v2528_v62 = vsel %vm2526_vm13, %v2527_v15, %v2525_v4  ;;  %vm2545_vm14 = vcmp.eq.f32.partialorder %v6689_v57, inf  ;;  %6055 = vrsqrt.f32 %v6916_v19  ;;  %v2023_v47 = vpop.f32.mrf.mxu1  ;;  %vm2547_vm15 = vcmp.eq.f32.partialorder %v6689_v57, 0.0  ;;  %v2901_v4 = vld [vmem:[%s6558_s14 + $0x78] sm:$0xff] }
 0x125   : > { %v6944_v22 = vadd.f32 %v2963_v21, %v6713_v13  ;;  %v2962_v63 = vmul.f32 %v2898_v60, %v2528_v62  ;;  %v2546_v16 = vsel %vm2545_vm14, %v6689_v57, %v2544_v14  ;;  %v6044_v18 = vpop.eup %6043  ;;  %v6948_v45 = vadd.f32 %v2023_v47, %v6465_v53  ;;  %v5623_v25 = vpop.f32.mrf.mxu0  ;;  %5830 = vmatmul.mubr.msk.f32.gmra.mxu0 %vm3143_vm0, %v3139_v48 }
 0x126   : > { %v2548_v5 = vand.u32 2147483648, %v6689_v57  ;;  %v2537_v13 = vmul.f32 %v6822_v39, %v6647_v30  ;;  %6057 = vrsqrt.f32 %v6937_v51  ;;  %v6958_v15 = vadd.f32 %v6503_v10, %v1222_v29  ;;  %v5703_v60 = vpop.f32.mrf.mxu1  ;;  %5928 = vmatmul.mubr.msk.f32.gmra.mxu1 %vm3143_vm0, %v3139_v48  ;;  %5832 = vmatprep.mubr.msk.f32.mxu0 %vm3143_vm0, %v3140_v54 }
 0x127   : > { %7996 = vst [vmem:[#allocation13_spill] sm:$0xff] %v6944_v22  ;;  %v6964_v21 = vadd.f32 %v2962_v63, %v6682_v35  ;;  %vm2538_vm1 = vcmp.eq.f32.partialorder %v6647_v30, inf  ;;  %v6968_v14 = vadd.f32 %v5623_v25, %v6503_v10  ;;  %v6971_v39 = vadd.f32 %v5703_v60, %v6465_v53  ;;  %v1235_v29 = vpop.f32.mrf.mxu0  ;;  %5930 = vmatprep.mubr.msk.f32.mxu1 %vm3143_vm0, %v3140_v54 }
 0x128   : > { %v2549_v48 = vsel %vm2547_vm15, %v2548_v5, %v2546_v16  ;;  %v2539_v62 = vsel %vm2538_vm1, %v6647_v30, %v2537_v13  ;;  %v6977_v47 = vpop.eup %6045  ;;  %v2036_v35 = vpop.f32.mrf.mxu1  ;;  %vm2540_vm2 = vcmp.eq.f32.partialorder %v6647_v30, 0.0  ;;  %v2541_v25 = vand.u32 2147483648, %v6647_v30 }
 0x129   : > { %7997 = vst [vmem:[#allocation14_spill] sm:$0xff] %v6964_v21  ;;  %v2965_v63 = vmul.f32 %v2901_v4, %v2549_v48  ;;  %v2900_v21 = vld [vmem:[%s6558_s14 + $0x70] sm:$0xff]  ;;  %v2558_v60 = vmul.f32 %v6044_v18, %v6807_v23  ;;  %v6983_v22 = vpop.eup %6047  ;;  %6059 = vrsqrt.f32 %v6948_v45  ;;  %v6987_v57 = vadd.f32 %v6503_v10, %v1235_v29  ;;  %v5624_v16 = vpop.f32.mrf.mxu0  ;;  %5833 = vmatmul.mubr.msk.f32.gmra.mxu0 %vm3143_vm0, %v3141_v49 }
 0x12a   : > { %v6990_v54 = vadd.f32 %v2036_v35, %v6465_v53  ;;  %vm2559_vm3 = vcmp.eq.f32.partialorder %v6807_v23, inf  ;;  %6061 = vrsqrt.f32 %v6971_v39  ;;  %v5704_v30 = vpop.f32.mrf.mxu1  ;;  %5931 = vmatmul.mubr.msk.f32.gmra.mxu1 %vm3143_vm0, %v3141_v49  ;;  %v2542_v5 = vsel %vm2540_vm2, %v2541_v25, %v2539_v62 }
 0x12b   : > { %v6997_v18 = vadd.f32 %v2965_v63, %v6706_v7  ;;  %v2560_v4 = vsel %vm2559_vm3, %v6807_v23, %v2558_v60  ;;  %v7000_v13 = vpop.eup %6049  ;;  %v7003_v29 = vadd.f32 %v5704_v30, %v6465_v53  ;;  %v1238_v48 = vpop.f32.mrf.mxu0  ;;  %v2964_v35 = vmul.f32 %v2900_v21, %v2542_v5 }
 0x12c   : > { %vm2561_vm4 = vcmp.eq.f32.partialorder %v6807_v23, 0.0  ;;  %v2562_v27 = vand.u32 2147483648, %v6807_v23  ;;  %6063 = vrsqrt.f32 %v6990_v54  ;;  %v7010_v7 = vadd.f32 %v5624_v16, %v6503_v10  ;;  %v2039_v62 = vpop.f32.mrf.mxu1 }
 0x12d   : > { %7998 = vst [vmem:[#allocation15_spill] sm:$0xff] %v6997_v18  ;;  %v7013_v49 = vadd.f32 %v6503_v10, %v1238_v48  ;;  %v2551_v63 = vmul.f32 %v6923_v44, %v6764_v50  ;;  %v6052_v25 = vpop.eup %6051  ;;  %v7018_v21 = vadd.f32 %v2039_v62, %v6465_v53  ;;  %v5627_v60 = vpop.f32.mrf.mxu0  ;;  %v7021_v23 = vadd.f32 %v2964_v35, %v6678_v2  ;;  %v2902_v44 = vld [vmem:[%s6558_s14 + $0x80] sm:$0xff] }
 0x12e   : > { %v2563_v30 = vsel %vm2561_vm4, %v2562_v27, %v2560_v4  ;;  %vm2552_vm0 = vcmp.eq.f32.partialorder %v6764_v50, inf  ;;  %v5707_v16 = vpop.f32.mrf.mxu1  ;;  %vm2554_vm5 = vcmp.eq.f32.partialorder %v6764_v50, 0.0  ;;  %v2555_v18 = vand.u32 2147483648, %v6764_v50 }
 0x12f   : > { %7999 = vst [vmem:[#allocation16_spill] sm:$0xff] %v7021_v23  ;;  %v2967_v5 = vmul.f32 %v2903_v43, %v2563_v30  ;;  %v2553_v48 = vsel %vm2552_vm0, %v6764_v50, %v2551_v63  ;;  %v7028_v8 = vpop.eup %6053  ;;  %6065 = vrsqrt.f32 %v7003_v29  ;;  %v7032_v62 = vadd.f32 %v5627_v60, %v6503_v10  ;;  %v1251_v27 = vpop.f32.mrf.mxu0 }
 0x130   : > { %v7035_v2 = vadd.f32 %v5707_v16, %v6465_v53  ;;  %v2572_v43 = vmul.f32 %v6931_v46, %v6784_v3  ;;  %6067 = vrsqrt.f32 %v7018_v21  ;;  %v2052_v4 = vpop.f32.mrf.mxu1  ;;  %v2556_v35 = vsel %vm2554_vm5, %v2555_v18, %v2553_v48  ;;  %v2905_v18 = vld [vmem:[%s6558_s14 + $0x98] sm:$0xff] }
 0x131   : > { %v7041_v50 = vadd.f32 %v2967_v5, %v6804_v31  ;;  %vm2573_vm6 = vcmp.eq.f32.partialorder %v6784_v3, inf  ;;  %v7044_v63 = vpop.eup %6055  ;;  %v7047_v60 = vadd.f32 %v6503_v10, %v1251_v27  ;;  %v7050_v30 = vadd.f32 %v2052_v4, %v6465_v53  ;;  %v5628_v16 = vpop.f32.mrf.mxu0 }
 0x132   : > { %v2966_v46 = vmul.f32 %v2902_v44, %v2556_v35  ;;  %v2574_v23 = vsel %vm2573_vm6, %v6784_v3, %v2572_v43  ;;  %6069 = vrsqrt.f32 %v7035_v2  ;;  %v5708_v32 = vpop.f32.mrf.mxu1  ;;  %vm2575_vm7 = vcmp.eq.f32.partialorder %v6784_v3, 0.0 }
 0x133   : > { %8000 = vst [vmem:[#allocation17_spill] sm:$0xff] %v7041_v50  ;;  %v2576_v31 = vand.u32 2147483648, %v6784_v3  ;;  %v2565_v5 = vmul.f32 %v6891_v37, %v6742_v17  ;;  %v7059_v48 = vpop.eup %6057  ;;  %v7062_v27 = vadd.f32 %v5628_v16, %v6503_v10  ;;  %v7065_v44 = vadd.f32 %v5708_v32, %v6465_v53  ;;  %v1254_v43 = vpop.f32.mrf.mxu0 }
 0x134   : > { %v7068_v4 = vadd.f32 %v2966_v46, %v6771_v40  ;;  %vm2566_vm8 = vcmp.eq.f32.partialorder %v6742_v17, inf  ;;  %6071 = vrsqrt.f32 %v7050_v30  ;;  %v2055_v3 = vpop.f32.mrf.mxu1  ;;  %v2569_v50 = vand.u32 2147483648, %v6742_v17 }
 0x135   : > { %v2577_v35 = vsel %vm2575_vm7, %v2576_v31, %v2574_v23  ;;  %v2567_v37 = vsel %vm2566_vm8, %v6742_v17, %v2565_v5  ;;  %v7076_v16 = vadd.f32 %v2055_v3, %v6465_v53  ;;  %v5631_v32 = vpop.f32.mrf.mxu0  ;;  %vm2568_vm9 = vcmp.eq.f32.partialorder %v6742_v17, 0.0 }
 0x136   : > { %8001 = vst [vmem:[#allocation18_spill] sm:$0xff] %v7068_v4  ;;  %v2969_v56 = vmul.f32 %v2905_v18, %v2577_v35  ;;  %v2586_v40 = vmul.f32 %v6052_v25, %v6877_v20  ;;  %v7080_v46 = vpop.eup %6059  ;;  %6073 = vrsqrt.f32 %v7065_v44  ;;  %v7084_v23 = vadd.f32 %v6503_v10, %v1254_v43  ;;  %v5711_v5 = vpop.f32.mrf.mxu1 }
 0x137   : > { %v7087_v31 = vadd.f32 %v5631_v32, %v6503_v10  ;;  %v2570_v3 = vsel %vm2568_vm9, %v2569_v50, %v2567_v37  ;;  %v7089_v4 = vpop.eup %6061  ;;  %v7092_v18 = vadd.f32 %v5711_v5, %v6465_v53  ;;  %v1267_v17 = vpop.f32.mrf.mxu0  ;;  %vm2587_vm10 = vcmp.eq.f32.partialorder %v6877_v20, inf  ;;  %v2907_v50 = vld [vmem:[%s6558_s14 + $0xa8] sm:$0xff] }
 0x138   : > { %v7095_v25 = vadd.f32 %v2969_v56, %v6781_v58  ;;  %v2968_v35 = vmul.f32 %v2904_v41, %v2570_v3  ;;  %v2068_v6 = vpop.f32.mrf.mxu1  ;;  %v2588_v43 = vsel %vm2587_vm10, %v6877_v20, %v2586_v40  ;;  %vm2589_vm11 = vcmp.eq.f32.partialorder %v6877_v20, 0.0 }
 0x139   : > { %8002 = vst [vmem:[#allocation19_spill] sm:$0xff] %v7087_v31  ;;  %v2590_v32 = vand.u32 2147483648, %v6877_v20  ;;  %v2579_v37 = vmul.f32 %v6983_v22, %v6840_v59  ;;  %v7104_v5 = vpop.eup %6063  ;;  %6075 = vrsqrt.f32 %v7076_v16  ;;  %v7108_v56 = vadd.f32 %v2068_v6, %v6465_v53  ;;  %v5632_v58 = vpop.f32.mrf.mxu0 }
 0x13a   : > { %8003 = vst [vmem:[#allocation20_spill] sm:$0xff] %v7095_v25  ;;  %v7111_v41 = vadd.f32 %v2968_v35, %v6754_v42  ;;  %vm2580_vm12 = vcmp.eq.f32.partialorder %v6840_v59, inf  ;;  %6077 = vrsqrt.f32 %v7092_v18  ;;  %v7116_v20 = vadd.f32 %v6503_v10, %v1267_v17  ;;  %v5712_v22 = vpop.f32.mrf.mxu1 }
 0x13b   : > { %v2591_v40 = vsel %vm2589_vm11, %v2590_v32, %v2588_v43  ;;  %v2581_v3 = vsel %vm2580_vm12, %v6840_v59, %v2579_v37  ;;  %v7120_v25 = vadd.f32 %v5632_v58, %v6503_v10  ;;  %v7123_v6 = vadd.f32 %v5712_v22, %v6465_v53  ;;  %v1270_v31 = vpop.f32.mrf.mxu0 }
 0x13c   : > { %8004 = vst [vmem:[#allocation21_spill] sm:$0xff] %v7111_v41  ;;  %8005 = vst [vmem:[#allocation22_spill] sm:$0xff] %v7116_v20  ;;  %v2971_v42 = vmul.f32 %v2907_v50, %v2591_v40  ;;  %v2583_v35 = vand.u32 2147483648, %v6840_v59  ;;  %v2906_v41 = vld [vmem:[%s6558_s14 + $0xa0] sm:$0xff]  ;;  %v7127_v24 = vpop.eup %6065  ;;  %6079 = vrsqrt.f32 %v7108_v56  ;;  %v7131_v17 = vadd.f32 %v6503_v10, %v1270_v31  ;;  %v2071_v43 = vpop.f32.mrf.mxu1 }
 0x13d   : > { %8006 = vst [vmem:[#allocation23_spill] sm:$0xff] %v7120_v25  ;;  %vm2582_vm13 = vcmp.eq.f32.partialorder %v6840_v59, 0.0  ;;  %v2600_v32 = vmul.f32 %v7000_v13, %v6860_v61  ;;  %v7136_v37 = vpop.eup %6067  ;;  %v7139_v50 = vadd.f32 %v2071_v43, %v6465_v53  ;;  %v5635_v58 = vpop.f32.mrf.mxu0  ;;  %vm2601_vm14 = vcmp.eq.f32.partialorder %v6860_v61, inf  ;;  %v2909_v13 = vld [vmem:[%s6558_s14 + $0xb8] sm:$0xff] }
 0x13e   : > { %v7142_v22 = vadd.f32 %v2971_v42, %v6872_v38  ;;  %v2584_v40 = vsel %vm2582_vm13, %v2583_v35, %v2581_v3  ;;  %v5715_v31 = vpop.f32.mrf.mxu1  ;;  %vm2603_vm15 = vcmp.eq.f32.partialorder %v6860_v61, 0.0  ;;  %v2604_v59 = vand.u32 2147483648, %v6860_v61 }
 0x13f   : > { %v2970_v25 = vmul.f32 %v2906_v41, %v2584_v40  ;;  %v2602_v26 = vsel %vm2601_vm14, %v6860_v61, %v2600_v32  ;;  %v7149_v20 = vpop.eup %6069  ;;  %6081 = vrsqrt.f32 %v7123_v6  ;;  %v7153_v43 = vadd.f32 %v5635_v58, %v6503_v10  ;;  %v1283_v3 = vpop.f32.mrf.mxu0 }
 0x140   : > { %8007 = vst [vmem:[#allocation24_spill] sm:$0xff] %v7142_v22  ;;  %v7156_v38 = vadd.f32 %v5715_v31, %v6465_v53  ;;  %v2593_v41 = vmul.f32 %v6977_v47, %v6825_v11  ;;  %6083 = vrsqrt.f32 %v7139_v50  ;;  %v2084_v42 = vpop.f32.mrf.mxu1  ;;  %v2605_v35 = vsel %vm2603_vm15, %v2604_v59, %v2602_v26  ;;  %v7185_v59 = vld [vmem:[%s7960_s3] ss:$0 sm:$0xff] }
 0x141   : > { %8008 = vst [vmem:[#allocation25_spill] sm:$0xff] %v7153_v43  ;;  %v7162_v61 = vadd.f32 %v2970_v25, %v6848_v12  ;;  %vm2594_vm1 = vcmp.eq.f32.partialorder %v6825_v11, inf  ;;  %v7165_v32 = vpop.eup %6071  ;;  %v7168_v58 = vadd.f32 %v6503_v10, %v1283_v3  ;;  %v7171_v40 = vadd.f32 %v2084_v42, %v6465_v53  ;;  %v5636_v31 = vpop.f32.mrf.mxu0  ;;  %v2908_v12 = vld [vmem:[%s6558_s14 + $0xb0] sm:$0xff] }
 0x142   : > { %8009 = vst [vmem:[#allocation26_spill] sm:$0xff] %v7156_v38  ;;  %v2973_v47 = vmul.f32 %v2909_v13, %v2605_v35  ;;  %v2595_v22 = vsel %vm2594_vm1, %v6825_v11, %v2593_v41  ;;  %6085 = vrsqrt.f32 %v7156_v38  ;;  %v5716_v43 = vpop.f32.mrf.mxu1  ;;  %vm2596_vm2 = vcmp.eq.f32.partialorder %v6825_v11, 0.0 }
 0x143   : > { %8010 = vst [vmem:[#allocation27_spill] sm:$0xff] %v7162_v61  ;;  %8011 = vst [vmem:[#allocation28_spill] sm:$0xff] %v7168_v58  ;;  %v2597_v26 = vand.u32 2147483648, %v6825_v11  ;;  %v2614_v10 = vmul.f32 %v7080_v46, %v6948_v45  ;;  %v7180_v25 = vpop.eup %6073  ;;  %v7188_v13 = vadd.f32 %v7185_v59, %v5636_v31  ;;  %v7191_v3 = vadd.f32 %v5716_v43, %v6465_v53  ;;  %v1286_v41 = vpop.f32.mrf.mxu0  ;;  %v2911_v58 = vld [vmem:[%s6558_s14 + $0xc8] sm:$0xff] }
 0x144   : > { %v7194_v11 = vadd.f32 %v2973_v47, %v6869_v36  ;;  %vm2615_vm3 = vcmp.eq.f32.partialorder %v6948_v45, inf  ;;  %6087 = vrsqrt.f32 %v7171_v40  ;;  %v2087_v46 = vpop.f32.mrf.mxu1  ;;  %v2618_v61 = vand.u32 2147483648, %v6948_v45 }
 0x145   : > { %8012 = vst [vmem:[#allocation29_spill] sm:$0xff] %v7188_v13  ;;  %v2598_v42 = vsel %vm2596_vm2, %v2597_v26, %v2595_v22  ;;  %v2616_v35 = vsel %vm2615_vm3, %v6948_v45, %v2614_v10  ;;  %v7202_v31 = vadd.f32 %v2087_v46, %v6465_v53  ;;  %v5639_v43 = vpop.f32.mrf.mxu0  ;;  %vm2617_vm4 = vcmp.eq.f32.partialorder %v6948_v45, 0.0 }
 0x146   : > { %8013 = vst [vmem:[#allocation30_spill] sm:$0xff] %v7194_v11  ;;  %v2972_v13 = vmul.f32 %v2908_v12, %v2598_v42  ;;  %v2607_v36 = vmul.f32 %v7044_v63, %v6916_v19  ;;  %v7207_v47 = vpop.eup %6075  ;;  %6089 = vrsqrt.f32 %v7191_v3  ;;  %v7211_v22 = vadd.f32 %v7185_v59, %v1286_v41  ;;  %v5719_v10 = vpop.f32.mrf.mxu1 }
 0x147   : > { %v7214_v26 = vadd.f32 %v7185_v59, %v5639_v43  ;;  %v2619_v46 = vsel %vm2617_vm4, %v2618_v61, %v2616_v35  ;;  %v7216_v11 = vpop.eup %6077  ;;  %v7219_v45 = vadd.f32 %v5719_v10, %v6465_v53  ;;  %v1299_v12 = vpop.f32.mrf.mxu0  ;;  %vm2608_vm0 = vcmp.eq.f32.partialorder %v6916_v19, inf  ;;  %v2910_v61 = vld [vmem:[%s6558_s14 + $0xc0] sm:$0xff] }
 0x148   : > { %8014 = vst [vmem:[#allocation31_spill] sm:$0xff] %v7211_v22  ;;  %v7222_v63 = vadd.f32 %v2972_v13, %v6813_v33  ;;  %v2975_v42 = vmul.f32 %v2911_v58, %v2619_v46  ;;  %v2100_v38 = vpop.f32.mrf.mxu1  ;;  %v2609_v41 = vsel %vm2608_vm0, %v6916_v19, %v2607_v36  ;;  %vm2610_vm5 = vcmp.eq.f32.partialorder %v6916_v19, 0.0 }
 0x149   : > { %8015 = vst [vmem:[#allocation32_spill] sm:$0xff] %v7214_v26  ;;  %8016 = vst [vmem:[#allocation33_spill] sm:$0xff] %v7219_v45  ;;  %v2611_v43 = vand.u32 2147483648, %v6916_v19  ;;  %v2628_v35 = vmul.f32 %v7059_v48, %v6937_v51  ;;  %v7231_v10 = vpop.eup %6079  ;;  %6091 = vrsqrt.f32 %v7202_v31  ;;  %v7235_v33 = vadd.f32 %v2100_v38, %v6465_v53  ;;  %v5640_v58 = vpop.f32.mrf.mxu0 }
 0x14a   : > { %8017 = vst [vmem:[#allocation34_spill] sm:$0xff] %v7222_v63  ;;  %v7238_v13 = vadd.f32 %v2975_v42, %v6958_v15  ;;  %vm2629_vm6 = vcmp.eq.f32.partialorder %v6937_v51, inf  ;;  %6093 = vrsqrt.f32 %v7219_v45  ;;  %v7243_v19 = vadd.f32 %v7185_v59, %v1299_v12  ;;  %v5720_v48 = vpop.f32.mrf.mxu1 }
 0x14b   : > { %v2612_v36 = vsel %vm2610_vm5, %v2611_v43, %v2609_v41  ;;  %v2630_v46 = vsel %vm2629_vm6, %v6937_v51, %v2628_v35  ;;  %v7247_v63 = vadd.f32 %v7185_v59, %v5640_v58  ;;  %v7250_v38 = vadd.f32 %v5720_v48, %v6465_v53  ;;  %v1302_v26 = vpop.f32.mrf.mxu0 }
 0x14c   : > { %8018 = vst [vmem:[#allocation35_spill] sm:$0xff] %v7238_v13  ;;  %8019 = vst [vmem:[#allocation36_spill] sm:$0xff] %v7243_v19  ;;  %v2974_v15 = vmul.f32 %v2910_v61, %v2612_v36  ;;  %v2632_v42 = vand.u32 2147483648, %v6937_v51  ;;  %v2913_v13 = vld [vmem:[%s6558_s14 + $0xd8] sm:$0xff]  ;;  %v7254_v22 = vpop.eup %6081  ;;  %6095 = vrsqrt.f32 %v7235_v33  ;;  %v7258_v12 = vadd.f32 %v7185_v59, %v1302_v26  ;;  %v2103_v41 = vpop.f32.mrf.mxu1 }
 0x14d   : > { %8020 = vst [vmem:[#allocation37_spill] sm:$0xff] %v7247_v63  ;;  %vm2631_vm7 = vcmp.eq.f32.partialorder %v6937_v51, 0.0  ;;  %v2621_v43 = vmul.f32 %v7028_v8, %v6894_v28  ;;  %v7263_v35 = vpop.eup %6083  ;;  %v7266_v61 = vadd.f32 %v2103_v41, %v6465_v53  ;;  %v5643_v58 = vpop.f32.mrf.mxu0  ;;  %vm2622_vm8 = vcmp.eq.f32.partialorder %v6894_v28, inf  ;;  %v2912_v51 = vld [vmem:[%s6558_s14 + $0xd0] sm:$0xff] }
 0x14e   : > { %v7269_v48 = vadd.f32 %v2974_v15, %v6913_v52  ;;  %v2633_v36 = vsel %vm2631_vm7, %v2632_v42, %v2630_v46  ;;  %v5723_v26 = vpop.f32.mrf.mxu1  ;;  %vm2624_vm9 = vcmp.eq.f32.partialorder %v6894_v28, 0.0  ;;  %v2625_v8 = vand.u32 2147483648, %v6894_v28 }
 0x14f   : > { %v2977_v63 = vmul.f32 %v2913_v13, %v2633_v36  ;;  %v2623_v19 = vsel %vm2622_vm8, %v6894_v28, %v2621_v43  ;;  %v7276_v45 = vpop.eup %6085  ;;  %6097 = vrsqrt.f32 %v7250_v38  ;;  %v7280_v41 = vadd.f32 %v7185_v59, %v5643_v58  ;;  %v1315_v46 = vpop.f32.mrf.mxu0 }
 0x150   : > { %8021 = vst [vmem:[#allocation38_spill] sm:$0xff] %v7269_v48  ;;  %v7283_v52 = vadd.f32 %v5723_v26, %v6465_v53  ;;  %v2642_v13 = vmul.f32 %v7136_v37, %v7018_v21  ;;  %6099 = vrsqrt.f32 %v7266_v61  ;;  %v2116_v15 = vpop.f32.mrf.mxu1  ;;  %v2626_v42 = vsel %vm2624_vm9, %v2625_v8, %v2623_v19 }
 0x151   : > { %8022 = vst [vmem:[#allocation39_spill] sm:$0xff] %v7280_v41  ;;  %v7289_v28 = vadd.f32 %v2977_v63, %v6934_v9  ;;  %vm2643_vm10 = vcmp.eq.f32.partialorder %v7018_v21, inf  ;;  %v7292_v43 = vpop.eup %6087  ;;  %v7295_v58 = vadd.f32 %v7185_v59, %v1315_v46  ;;  %v7298_v36 = vadd.f32 %v2116_v15, %v6465_v53  ;;  %v5644_v26 = vpop.f32.mrf.mxu0  ;;  %v2915_v63 = vld [vmem:[%s6558_s14 + $0xe8] sm:$0xff] }
 0x152   : > { %8023 = vst [vmem:[#allocation40_spill] sm:$0xff] %v7283_v52  ;;  %v2976_v37 = vmul.f32 %v2912_v51, %v2626_v42  ;;  %v2644_v41 = vsel %vm2643_vm10, %v7018_v21, %v2642_v13  ;;  %6101 = vrsqrt.f32 %v7283_v52  ;;  %v5724_v48 = vpop.f32.mrf.mxu1  ;;  %vm2645_vm11 = vcmp.eq.f32.partialorder %v7018_v21, 0.0 }
 0x153   : > { %8024 = vst [vmem:[#allocation41_spill] sm:$0xff] %v7289_v28  ;;  %8025 = vst [vmem:[#allocation42_spill] sm:$0xff] %v7295_v58  ;;  %v2646_v9 = vand.u32 2147483648, %v7018_v21  ;;  %v2635_v19 = vmul.f32 %v7104_v5, %v6990_v54  ;;  %v7307_v8 = vpop.eup %6089  ;;  %v7310_v46 = vadd.f32 %v7185_v59, %v5644_v26  ;;  %v7313_v51 = vadd.f32 %v5724_v48, %v6465_v53  ;;  %v1318_v13 = vpop.f32.mrf.mxu0  ;;  %v2914_v58 = vld [vmem:[%s6558_s14 + $0xe0] sm:$0xff] }
 0x154   : > { %v7316_v15 = vadd.f32 %v2976_v37, %v6906_v55  ;;  %vm2636_vm12 = vcmp.eq.f32.partialorder %v6990_v54, inf  ;;  %6103 = vrsqrt.f32 %v7298_v36  ;;  %v2119_v21 = vpop.f32.mrf.mxu1  ;;  %v2639_v28 = vand.u32 2147483648, %v6990_v54 }
 0x155   : > { %8026 = vst [vmem:[#allocation43_spill] sm:$0xff] %v7310_v46  ;;  %v2647_v42 = vsel %vm2645_vm11, %v2646_v9, %v2644_v41  ;;  %v2637_v5 = vsel %vm2636_vm12, %v6990_v54, %v2635_v19  ;;  %v7324_v26 = vadd.f32 %v2119_v21, %v6465_v53  ;;  %v5647_v48 = vpop.f32.mrf.mxu0  ;;  %vm2638_vm13 = vcmp.eq.f32.partialorder %v6990_v54, 0.0 }
 0x156   : > { %8027 = vst [vmem:[#allocation44_spill] sm:$0xff] %v7316_v15  ;;  %v2979_v46 = vmul.f32 %v2915_v63, %v2647_v42  ;;  %v2656_v55 = vmul.f32 %v7127_v24, %v7003_v29  ;;  %v7329_v37 = vpop.eup %6091  ;;  %6105 = vrsqrt.f32 %v7313_v51  ;;  %v7333_v41 = vadd.f32 %v7185_v59, %v1318_v13  ;;  %v5727_v19 = vpop.f32.mrf.mxu1 }
 0x157   : > { %v7336_v9 = vadd.f32 %v7185_v59, %v5647_v48  ;;  %v2640_v21 = vsel %vm2638_vm13, %v2639_v28, %v2637_v5  ;;  %v7338_v15 = vpop.eup %6093  ;;  %v7341_v54 = vadd.f32 %v5727_v19, %v6465_v53  ;;  %v1331_v63 = vpop.f32.mrf.mxu0  ;;  %vm2657_vm14 = vcmp.eq.f32.partialorder %v7003_v29, inf  ;;  %v2917_v28 = vld [vmem:[%s6558_s14 + $0xf8] sm:$0xff] }
 0x158   : > { %8028 = vst [vmem:[#allocation45_spill] sm:$0xff] %v7333_v41  ;;  %v7344_v24 = vadd.f32 %v2979_v46, %v7013_v49  ;;  %v2978_v42 = vmul.f32 %v2914_v58, %v2640_v21  ;;  %v2132_v52 = vpop.f32.mrf.mxu1  ;;  %v2658_v13 = vsel %vm2657_vm14, %v7003_v29, %v2656_v55  ;;  %vm2659_vm15 = vcmp.eq.f32.partialorder %v7003_v29, 0.0 }
 0x159   : > { %8029 = vst [vmem:[#allocation46_spill] sm:$0xff] %v7336_v9  ;;  %8030 = vst [vmem:[#allocation47_spill] sm:$0xff] %v7341_v54  ;;  %v2660_v48 = vand.u32 2147483648, %v7003_v29  ;;  %v2649_v5 = vmul.f32 %v7089_v4, %v6971_v39  ;;  %v7353_v19 = vpop.eup %6095  ;;  %6107 = vrsqrt.f32 %v7324_v26  ;;  %v7357_v49 = vadd.f32 %v2132_v52, %v6465_v53  ;;  %v5648_v58 = vpop.f32.mrf.mxu0 }
 0x15a   : > { %8031 = vst [vmem:[#allocation48_spill] sm:$0xff] %v7344_v24  ;;  %v7360_v46 = vadd.f32 %v2978_v42, %v6987_v57  ;;  %vm2650_vm1 = vcmp.eq.f32.partialorder %v6971_v39, inf  ;;  %6109 = vrsqrt.f32 %v7341_v54  ;;  %v7365_v29 = vadd.f32 %v7185_v59, %v1331_v63  ;;  %v5728_v4 = vpop.f32.mrf.mxu1 }
 0x15b   : > { %v2661_v55 = vsel %vm2659_vm15, %v2660_v48, %v2658_v13  ;;  %v2651_v21 = vsel %vm2650_vm1, %v6971_v39, %v2649_v5  ;;  %v7369_v9 = vadd.f32 %v7185_v59, %v5648_v58  ;;  %v7372_v52 = vadd.f32 %v5728_v4, %v6465_v53  ;;  %v1334_v24 = vpop.f32.mrf.mxu0 }
 0x15c   : > { %8032 = vst [vmem:[#allocation49_spill] sm:$0xff] %v7360_v46  ;;  %8033 = vst [vmem:[#allocation50_spill] sm:$0xff] %v7365_v29  ;;  %v2981_v57 = vmul.f32 %v2917_v28, %v2661_v55  ;;  %v2653_v42 = vand.u32 2147483648, %v6971_v39  ;;  %v2916_v46 = vld [vmem:[%s6558_s14 + $0xf0] sm:$0xff]  ;;  %v7376_v41 = vpop.eup %6097  ;;  %6111 = vrsqrt.f32 %v7357_v49  ;;  %v7380_v63 = vadd.f32 %v7185_v59, %v1334_v24  ;;  %v2135_v13 = vpop.f32.mrf.mxu1 }
 0x15d   : > { %8034 = vst [vmem:[#allocation51_spill] sm:$0xff] %v7369_v9  ;;  %vm2652_vm2 = vcmp.eq.f32.partialorder %v6971_v39, 0.0  ;;  %v2670_v48 = vmul.f32 %v7207_v47, %v7076_v16  ;;  %v7385_v5 = vpop.eup %6099  ;;  %v7388_v28 = vadd.f32 %v2135_v13, %v6465_v53  ;;  %v5651_v58 = vpop.f32.mrf.mxu0  ;;  %vm2671_vm3 = vcmp.eq.f32.partialorder %v7076_v16, inf  ;;  %v2919_v47 = vld [vmem:[%s6558_s14 + $0x108] sm:$0xff] }
 0x15e   : > { %v7391_v4 = vadd.f32 %v2981_v57, %v7010_v7  ;;  %v2654_v55 = vsel %vm2652_vm2, %v2653_v42, %v2651_v21  ;;  %v5731_v24 = vpop.f32.mrf.mxu1  ;;  %vm2673_vm4 = vcmp.eq.f32.partialorder %v7076_v16, 0.0  ;;  %v2674_v39 = vand.u32 2147483648, %v7076_v16 }
 0x15f   : > { %v2980_v9 = vmul.f32 %v2916_v46, %v2654_v55  ;;  %v2672_v54 = vsel %vm2671_vm3, %v7076_v16, %v2670_v48  ;;  %v7398_v29 = vpop.eup %6101  ;;  %6113 = vrsqrt.f32 %v7372_v52  ;;  %v7402_v13 = vadd.f32 %v7185_v59, %v5651_v58  ;;  %v1347_v21 = vpop.f32.mrf.mxu0 }
 0x160   : > { %8035 = vst [vmem:[#allocation52_spill] sm:$0xff] %v7391_v4  ;;  %v7405_v7 = vadd.f32 %v5731_v24, %v6465_v53  ;;  %v2663_v46 = vmul.f32 %v7165_v32, %v7050_v30  ;;  %6115 = vrsqrt.f32 %v7388_v28  ;;  %v2148_v57 = vpop.f32.mrf.mxu1  ;;  %v2675_v42 = vsel %vm2673_vm4, %v2674_v39, %v2672_v54 }
 0x161   : > { %8036 = vst [vmem:[#allocation53_spill] sm:$0xff] %v7402_v13  ;;  %v7411_v16 = vadd.f32 %v2980_v9, %v6968_v14  ;;  %vm2664_vm0 = vcmp.eq.f32.partialorder %v7050_v30, inf  ;;  %v7414_v48 = vpop.eup %6103  ;;  %v7417_v58 = vadd.f32 %v7185_v59, %v1347_v21  ;;  %v7420_v55 = vadd.f32 %v2148_v57, %v6465_v53  ;;  %v5652_v24 = vpop.f32.mrf.mxu0  ;;  %v2918_v9 = vld [vmem:[%s6558_s14 + $0x100] sm:$0xff] }
 0x162   : > { %8037 = vst [vmem:[#allocation54_spill] sm:$0xff] %v7405_v7  ;;  %v2983_v32 = vmul.f32 %v2919_v47, %v2675_v42  ;;  %v2665_v13 = vsel %vm2664_vm0, %v7050_v30, %v2663_v46  ;;  %6117 = vrsqrt.f32 %v7405_v7  ;;  %v5732_v4 = vpop.f32.mrf.mxu1  ;;  %vm2666_vm5 = vcmp.eq.f32.partialorder %v7050_v30, 0.0  ;;  %v2921_v7 = vld [vmem:[%s6558_s14 + $0x118] sm:$0xff] }
 0x163   : > { %8038 = vst [vmem:[#allocation55_spill] sm:$0xff] %v7417_v58  ;;  %v2667_v14 = vand.u32 2147483648, %v7050_v30  ;;  %v2684_v54 = vmul.f32 %v7180_v25, %v7065_v44  ;;  %v7429_v39 = vpop.eup %6105  ;;  %v7432_v21 = vadd.f32 %v7185_v59, %v5652_v24  ;;  %v7435_v47 = vadd.f32 %v5732_v4, %v6465_v53  ;;  %v1350_v46 = vpop.f32.mrf.mxu0 }
 0x164   : > { %v7438_v57 = vadd.f32 %v2983_v32, %v7084_v23  ;;  %vm2685_vm6 = vcmp.eq.f32.partialorder %v7065_v44, inf  ;;  %6119 = vrsqrt.f32 %v7420_v55  ;;  %v2151_v30 = vpop.f32.mrf.mxu1  ;;  %v2688_v58 = vand.u32 2147483648, %v7065_v44 }
 0x165   : > { %8039 = vst [vmem:[#allocation56_spill] sm:$0xff] %v7432_v21  ;;  %8040 = vst [vmem:[#allocation57_spill] sm:$0xff] %v7435_v47  ;;  %v2668_v42 = vsel %vm2666_vm5, %v2667_v14, %v2665_v13  ;;  %v2686_v25 = vsel %vm2685_vm6, %v7065_v44, %v2684_v54  ;;  %v7446_v24 = vadd.f32 %v2151_v30, %v6465_v53  ;;  %v7448_v4 = vpop.f32.mrf.mxu0  ;;  %vm2687_vm7 = vcmp.eq.f32.partialorder %v7065_v44, 0.0 }
 0x166   : > { %8041 = vst [vmem:[#allocation58_spill] sm:$0xff] %v7448_v4  ;;  %v2982_v21 = vmul.f32 %v2918_v9, %v2668_v42  ;;  %v2677_v23 = vmul.f32 %v7149_v20, %v7035_v2  ;;  %v7453_v32 = vpop.eup %6107  ;;  %6121 = vrsqrt.f32 %v7435_v47  ;;  %v7457_v13 = vadd.f32 %v7185_v59, %v1350_v46  ;;  %v5735_v14 = vpop.f32.mrf.mxu1 }
 0x167   : > { %v2689_v54 = vsel %vm2687_vm7, %v2688_v58, %v2686_v25  ;;  %vm2678_vm8 = vcmp.eq.f32.partialorder %v7035_v2, inf  ;;  %v7460_v30 = vpop.eup %6109  ;;  %v7463_v9 = vadd.f32 %v5735_v14, %v6465_v53  ;;  %v1363_v44 = vpop.f32.mrf.mxu0  ;;  %vm2680_vm9 = vcmp.eq.f32.partialorder %v7035_v2, 0.0  ;;  %v2920_v25 = vld [vmem:[%s6558_s14 + $0x110] sm:$0xff] }
 0x168   : > { %8042 = vst [vmem:[#allocation59_spill] sm:$0xff] %v7457_v13  ;;  %v7466_v20 = vadd.f32 %v2982_v21, %v7047_v60  ;;  %v2985_v42 = vmul.f32 %v2921_v7, %v2689_v54  ;;  %6123 = vrsqrt.f32 %v7446_v24  ;;  %v2164_v46 = vpop.f32.mrf.mxu1  ;;  %v2679_v4 = vsel %vm2678_vm8, %v7035_v2, %v2677_v23 }
 0x169   : > { %8043 = vst [vmem:[#allocation60_spill] sm:$0xff] %v7463_v9  ;;  %v2681_v58 = vand.u32 2147483648, %v7035_v2  ;;  %v2698_v13 = vmul.f32 %v7263_v35, %v7139_v50  ;;  %v7475_v14 = vpop.eup %6111  ;;  %v7478_v60 = vadd.f32 %v7185_v59, %v1363_v44  ;;  %v7481_v7 = vadd.f32 %v2164_v46, %v6465_v53  ;;  %v7483_v21 = vpop.f32.mrf.mxu0 }
 0x16a   : > { %8046 = vst [vmem:[#allocation63_spill] sm:$0xff] %v7483_v21  ;;  %v7486_v54 = vadd.f32 %v2985_v42, %v7062_v27  ;;  %vm2699_vm10 = vcmp.eq.f32.partialorder %v7139_v50, inf  ;;  %6125 = vrsqrt.f32 %v7463_v9  ;;  %v5736_v2 = vpop.f32.mrf.mxu1  ;;  %vm2701_vm11 = vcmp.eq.f32.partialorder %v7139_v50, 0.0  ;;  %v2923_v42 = vld [vmem:[%s6558_s14 + $0x128] sm:$0xff] }
 0x16b   : > { %8044 = vst [vmem:[#allocation61_spill] sm:$0xff] %v7478_v60  ;;  %8045 = vst [vmem:[#allocation62_spill] sm:$0xff] %v7481_v7  ;;  %v2682_v35 = vsel %vm2680_vm9, %v2681_v58, %v2679_v4  ;;  %v2700_v23 = vsel %vm2699_vm10, %v7139_v50, %v2698_v13  ;;  %6127 = vrsqrt.f32 %v7481_v7  ;;  %v7494_v44 = vadd.f32 %v5736_v2, %v6465_v53  ;;  %v1366_v46 = vpop.f32.mrf.mxu0 }
 0x16c   : > { %8047 = vst [vmem:[#allocation64_spill] sm:$0xff] %v7486_v54  ;;  %v2984_v60 = vmul.f32 %v2920_v25, %v2682_v35  ;;  %v2702_v27 = vand.u32 2147483648, %v7139_v50  ;;  %v7498_v21 = vpop.eup %6113  ;;  %v7501_v9 = vadd.f32 %v7185_v59, %v1366_v46  ;;  %v2167_v4 = vpop.f32.mrf.mxu1  ;;  %v2691_v13 = vmul.f32 %v7231_v10, %v7108_v56  ;;  %v2922_v54 = vld [vmem:[%s6558_s14 + $0x120] sm:$0xff] }
 0x16d   : > { %8048 = vst [vmem:[#allocation65_spill] sm:$0xff] %v7494_v44  ;;  %vm2692_vm12 = vcmp.eq.f32.partialorder %v7108_v56, inf  ;;  %vm2694_vm13 = vcmp.eq.f32.partialorder %v7108_v56, 0.0  ;;  %v7507_v58 = vpop.eup %6115  ;;  %6129 = vrsqrt.f32 %v7494_v44  ;;  %v7511_v25 = vadd.f32 %v2167_v4, %v6465_v53  ;;  %v5741_v2 = vpop.f32.mrf.mxu0 }
 0x16e   : > { %8049 = vst [vmem:[#allocation66_spill] sm:$0xff] %v7501_v9  ;;  %v7514_v59 = vadd.f32 %v2984_v60, %v7032_v62  ;;  %v2703_v35 = vsel %vm2701_vm11, %v2702_v27, %v2700_v23  ;;  %v4108_v10 = vmul.f32 %v5741_v2, %v6694_v0  ;;  %v5839_v46 = vpop.f32.mrf.mxu1  ;;  %v2693_v7 = vsel %vm2692_vm12, %v7108_v56, %v2691_v13 }
 0x16f   : > { %8050 = vst [vmem:[#allocation67_spill] sm:$0xff] %v7511_v25  ;;  %v2987_v9 = vmul.f32 %v2923_v42, %v2703_v35  ;;  %v2695_v47 = vand.u32 2147483648, %v7108_v56  ;;  %v7522_v44 = vpop.eup %6117  ;;  %6131 = vrsqrt.f32 %v7511_v25  ;;  %v3402_v53 = vpop.f32.mrf.mxu0  ;;  %v2712_v62 = vmul.f32 %v7254_v22, %v7123_v6  ;;  %v2925_v35 = vld [vmem:[%s6558_s14 + $0x138] sm:$0xff] }
 0x170   : > { %8051 = vst [vmem:[#allocation68_spill] sm:$0xff] %v7522_v44  ;;  %vm2713_vm14 = vcmp.eq.f32.partialorder %v7123_v6, inf  ;;  %vm2715_vm15 = vcmp.eq.f32.partialorder %v7123_v6, 0.0  ;;  %v4172_v0 = vadd.f32 %v5839_v46, %v4108_v10  ;;  %v4107_v50 = vmul.f32 %v3402_v53, %v6655_v34  ;;  %v3788_v60 = vpop.f32.mrf.mxu1 }
 0x171   : > { %v7531_v23 = vadd.f32 %v2987_v9, %v7131_v17  ;;  %v2696_v27 = vsel %vm2694_vm13, %v2695_v47, %v2693_v7  ;;  %v7535_v42 = vpop.eup %6119  ;;  %v5744_v4 = vpop.f32.mrf.mxu0  ;;  %v2714_v22 = vsel %vm2713_vm14, %v7123_v6, %v2712_v62  ;;  %v2716_v2 = vand.u32 2147483648, %v7123_v6  ;;  %v8053_v7 = vld [vmem:[#allocation22_spill] sm:$0xff] }
 0x172   : > { %v2986_v13 = vmul.f32 %v2922_v54, %v2696_v27  ;;  %v2705_v10 = vmul.f32 %v7216_v11, %v7092_v18  ;;  %v4236_v34 = vmax.f32 %v4172_v0, 0.0  ;;  %v4171_v46 = vadd.f32 %v4107_v50, %v3788_v60  ;;  %v5842_v9 = vpop.f32.mrf.mxu1 }
 0x173   : > { %8052 = vst [vmem:[#allocation69_spill] sm:$0xff] %v7531_v23  ;;  %v4110_v17 = vmul.f32 %v5744_v4, %v6697_v1  ;;  %vm2706_vm1 = vcmp.eq.f32.partialorder %v7092_v18, inf  ;;  %v7544_v56 = vpop.eup %6121  ;;  %v3412_v47 = vpop.f32.mrf.mxu0  ;;  %v2717_v53 = vsel %vm2715_vm15, %v2716_v2, %v2714_v22  ;;  %vm2708_vm2 = vcmp.eq.f32.partialorder %v7092_v18, 0.0  ;;  %v8055_v1 = vld [vmem:[#allocation4_spill] sm:$0xff]  ;;  %v2924_v22 = vld [vmem:[%s6558_s14 + $0x130] sm:$0xff] }
 0x174   : > { %v7547_v54 = vadd.f32 %v2986_v13, %v8053_v7  ;;  %v2707_v11 = vsel %vm2706_vm1, %v7092_v18, %v2705_v10  ;;  %v4235_v62 = vmax.f32 %v4171_v46, 0.0  ;;  %v4109_v50 = vmul.f32 %v3412_v47, %v8055_v1  ;;  %v3798_v60 = vpop.f32.mrf.mxu1  ;;  %v8058_v1 = vld [vmem:[#allocation23_spill] sm:$0xff] }
 0x175   : > { %v4174_v0 = vadd.f32 %v5842_v9, %v4110_v17  ;;  %v2989_v27 = vmul.f32 %v2925_v35, %v2717_v53  ;;  %v7554_v4 = vpop.eup %6123  ;;  %v5747_v6 = vpop.f32.mrf.mxu0  ;;  %v2709_v13 = vand.u32 2147483648, %v7092_v18  ;;  %v2726_v2 = vmul.f32 %v7329_v37, %v7202_v31  ;;  %v8056_v17 = vld [vmem:[#allocation7_spill] sm:$0xff] }
 0x176   : > { %8054 = vst [vmem:[#allocation22_spill] sm:$0xff] %v7547_v54  ;;  %vm2727_vm3 = vcmp.eq.f32.partialorder %v7202_v31, inf  ;;  %vm2729_vm4 = vcmp.eq.f32.partialorder %v7202_v31, 0.0  ;;  %v5179_v35 = vpack.c.bf16 %v4236_v34, %v4235_v62  ;;  %v4173_v46 = vadd.f32 %v4109_v50, %v3798_v60  ;;  %v5845_v47 = vpop.f32.mrf.mxu1  ;;  %v8059_v50 = vld [vmem:[#allocation5_spill] sm:$0xff] }
 0x177   : > { %v4238_v10 = vmax.f32 %v4174_v0, 0.0  ;;  %v4112_v9 = vmul.f32 %v5747_v6, %v8056_v17  ;;  %v7570_v7 = vpop.eup %6125  ;;  %v3422_v53 = vpop.f32.mrf.mxu0  ;;  %v7573_v25 = vadd.f32 %v2989_v27, %v8058_v1  ;;  %v2710_v37 = vsel %vm2708_vm2, %v2709_v13, %v2707_v11 }
 0x178   : > { %8057 = vst [vmem:[#allocation4_spill] sm:$0xff] %v7570_v7  ;;  %v2728_v44 = vsel %vm2727_vm3, %v7202_v31, %v2726_v2  ;;  %v2730_v54 = vand.u32 2147483648, %v7202_v31  ;;  %v7579_v34 = vpop.eup %6127  ;;  %5180 = vst [vmem:[%s7561_s21] sm:$0xff] %v5179_v35   ;;  %v4237_v62 = vmax.f32 %v4173_v46, 0.0  ;;  %v4111_v60 = vmul.f32 %v3422_v53, %v8059_v50  ;;  %v3808_v6 = vpop.f32.mrf.mxu1  ;;  %v2927_v7 = vld [vmem:[%s6558_s14 + $0x148] sm:$0xff]  ;;  %v8062_v31 = vld [vmem:[#allocation19_spill] sm:$0xff] }
 0x179   : > { %v4176_v0 = vadd.f32 %v5845_v47, %v4112_v9  ;;  %v2988_v17 = vmul.f32 %v2924_v22, %v2710_v37  ;;  %v5750_v23 = vpop.f32.mrf.mxu0  ;;  %v2719_v18 = vmul.f32 %v7292_v43, %v7171_v40  ;;  %vm2720_vm0 = vcmp.eq.f32.partialorder %v7171_v40, inf  ;;  %v8061_v22 = vld [vmem:[#allocation6_spill] sm:$0xff] }
 0x17a   : > { %v2731_v27 = vsel %vm2729_vm4, %v2730_v54, %v2728_v44  ;;  %vm2722_vm5 = vcmp.eq.f32.partialorder %v7171_v40, 0.0  ;;  %v7590_v11 = vpop.eup %6129  ;;  %v5184_v13 = vpack.c.bf16 %v4238_v10, %v4237_v62  ;;  %v4175_v35 = vadd.f32 %v4111_v60, %v3808_v6  ;;  %v5848_v9 = vpop.f32.mrf.mxu1  ;;  %v8063_v62 = vld [vmem:[#allocation8_spill] sm:$0xff] }
 0x17b   : > { %8060 = vst [vmem:[#allocation7_spill] sm:$0xff] %v7590_v11  ;;  %v4240_v2 = vmax.f32 %v4176_v0, 0.0  ;;  %v4114_v46 = vmul.f32 %v5750_v23, %v8061_v22  ;;  %v3432_v47 = vpop.f32.mrf.mxu0  ;;  %v7594_v44 = vadd.f32 %v2988_v17, %v8062_v31  ;;  %v2991_v54 = vmul.f32 %v2927_v7, %v2731_v27  ;;  %v2926_v60 = vld [vmem:[%s6558_s14 + $0x140] sm:$0xff]  ;;  %v8064_v17 = vld [vmem:[#allocation31_spill] sm:$0xff]  ;;  %v8065_v22 = vld [vmem:[#allocation10_spill] sm:$0xff] }
 0x17c   : > { %v2721_v43 = vsel %vm2720_vm0, %v7171_v40, %v2719_v18  ;;  %v2723_v53 = vand.u32 2147483648, %v7171_v40  ;;  %v7598_v1 = vpop.eup %6131  ;;  %5336 = vst [vmem:[%s7561_s21 + $0x8] sm:$0xff] %v5184_v13   ;;  %v4239_v37 = vmax.f32 %v4175_v35, 0.0  ;;  %v4113_v0 = vmul.f32 %v3432_v47, %v8063_v62  ;;  %v3818_v50 = vpop.f32.mrf.mxu1  ;;  %v8066_v62 = vld [vmem:[#allocation26_spill] sm:$0xff] }
 0x17d   : > { %v4178_v10 = vadd.f32 %v5848_v9, %v4114_v46  ;;  %v2740_v23 = vmul.f32 %v7307_v8, %v7191_v3  ;;  %v5753_v6 = vpop.f32.mrf.mxu0  ;;  %v7606_v7 = vadd.f32 %v2991_v54, %v8064_v17  ;;  %vm2741_vm6 = vcmp.eq.f32.partialorder %v7191_v3, inf  ;;  %v8067_v17 = vld [vmem:[#allocation9_spill] sm:$0xff] }
 0x17e   : > { %v2724_v27 = vsel %vm2722_vm5, %v2723_v53, %v2721_v43  ;;  %vm2743_vm7 = vcmp.eq.f32.partialorder %v7191_v3, 0.0  ;;  %v5189_v18 = vpack.c.bf16 %v4240_v2, %v4239_v37  ;;  %v4177_v35 = vadd.f32 %v4113_v0, %v3818_v50  ;;  %v5851_v9 = vpop.f32.mrf.mxu1  ;;  %v2929_v37 = vld [vmem:[%s6558_s14 + $0x158] sm:$0xff]  ;;  %v8068_v0 = vld [vmem:[#allocation28_spill] sm:$0xff] }
 0x17f   : > { %v4242_v13 = vmax.f32 %v4178_v10, 0.0  ;;  %v4116_v46 = vmul.f32 %v5753_v6, %v8065_v22  ;;  %v3442_v8 = vpop.f32.mrf.mxu0  ;;  %v2990_v47 = vmul.f32 %v2926_v60, %v2724_v27  ;;  %v2742_v31 = vsel %vm2741_vm6, %v7191_v3, %v2740_v23 }
 0x180   : > { %v2744_v54 = vand.u32 2147483648, %v7191_v3  ;;  %v2733_v40 = vmul.f32 %v7276_v45, %v8066_v62  ;;  %5337 = vst [vmem:[%s7561_s21 + $0x10] sm:$0xff] %v5189_v18   ;;  %v4241_v43 = vmax.f32 %v4177_v35, 0.0  ;;  %v4115_v11 = vmul.f32 %v3442_v8, %v8067_v17  ;;  %v3828_v2 = vpop.f32.mrf.mxu1  ;;  %v8069_v18 = vld [vmem:[#allocation11_spill] sm:$0xff] }
 0x181   : > { %v4180_v53 = vadd.f32 %v5851_v9, %v4116_v46  ;;  %vm2734_vm8 = vcmp.eq.f32.partialorder %v8066_v62, inf  ;;  %v5756_v10 = vpop.f32.mrf.mxu0  ;;  %v7622_v50 = vadd.f32 %v2990_v47, %v8068_v0  ;;  %vm2736_vm9 = vcmp.eq.f32.partialorder %v8066_v62, 0.0 }
 0x182   : > { %v2745_v60 = vsel %vm2743_vm7, %v2744_v54, %v2742_v31  ;;  %v2735_v23 = vsel %vm2734_vm8, %v8066_v62, %v2733_v40  ;;  %v5194_v45 = vpack.c.bf16 %v4242_v13, %v4241_v43  ;;  %v4179_v27 = vadd.f32 %v4115_v11, %v3828_v2  ;;  %v5854_v22 = vpop.f32.mrf.mxu1  ;;  %v8070_v54 = vld [vmem:[#allocation12_spill] sm:$0xff]  ;;  %v2928_v11 = vld [vmem:[%s6558_s14 + $0x150] sm:$0xff] }
 0x183   : > { %v4244_v6 = vmax.f32 %v4180_v53, 0.0  ;;  %v4118_v35 = vmul.f32 %v5756_v10, %v8069_v18  ;;  %v3452_v46 = vpop.f32.mrf.mxu0  ;;  %v2993_v9 = vmul.f32 %v2929_v37, %v2745_v60  ;;  %v2737_v8 = vand.u32 2147483648, %v8066_v62  ;;  %v8071_v53 = vld [vmem:[#allocation29_spill] sm:$0xff] }
 0x184   : > { %v2754_v3 = vmul.f32 %v7385_v5, %v7266_v61  ;;  %vm2755_vm10 = vcmp.eq.f32.partialorder %v7266_v61, inf  ;;  %5338 = vst [vmem:[%s7561_s21 + $0x18] sm:$0xff] %v5194_v45   ;;  %v4243_v47 = vmax.f32 %v4179_v27, 0.0  ;;  %v4117_v13 = vmul.f32 %v3452_v46, %v8070_v54  ;;  %v3838_v40 = vpop.f32.mrf.mxu1  ;;  %v2931_v10 = vld [vmem:[%s6558_s14 + $0x168] sm:$0xff] }
 0x185   : > { %v4182_v31 = vadd.f32 %v5854_v22, %v4118_v35  ;;  %vm2757_vm11 = vcmp.eq.f32.partialorder %v7266_v61, 0.0  ;;  %v5759_v43 = vpop.f32.mrf.mxu0  ;;  %v7638_v17 = vadd.f32 %v2993_v9, %v8071_v53  ;;  %v2738_v2 = vsel %vm2736_vm9, %v2737_v8, %v2735_v23  ;;  %v8072_v27 = vld [vmem:[#allocation13_spill] sm:$0xff] }
 0x186   : > { %v2756_v5 = vsel %vm2755_vm10, %v7266_v61, %v2754_v3  ;;  %v2758_v37 = vand.u32 2147483648, %v7266_v61  ;;  %v5199_v0 = vpack.c.bf16 %v4244_v6, %v4243_v47  ;;  %v4181_v45 = vadd.f32 %v4117_v13, %v3838_v40  ;;  %v5857_v35 = vpop.f32.mrf.mxu1  ;;  %v8073_v61 = vld [vmem:[#allocation14_spill] sm:$0xff] }
 0x187   : > { %v4246_v60 = vmax.f32 %v4182_v31, 0.0  ;;  %v4120_v18 = vmul.f32 %v5759_v43, %v8072_v27  ;;  %v3462_v22 = vpop.f32.mrf.mxu0  ;;  %v2992_v46 = vmul.f32 %v2928_v11, %v2738_v2  ;;  %v2747_v9 = vmul.f32 %v7353_v19, %v7235_v33  ;;  %v8074_v31 = vld [vmem:[#allocation25_spill] sm:$0xff]  ;;  %v2930_v11 = vld [vmem:[%s6558_s14 + $0x160] sm:$0xff] }
 0x188   : > { %v2759_v54 = vsel %vm2757_vm11, %v2758_v37, %v2756_v5  ;;  %vm2748_vm12 = vcmp.eq.f32.partialorder %v7235_v33, inf  ;;  %5339 = vst [vmem:[%s7561_s21 + $0x20] sm:$0xff] %v5199_v0   ;;  %v4245_v62 = vmax.f32 %v4181_v45, 0.0  ;;  %v4119_v8 = vmul.f32 %v3462_v22, %v8073_v61  ;;  %v3848_v6 = vpop.f32.mrf.mxu1  ;;  %v8075_v5 = vld [vmem:[#allocation15_spill] sm:$0xff]  ;;  %v8077_v61 = vld [vmem:[#allocation33_spill] sm:$0xff] }
 0x189   : > { %v4184_v23 = vadd.f32 %v5857_v35, %v4120_v18  ;;  %v2995_v3 = vmul.f32 %v2931_v10, %v2759_v54  ;;  %v5762_v47 = vpop.f32.mrf.mxu0  ;;  %v7652_v13 = vadd.f32 %v2992_v46, %v8074_v31  ;;  %v2749_v40 = vsel %vm2748_vm12, %v7235_v33, %v2747_v9 }
 0x18a   : > { %vm2750_vm13 = vcmp.eq.f32.partialorder %v7235_v33, 0.0  ;;  %v2751_v19 = vand.u32 2147483648, %v7235_v33  ;;  %v5204_v43 = vpack.c.bf16 %v4246_v60, %v4245_v62  ;;  %v4183_v2 = vadd.f32 %v4119_v8, %v3848_v6  ;;  %v5860_v0 = vpop.f32.mrf.mxu1  ;;  %v8076_v60 = vld [vmem:[#allocation16_spill] sm:$0xff] }
 0x18b   : > { %v4248_v53 = vmax.f32 %v4184_v23, 0.0  ;;  %v4122_v37 = vmul.f32 %v5762_v47, %v8075_v5  ;;  %v3472_v10 = vpop.f32.mrf.mxu0  ;;  %v7660_v45 = vadd.f32 %v2995_v3, %v7258_v12  ;;  %v2768_v18 = vmul.f32 %v7376_v41, %v7250_v38  ;;  %v2933_v23 = vld [vmem:[%s6558_s14 + $0x178] sm:$0xff]  ;;  %v8078_v47 = vld [vmem:[#allocation17_spill] sm:$0xff] }
 0x18c   : > { %v2752_v27 = vsel %vm2750_vm13, %v2751_v19, %v2749_v40  ;;  %vm2769_vm14 = vcmp.eq.f32.partialorder %v7250_v38, inf  ;;  %5340 = vst [vmem:[%s7561_s21 + $0x28] sm:$0xff] %v5204_v43   ;;  %v4247_v33 = vmax.f32 %v4183_v2, 0.0  ;;  %v4121_v22 = vmul.f32 %v3472_v10, %v8076_v60  ;;  %v3858_v46 = vpop.f32.mrf.mxu1 }
 0x18d   : > { %v4186_v35 = vadd.f32 %v5860_v0, %v4122_v37  ;;  %v2994_v54 = vmul.f32 %v2930_v11, %v2752_v27  ;;  %v5765_v9 = vpop.f32.mrf.mxu0  ;;  %v2770_v62 = vsel %vm2769_vm14, %v7250_v38, %v2768_v18  ;;  %vm2771_vm15 = vcmp.eq.f32.partialorder %v7250_v38, 0.0  ;;  %v8079_v11 = vld [vmem:[#allocation36_spill] sm:$0xff] }
 0x18e   : > { %v2772_v12 = vand.u32 2147483648, %v7250_v38  ;;  %v2761_v41 = vmul.f32 %v7338_v15, %v8077_v61  ;;  %v5209_v8 = vpack.c.bf16 %v4248_v53, %v4247_v33  ;;  %v4185_v3 = vadd.f32 %v4121_v22, %v3858_v46  ;;  %v5863_v40 = vpop.f32.mrf.mxu1  ;;  %v8080_v15 = vld [vmem:[#allocation18_spill] sm:$0xff] }
 0x18f   : > { %v4250_v6 = vmax.f32 %v4186_v35, 0.0  ;;  %v4124_v31 = vmul.f32 %v5765_v9, %v8078_v47  ;;  %v3482_v19 = vpop.f32.mrf.mxu0  ;;  %v7675_v43 = vadd.f32 %v2994_v54, %v8079_v11  ;;  %vm2762_vm1 = vcmp.eq.f32.partialorder %v8077_v61, inf  ;;  %v2932_v33 = vld [vmem:[%s6558_s14 + $0x170] sm:$0xff]  ;;  %v8081_v54 = vld [vmem:[#allocation20_spill] sm:$0xff]  ;;  %v8083_v47 = vld [vmem:[#allocation21_spill] sm:$0xff] }
 0x190   : > { %v2773_v2 = vsel %vm2771_vm15, %v2772_v12, %v2770_v62  ;;  %vm2764_vm2 = vcmp.eq.f32.partialorder %v8077_v61, 0.0  ;;  %5341 = vst [vmem:[%s7561_s21 + $0x30] sm:$0xff] %v5209_v8   ;;  %v4249_v38 = vmax.f32 %v4185_v3, 0.0  ;;  %v4123_v53 = vmul.f32 %v3482_v19, %v8080_v15  ;;  %v3868_v37 = vpop.f32.mrf.mxu1 }
 0x191   : > { %v4188_v5 = vadd.f32 %v5863_v40, %v4124_v31  ;;  %v2997_v0 = vmul.f32 %v2933_v23, %v2773_v2  ;;  %v5768_v10 = vpop.f32.mrf.mxu0  ;;  %v2763_v27 = vsel %vm2762_vm1, %v8077_v61, %v2761_v41  ;;  %v2765_v18 = vand.u32 2147483648, %v8077_v61  ;;  %v8082_v23 = vld [vmem:[#allocation37_spill] sm:$0xff] }
 0x192   : > { %v2782_v35 = vmul.f32 %v7453_v32, %v7324_v26  ;;  %vm2783_vm3 = vcmp.eq.f32.partialorder %v7324_v26, inf  ;;  %v5214_v60 = vpack.c.bf16 %v4250_v6, %v4249_v38  ;;  %v4187_v46 = vadd.f32 %v4123_v53, %v3868_v37  ;;  %v5866_v62 = vpop.f32.mrf.mxu1  ;;  %v2935_v38 = vld [vmem:[%s6558_s14 + $0x188] sm:$0xff]  ;;  %v8084_v37 = vld [vmem:[#allocation24_spill] sm:$0xff] }
 0x193   : > { %v4252_v22 = vmax.f32 %v4188_v5, 0.0  ;;  %v4126_v9 = vmul.f32 %v5768_v10, %v8081_v54  ;;  %v3492_v12 = vpop.f32.mrf.mxu0  ;;  %v7689_v8 = vadd.f32 %v2997_v0, %v8082_v23  ;;  %v2766_v41 = vsel %vm2764_vm2, %v2765_v18, %v2763_v27  ;;  %v8085_v18 = vld [vmem:[#allocation32_spill] sm:$0xff]  ;;  %v8086_v54 = vld [vmem:[#allocation27_spill] sm:$0xff] }
 0x194   : > { %v2784_v3 = vsel %vm2783_vm3, %v7324_v26, %v2782_v35  ;;  %vm2785_vm4 = vcmp.eq.f32.partialorder %v7324_v26, 0.0  ;;  %5342 = vst [vmem:[%s7561_s21 + $0x38] sm:$0xff] %v5214_v60   ;;  %v4251_v32 = vmax.f32 %v4187_v46, 0.0  ;;  %v4125_v31 = vmul.f32 %v3492_v12, %v8083_v47  ;;  %v3878_v40 = vpop.f32.mrf.mxu1  ;;  %v2934_v23 = vld [vmem:[%s6558_s14 + $0x180] sm:$0xff] }
 0x195   : > { %v4190_v6 = vadd.f32 %v5866_v62, %v4126_v9  ;;  %v2996_v19 = vmul.f32 %v2932_v33, %v2766_v41  ;;  %v5771_v11 = vpop.f32.mrf.mxu0  ;;  %v2786_v2 = vand.u32 2147483648, %v7324_v26  ;;  %v2775_v61 = vmul.f32 %v7414_v48, %v7298_v36 }
 0x196   : > { %vm2776_vm0 = vcmp.eq.f32.partialorder %v7298_v36, inf  ;;  %vm2778_vm5 = vcmp.eq.f32.partialorder %v7298_v36, 0.0  ;;  %v5219_v5 = vpack.c.bf16 %v4252_v22, %v4251_v32  ;;  %v4189_v53 = vadd.f32 %v4125_v31, %v3878_v40  ;;  %v5869_v10 = vpop.f32.mrf.mxu1  ;;  %v8087_v31 = vld [vmem:[#allocation30_spill] sm:$0xff] }
 0x197   : > { %v4254_v15 = vmax.f32 %v4190_v6, 0.0  ;;  %v4128_v0 = vmul.f32 %v5771_v11, %v8084_v37  ;;  %v3502_v27 = vpop.f32.mrf.mxu0  ;;  %v7705_v33 = vadd.f32 %v2996_v19, %v8085_v18  ;;  %v2787_v35 = vsel %vm2785_vm4, %v2786_v2, %v2784_v3  ;;  %v8088_v2 = vld [vmem:[#allocation45_spill] sm:$0xff]  ;;  %v8089_v37 = vld [vmem:[#allocation34_spill] sm:$0xff] }
 0x198   : > { %v2777_v48 = vsel %vm2776_vm0, %v7298_v36, %v2775_v61  ;;  %v2779_v60 = vand.u32 2147483648, %v7298_v36  ;;  %5343 = vst [vmem:[%s7561_s21 + $0x40] sm:$0xff] %v5219_v5   ;;  %v4253_v46 = vmax.f32 %v4189_v53, 0.0  ;;  %v4127_v9 = vmul.f32 %v3502_v27, %v8086_v54  ;;  %v3888_v62 = vpop.f32.mrf.mxu1  ;;  %v8090_v27 = vld [vmem:[#allocation40_spill] sm:$0xff] }
 0x199   : > { %v4192_v22 = vadd.f32 %v5869_v10, %v4128_v0  ;;  %v2999_v12 = vmul.f32 %v2935_v38, %v2787_v35  ;;  %v5774_v41 = vpop.f32.mrf.mxu0  ;;  %v2796_v26 = vmul.f32 %v7429_v39, %v7313_v51  ;;  %vm2797_vm6 = vcmp.eq.f32.partialorder %v7313_v51, inf  ;;  %v2937_v10 = vld [vmem:[%s6558_s14 + $0x198] sm:$0xff] }
 0x19a   : > { %v2780_v32 = vsel %vm2778_vm5, %v2779_v60, %v2777_v48  ;;  %vm2799_vm7 = vcmp.eq.f32.partialorder %v7313_v51, 0.0  ;;  %v5224_v3 = vpack.c.bf16 %v4254_v15, %v4253_v46  ;;  %v4191_v47 = vadd.f32 %v4127_v9, %v3888_v62  ;;  %v5872_v19 = vpop.f32.mrf.mxu1  ;;  %v8091_v48 = vld [vmem:[#allocation42_spill] sm:$0xff]  ;;  %v8092_v62 = vld [vmem:[#allocation35_spill] sm:$0xff] }
 0x19b   : > { %v4256_v6 = vmax.f32 %v4192_v22, 0.0  ;;  %v4130_v40 = vmul.f32 %v5774_v41, %v8087_v31  ;;  %v3512_v11 = vpop.f32.mrf.mxu0  ;;  %v7722_v38 = vadd.f32 %v2999_v12, %v8088_v2  ;;  %v2998_v36 = vmul.f32 %v2934_v23, %v2780_v32  ;;  %v8093_v31 = vld [vmem:[#allocation38_spill] sm:$0xff]  ;;  %v8094_v2 = vld [vmem:[#allocation43_spill] sm:$0xff] }
 0x19c   : > { %v2798_v61 = vsel %vm2797_vm6, %v7313_v51, %v2796_v26  ;;  %v2800_v39 = vand.u32 2147483648, %v7313_v51  ;;  %5344 = vst [vmem:[%s7561_s21 + $0x48] sm:$0xff] %v5224_v3   ;;  %v4255_v5 = vmax.f32 %v4191_v47, 0.0  ;;  %v4129_v0 = vmul.f32 %v3512_v11, %v8089_v37  ;;  %v3898_v15 = vpop.f32.mrf.mxu1  ;;  %v8095_v37 = vld [vmem:[#allocation41_spill] sm:$0xff] }
 0x19d   : > { %v4194_v53 = vadd.f32 %v5872_v19, %v4130_v40  ;;  %v2789_v18 = vmul.f32 %v7398_v29, %v8090_v27  ;;  %v5777_v35 = vpop.f32.mrf.mxu0  ;;  %v7732_v60 = vadd.f32 %v2998_v36, %v8091_v48  ;;  %vm2790_vm8 = vcmp.eq.f32.partialorder %v8090_v27, inf  ;;  %v2936_v19 = vld [vmem:[%s6558_s14 + $0x190] sm:$0xff] }
 0x19e   : > { %v2801_v46 = vsel %vm2799_vm7, %v2800_v39, %v2798_v61  ;;  %vm2792_vm9 = vcmp.eq.f32.partialorder %v8090_v27, 0.0  ;;  %v5229_v22 = vpack.c.bf16 %v4256_v6, %v4255_v5  ;;  %v4193_v9 = vadd.f32 %v4129_v0, %v3898_v15  ;;  %v5875_v23 = vpop.f32.mrf.mxu1 }
 0x19f   : > { %v4258_v54 = vmax.f32 %v4194_v53, 0.0  ;;  %v4132_v12 = vmul.f32 %v5777_v35, %v8092_v62  ;;  %v3522_v29 = vpop.f32.mrf.mxu0  ;;  %v3001_v41 = vmul.f32 %v2937_v10, %v2801_v46  ;;  %v2791_v32 = vsel %vm2790_vm8, %v8090_v27, %v2789_v18  ;;  %v2939_v62 = vld [vmem:[%s6558_s14 + $0x1a8] sm:$0xff] }
 0x1a0   : > { %v2793_v26 = vand.u32 2147483648, %v8090_v27  ;;  %v2810_v51 = vmul.f32 %v7507_v58, %v7388_v28  ;;  %5345 = vst [vmem:[%s7561_s21 + $0x50] sm:$0xff] %v5229_v22   ;;  %v4257_v3 = vmax.f32 %v4193_v9, 0.0  ;;  %v4131_v40 = vmul.f32 %v3522_v29, %v8093_v31  ;;  %v3908_v6 = vpop.f32.mrf.mxu1  ;;  %v8096_v22 = vld [vmem:[#allocation44_spill] sm:$0xff] }
 0x1a1   : > { %v4196_v47 = vadd.f32 %v5875_v23, %v4132_v12  ;;  %vm2811_vm10 = vcmp.eq.f32.partialorder %v7388_v28, inf  ;;  %v5780_v11 = vpop.f32.mrf.mxu0  ;;  %v7748_v36 = vadd.f32 %v3001_v41, %v8094_v2  ;;  %vm2813_vm11 = vcmp.eq.f32.partialorder %v7388_v28, 0.0  ;;  %v8097_v23 = vld [vmem:[#allocation39_spill] sm:$0xff]  ;;  %v8098_v31 = vld [vmem:[#allocation48_spill] sm:$0xff] }
 0x1a2   : > { %v2794_v61 = vsel %vm2792_vm9, %v2793_v26, %v2791_v32  ;;  %v2812_v39 = vsel %vm2811_vm10, %v7388_v28, %v2810_v51  ;;  %v5234_v58 = vpack.c.bf16 %v4258_v54, %v4257_v3  ;;  %v4195_v53 = vadd.f32 %v4131_v40, %v3908_v6  ;;  %v5878_v15 = vpop.f32.mrf.mxu1  ;;  %v2938_v26 = vld [vmem:[%s6558_s14 + $0x1a0] sm:$0xff] }
 0x1a3   : > { %v4260_v5 = vmax.f32 %v4196_v47, 0.0  ;;  %v4134_v0 = vmul.f32 %v5780_v11, %v8095_v37  ;;  %v3532_v10 = vpop.f32.mrf.mxu0  ;;  %v3000_v18 = vmul.f32 %v2936_v19, %v2794_v61  ;;  %v2814_v35 = vand.u32 2147483648, %v7388_v28 }
 0x1a4   : > { %v2803_v27 = vmul.f32 %v7475_v14, %v7357_v49  ;;  %vm2804_vm12 = vcmp.eq.f32.partialorder %v7357_v49, inf  ;;  %5346 = vst [vmem:[%s7561_s21 + $0x58] sm:$0xff] %v5234_v58   ;;  %v4259_v48 = vmax.f32 %v4195_v53, 0.0  ;;  %v4133_v54 = vmul.f32 %v3532_v10, %v8096_v22  ;;  %v3918_v9 = vpop.f32.mrf.mxu1  ;;  %v2941_v10 = vld [vmem:[%s6558_s14 + $0x1b8] sm:$0xff] }
 0x1a5   : > { %v4198_v46 = vadd.f32 %v5878_v15, %v4134_v0  ;;  %vm2806_vm13 = vcmp.eq.f32.partialorder %v7357_v49, 0.0  ;;  %v5783_v12 = vpop.f32.mrf.mxu0  ;;  %v7764_v29 = vadd.f32 %v3000_v18, %v8097_v23  ;;  %v2815_v41 = vsel %vm2813_vm11, %v2814_v35, %v2812_v39 }
 0x1a6   : > { %v2805_v14 = vsel %vm2804_vm12, %v7357_v49, %v2803_v27  ;;  %v2807_v32 = vand.u32 2147483648, %v7357_v49  ;;  %v5239_v51 = vpack.c.bf16 %v4260_v5, %v4259_v48  ;;  %v4197_v47 = vadd.f32 %v4133_v54, %v3918_v9  ;;  %v5881_v6 = vpop.f32.mrf.mxu1  ;;  %v8099_v49 = vld [vmem:[#allocation49_spill] sm:$0xff]  ;;  %v8100_v48 = vld [vmem:[#allocation52_spill] sm:$0xff]  ;;  %v8101_v9 = vld [vmem:[#allocation50_spill] sm:$0xff] }
 0x1a7   : > { %v4262_v3 = vmax.f32 %v4198_v46, 0.0  ;;  %v4136_v40 = vmul.f32 %v5783_v12, %v8098_v31  ;;  %v3542_v19 = vpop.f32.mrf.mxu0  ;;  %v3003_v11 = vmul.f32 %v2939_v62, %v2815_v41  ;;  %v2824_v61 = vmul.f32 %v7498_v21, %v7372_v52  ;;  %v8102_v12 = vld [vmem:[#allocation47_spill] sm:$0xff]  ;;  %v2940_v31 = vld [vmem:[%s6558_s14 + $0x1b0] sm:$0xff] }
 0x1a8   : > { %v2808_v2 = vsel %vm2806_vm13, %v2807_v32, %v2805_v14  ;;  %vm2825_vm14 = vcmp.eq.f32.partialorder %v7372_v52, inf  ;;  %5347 = vst [vmem:[%s7561_s21 + $0x60] sm:$0xff] %v5239_v51   ;;  %v4261_v28 = vmax.f32 %v4197_v47, 0.0  ;;  %v4135_v58 = vmul.f32 %v3542_v19, %v8099_v49  ;;  %v3928_v5 = vpop.f32.mrf.mxu1 }
 0x1a9   : > { %v4200_v39 = vadd.f32 %v5881_v6, %v4136_v40  ;;  %v3002_v53 = vmul.f32 %v2938_v26, %v2808_v2  ;;  %v5786_v37 = vpop.f32.mrf.mxu0  ;;  %v7778_v0 = vadd.f32 %v3003_v11, %v7380_v63  ;;  %v2826_v15 = vsel %vm2825_vm14, %v7372_v52, %v2824_v61  ;;  %v8103_v61 = vld [vmem:[#allocation51_spill] sm:$0xff] }
 0x1aa   : > { %vm2827_vm15 = vcmp.eq.f32.partialorder %v7372_v52, 0.0  ;;  %v2828_v21 = vand.u32 2147483648, %v7372_v52  ;;  %v5244_v18 = vpack.c.bf16 %v4262_v3, %v4261_v28  ;;  %v4199_v27 = vadd.f32 %v4135_v58, %v3928_v5  ;;  %v5884_v22 = vpop.f32.mrf.mxu1 }
 0x1ab   : > { %v4264_v35 = vmax.f32 %v4200_v39, 0.0  ;;  %v4138_v46 = vmul.f32 %v5786_v37, %v8100_v48  ;;  %v3552_v54 = vpop.f32.mrf.mxu0  ;;  %v7786_v62 = vadd.f32 %v3002_v53, %v8101_v9  ;;  %v2817_v23 = vmul.f32 %v7460_v30, %v8102_v12  ;;  %v8104_v48 = vld [vmem:[#allocation64_spill] sm:$0xff] }
 0x1ac   : > { %v2829_v63 = vsel %vm2827_vm15, %v2828_v21, %v2826_v15  ;;  %vm2818_vm1 = vcmp.eq.f32.partialorder %v8102_v12, inf  ;;  %5348 = vst [vmem:[%s7561_s21 + $0x68] sm:$0xff] %v5244_v18   ;;  %v4263_v52 = vmax.f32 %v4199_v27, 0.0  ;;  %v4137_v14 = vmul.f32 %v3552_v54, %v7411_v16  ;;  %v3938_v32 = vpop.f32.mrf.mxu1  ;;  %v2943_v21 = vld [vmem:[%s6558_s14 + $0x1c8] sm:$0xff]  ;;  %v8105_v54 = vld [vmem:[#allocation46_spill] sm:$0xff] }
 0x1ad   : > { %v4202_v41 = vadd.f32 %v5884_v22, %v4138_v46  ;;  %v3005_v26 = vmul.f32 %v2941_v10, %v2829_v63  ;;  %v5789_v51 = vpop.f32.mrf.mxu0  ;;  %v2819_v3 = vsel %vm2818_vm1, %v8102_v12, %v2817_v23  ;;  %vm2820_vm2 = vcmp.eq.f32.partialorder %v8102_v12, 0.0 }
 0x1ae   : > { %v2821_v47 = vand.u32 2147483648, %v8102_v12  ;;  %v2838_v30 = vmul.f32 %v7554_v4, %v7446_v24  ;;  %v5249_v40 = vpack.c.bf16 %v4264_v35, %v4263_v52  ;;  %v4201_v19 = vadd.f32 %v4137_v14, %v3938_v32  ;;  %v5887_v16 = vpop.f32.mrf.mxu1 }
 0x1af   : > { %v4266_v6 = vmax.f32 %v4202_v41, 0.0  ;;  %v4140_v11 = vmul.f32 %v5789_v51, %v7438_v57  ;;  %v3562_v2 = vpop.f32.mrf.mxu0  ;;  %v7801_v28 = vadd.f32 %v3005_v26, %v8103_v61  ;;  %vm2839_vm3 = vcmp.eq.f32.partialorder %v7446_v24, inf  ;;  %v2942_v51 = vld [vmem:[%s6558_s14 + $0x1c0] sm:$0xff] }
 0x1b0   : > { %v2822_v39 = vsel %vm2820_vm2, %v2821_v47, %v2819_v3  ;;  %vm2841_vm4 = vcmp.eq.f32.partialorder %v7446_v24, 0.0  ;;  %5349 = vst [vmem:[%s7561_s21 + $0x70] sm:$0xff] %v5249_v40   ;;  %v4265_v49 = vmax.f32 %v4201_v19, 0.0  ;;  %v4139_v4 = vmul.f32 %v3562_v2, %v7466_v20  ;;  %v3948_v5 = vpop.f32.mrf.mxu1  ;;  %v8106_v3 = vld [vmem:[#allocation57_spill] sm:$0xff] }
 0x1b1   : > { %v4204_v58 = vadd.f32 %v5887_v16, %v4140_v11  ;;  %v3004_v53 = vmul.f32 %v2940_v31, %v2822_v39  ;;  %v5792_v37 = vpop.f32.mrf.mxu0  ;;  %v2840_v57 = vsel %vm2839_vm3, %v7446_v24, %v2838_v30  ;;  %v2842_v15 = vand.u32 2147483648, %v7446_v24  ;;  %v8107_v40 = vld [vmem:[#allocation69_spill] sm:$0xff]  ;;  %v8108_v11 = vld [vmem:[#allocation59_spill] sm:$0xff] }
 0x1b2   : > { %v2831_v10 = vmul.f32 %v7535_v42, %v7420_v55  ;;  %vm2832_vm0 = vcmp.eq.f32.partialorder %v7420_v55, inf  ;;  %v5254_v18 = vpack.c.bf16 %v4266_v6, %v4265_v49  ;;  %v4203_v27 = vadd.f32 %v4139_v4, %v3948_v5  ;;  %v5890_v46 = vpop.f32.mrf.mxu1 }
 0x1b3   : > { %v4268_v35 = vmax.f32 %v4204_v58, 0.0  ;;  %v4142_v20 = vmul.f32 %v5792_v37, %v8104_v48  ;;  %v3572_v22 = vpop.f32.mrf.mxu0  ;;  %v7815_v9 = vadd.f32 %v3004_v53, %v8105_v54  ;;  %v2843_v63 = vsel %vm2841_vm4, %v2842_v15, %v2840_v57  ;;  %v8109_v58 = vld [vmem:[#allocation22_spill] sm:$0xff]  ;;  %v2945_v37 = vld [vmem:[%s6558_s14 + $0x1d8] sm:$0xff] }
 0x1b4   : > { %v2833_v12 = vsel %vm2832_vm0, %v7420_v55, %v2831_v10  ;;  %vm2834_vm5 = vcmp.eq.f32.partialorder %v7420_v55, 0.0  ;;  %5350 = vst [vmem:[%s7561_s21 + $0x78] sm:$0xff] %v5254_v18   ;;  %v4267_v42 = vmax.f32 %v4203_v27, 0.0  ;;  %v4141_v52 = vmul.f32 %v3572_v22, %v7514_v59  ;;  %v3958_v41 = vpop.f32.mrf.mxu1  ;;  %v8112_v22 = vld [vmem:[#allocation55_spill] sm:$0xff] }
 0x1b5   : > { %v4206_v23 = vadd.f32 %v5890_v46, %v4142_v20  ;;  %v3007_v14 = vmul.f32 %v2943_v21, %v2843_v63  ;;  %v5795_v32 = vpop.f32.mrf.mxu0  ;;  %v2835_v26 = vand.u32 2147483648, %v7420_v55  ;;  %v2852_v24 = vmul.f32 %v7544_v56, %v8106_v3  ;;  %v8110_v21 = vld [vmem:[#allocation54_spill] sm:$0xff]  ;;  %v8111_v55 = vld [vmem:[#allocation68_spill] sm:$0xff] }
 0x1b6   : > { %vm2853_vm6 = vcmp.eq.f32.partialorder %v8106_v3, inf  ;;  %vm2855_vm7 = vcmp.eq.f32.partialorder %v8106_v3, 0.0  ;;  %v5259_v47 = vpack.c.bf16 %v4268_v35, %v4267_v42  ;;  %v4205_v30 = vadd.f32 %v4141_v52, %v3958_v41  ;;  %v5893_v6 = vpop.f32.mrf.mxu1 }
 0x1b7   : > { %v4270_v31 = vmax.f32 %v4206_v23, 0.0  ;;  %v4144_v59 = vmul.f32 %v5795_v32, %v8107_v40  ;;  %v3582_v19 = vpop.f32.mrf.mxu0  ;;  %v7831_v16 = vadd.f32 %v3007_v14, %v8108_v11  ;;  %v2836_v2 = vsel %vm2834_vm5, %v2835_v26, %v2833_v12  ;;  %v2944_v32 = vld [vmem:[%s6558_s14 + $0x1d0] sm:$0xff]  ;;  %v8113_v26 = vld [vmem:[#allocation67_spill] sm:$0xff] }
 0x1b8   : > { %v2854_v56 = vsel %vm2853_vm6, %v8106_v3, %v2852_v24  ;;  %v2856_v61 = vand.u32 2147483648, %v8106_v3  ;;  %5351 = vst [vmem:[%s7561_s21 + $0x80] sm:$0xff] %v5259_v47   ;;  %v4269_v39 = vmax.f32 %v4205_v30, 0.0  ;;  %v4143_v4 = vmul.f32 %v3582_v19, %v8109_v58  ;;  %v3968_v5 = vpop.f32.mrf.mxu1  ;;  %v8114_v3 = vld [vmem:[#allocation56_spill] sm:$0xff] }
 0x1b9   : > { %v4208_v49 = vadd.f32 %v5893_v6, %v4144_v59  ;;  %v3006_v53 = vmul.f32 %v2942_v51, %v2836_v2  ;;  %v5798_v57 = vpop.f32.mrf.mxu0  ;;  %v2845_v10 = vmul.f32 %v8111_v55, %v8110_v21  ;;  %vm2846_vm8 = vcmp.eq.f32.partialorder %v8110_v21, inf  ;;  %v8115_v2 = vld [vmem:[#allocation62_spill] sm:$0xff] }
 0x1ba   : > { %v2857_v15 = vsel %vm2855_vm7, %v2856_v61, %v2854_v56  ;;  %vm2848_vm9 = vcmp.eq.f32.partialorder %v8110_v21, 0.0  ;;  %v5264_v18 = vpack.c.bf16 %v4270_v31, %v4269_v39  ;;  %v4207_v27 = vadd.f32 %v4143_v4, %v3968_v5  ;;  %v5896_v20 = vpop.f32.mrf.mxu1  ;;  %v2947_v4 = vld [vmem:[%s6558_s14 + $0x1e8] sm:$0xff] }
 0x1bb   : > { %v4272_v35 = vmax.f32 %v4208_v49, 0.0  ;;  %v4146_v48 = vmul.f32 %v5798_v57, %v7573_v25  ;;  %v3592_v46 = vpop.f32.mrf.mxu0  ;;  %v7848_v54 = vadd.f32 %v3006_v53, %v8112_v22  ;;  %v3009_v63 = vmul.f32 %v2945_v37, %v2857_v15  ;;  %v8116_v5 = vld [vmem:[#allocation53_spill] sm:$0xff] }
 0x1bc   : > { %v2847_v12 = vsel %vm2846_vm8, %v8110_v21, %v2845_v10  ;;  %v2849_v42 = vand.u32 2147483648, %v8110_v21  ;;  %5352 = vst [vmem:[%s7561_s21 + $0x88] sm:$0xff] %v5264_v18   ;;  %v4271_v23 = vmax.f32 %v4207_v27, 0.0  ;;  %v4145_v41 = vmul.f32 %v3592_v46, %v7594_v44  ;;  %v3978_v14 = vpop.f32.mrf.mxu1  ;;  %v8117_v27 = vld [vmem:[#allocation65_spill] sm:$0xff] }
 0x1bd   : > { %v4210_v52 = vadd.f32 %v5896_v20, %v4146_v48  ;;  %v2866_v25 = vmul.f32 %v7598_v1, %v8113_v26  ;;  %v5801_v51 = vpop.f32.mrf.mxu0  ;;  %v7858_v24 = vadd.f32 %v3009_v63, %v8114_v3  ;;  %vm2867_vm10 = vcmp.eq.f32.partialorder %v8113_v26, inf  ;;  %v8118_v48 = vld [vmem:[#allocation7_spill] sm:$0xff] }
 0x1be   : > { %v2850_v47 = vsel %vm2848_vm9, %v2849_v42, %v2847_v12  ;;  %vm2869_vm11 = vcmp.eq.f32.partialorder %v8113_v26, 0.0  ;;  %v5269_v31 = vpack.c.bf16 %v4272_v35, %v4271_v23  ;;  %v4209_v30 = vadd.f32 %v4145_v41, %v3978_v14  ;;  %v5899_v59 = vpop.f32.mrf.mxu1  ;;  %v2946_v42 = vld [vmem:[%s6558_s14 + $0x1e0] sm:$0xff]  ;;  %v8119_v23 = vld [vmem:[#allocation66_spill] sm:$0xff] }
 0x1bf   : > { %v4274_v44 = vmax.f32 %v4210_v52, 0.0  ;;  %v4148_v40 = vmul.f32 %v5801_v51, %v7606_v7  ;;  %v3602_v1 = vpop.f32.mrf.mxu0  ;;  %v3008_v6 = vmul.f32 %v2944_v32, %v2850_v47  ;;  %v2868_v19 = vsel %vm2867_vm10, %v8113_v26, %v2866_v25 }
 0x1c0   : > { %v2870_v11 = vand.u32 2147483648, %v8113_v26  ;;  %v2859_v56 = vmul.f32 %v7579_v34, %v8115_v2  ;;  %5353 = vst [vmem:[%s7561_s21 + $0x90] sm:$0xff] %v5269_v31   ;;  %v4273_v61 = vmax.f32 %v4209_v30, 0.0  ;;  %v4147_v49 = vmul.f32 %v3602_v1, %v7622_v50  ;;  %v3988_v58 = vpop.f32.mrf.mxu1  ;;  %v2949_v26 = vld [vmem:[%s6558_s14 + $0x1f8] sm:$0xff] }
 0x1c1   : > { %v4212_v39 = vadd.f32 %v5899_v59, %v4148_v40  ;;  %vm2860_vm12 = vcmp.eq.f32.partialorder %v8115_v2, inf  ;;  %v5804_v7 = vpop.f32.mrf.mxu0  ;;  %v7874_v53 = vadd.f32 %v3008_v6, %v8116_v5  ;;  %vm2862_vm13 = vcmp.eq.f32.partialorder %v8115_v2, 0.0  ;;  %v8120_v40 = vld [vmem:[#allocation60_spill] sm:$0xff] }
 0x1c2   : > { %v2871_v37 = vsel %vm2869_vm11, %v2870_v11, %v2868_v19  ;;  %v2861_v57 = vsel %vm2860_vm12, %v8115_v2, %v2859_v56  ;;  %v5274_v34 = vpack.c.bf16 %v4274_v44, %v4273_v61  ;;  %v4211_v50 = vadd.f32 %v4147_v49, %v3988_v58  ;;  %v5902_v55 = vpop.f32.mrf.mxu1  ;;  %v8121_v59 = vld [vmem:[#allocation4_spill] sm:$0xff]  ;;  %v8122_v61 = vld [vmem:[#allocation63_spill] sm:$0xff]  ;;  %v8123_v58 = vld [vmem:[#allocation61_spill] sm:$0xff] }
 0x1c3   : > { %v4276_v15 = vmax.f32 %v4212_v39, 0.0  ;;  %v4150_v21 = vmul.f32 %v5804_v7, %v7638_v17  ;;  %v3612_v10 = vpop.f32.mrf.mxu0  ;;  %v3011_v18 = vmul.f32 %v2947_v4, %v2871_v37  ;;  %v2863_v35 = vand.u32 2147483648, %v8115_v2  ;;  %v2948_v37 = vld [vmem:[%s6558_s14 + $0x1f0] sm:$0xff] }
 0x1c4   : > { %v2880_v20 = vmul.f32 %v8118_v48, %v8117_v27  ;;  %vm2881_vm14 = vcmp.eq.f32.partialorder %v8117_v27, inf  ;;  %5354 = vst [vmem:[%s7561_s21 + $0x98] sm:$0xff] %v5274_v34   ;;  %v4275_v46 = vmax.f32 %v4211_v50, 0.0  ;;  %v4149_v63 = vmul.f32 %v3612_v10, %v7652_v13  ;;  %v3998_v12 = vpop.f32.mrf.mxu1 }
 0x1c5   : > { %v4214_v22 = vadd.f32 %v5902_v55, %v4150_v21  ;;  %vm2883_vm15 = vcmp.eq.f32.partialorder %v8117_v27, 0.0  ;;  %v5807_v17 = vpop.f32.mrf.mxu0  ;;  %v7890_v52 = vadd.f32 %v3011_v18, %v8119_v23  ;;  %v2864_v41 = vsel %vm2862_vm13, %v2863_v35, %v2861_v57 }
 0x1c6   : > { %v2882_v14 = vsel %vm2881_vm14, %v8117_v27, %v2880_v20  ;;  %v2884_v32 = vand.u32 2147483648, %v8117_v27  ;;  %v5279_v25 = vpack.c.bf16 %v4276_v15, %v4275_v46  ;;  %v4213_v13 = vadd.f32 %v4149_v63, %v3998_v12  ;;  %v5905_v47 = vpop.f32.mrf.mxu1  ;;  %v8124_v46 = vld [vmem:[#allocation58_spill] sm:$0xff] }
 0x1c7   : > { %v4278_v51 = vmax.f32 %v4214_v22, 0.0  ;;  %v4152_v3 = vmul.f32 %v5807_v17, %v7660_v45  ;;  %v3622_v31 = vpop.f32.mrf.mxu0  ;;  %v3010_v44 = vmul.f32 %v2946_v42, %v2864_v41  ;;  %v2873_v1 = vmul.f32 %v8121_v59, %v8120_v40  ;;  %v6134_v45 = vld [vmem:[%s7960_s3] ss:$0 sm:$0xff] }
 0x1c8   : > { %v2885_v30 = vsel %vm2883_vm15, %v2884_v32, %v2882_v14  ;;  %vm2874_vm1 = vcmp.eq.f32.partialorder %v8120_v40, inf  ;;  %5355 = vst [vmem:[%s7561_s21 + $0xa0] sm:$0xff] %v5279_v25   ;;  %v4277_v6 = vmax.f32 %v4213_v13, 0.0  ;;  %v4151_v11 = vmul.f32 %v3622_v31, %v7675_v43  ;;  %v4008_v2 = vpop.f32.mrf.mxu1 }
 0x1c9   : > { %v4216_v19 = vadd.f32 %v5905_v47, %v4152_v3  ;;  %v3013_v56 = vmul.f32 %v2949_v26, %v2885_v30  ;;  %v1441_v39 = vadd.f32 %v6134_v45, %v8122_v61  ;;  %v5810_v49 = vpop.f32.mrf.mxu0  ;;  %v7908_v4 = vadd.f32 %v3010_v44, %v8123_v58 }
 0x1ca   : > { %v2875_v7 = vsel %vm2874_vm1, %v8120_v40, %v2873_v1  ;;  %v2877_v5 = vand.u32 2147483648, %v8120_v40  ;;  %v5284_v57 = vpack.c.bf16 %v4278_v51, %v4277_v6  ;;  %v4215_v43 = vadd.f32 %v4151_v11, %v4008_v2  ;;  %v5908_v15 = vpop.f32.mrf.mxu1 }
 0x1cb   : > { %v4154_v34 = vmul.f32 %v5810_v49, %v7689_v8  ;;  %vm2876_vm2 = vcmp.eq.f32.partialorder %v8120_v40, 0.0  ;;  %v4280_v50 = vmax.f32 %v4216_v19, 0.0  ;;  %v3632_v21 = vpop.f32.mrf.mxu0  ;;  %v7915_v55 = vadd.f32 %v3013_v56, %v1441_v39 }
 0x1cc   : > { %v2878_v10 = vsel %vm2876_vm2, %v2877_v5, %v2875_v7  ;;  %5356 = vst [vmem:[%s7561_s21 + $0xa8] sm:$0xff] %v5284_v57   ;;  %v4279_v18 = vmax.f32 %v4215_v43, 0.0  ;;  %v4153_v27 = vmul.f32 %v3632_v21, %v7705_v33  ;;  %v4018_v48 = vpop.f32.mrf.mxu1  ;;  %v1440_v22 = vadd.f32 %v6134_v45, %v8124_v46 }
 0x1cd   : > { %v4218_v35 = vadd.f32 %v5908_v15, %v4154_v34  ;;  %v3012_v20 = vmul.f32 %v2948_v37, %v2878_v10  ;;  %v5813_v63 = vpop.f32.mrf.mxu0 }
 0x1ce   : > { %v5289_v8 = vpack.c.bf16 %v4280_v50, %v4279_v18  ;;  %v4217_v12 = vadd.f32 %v4153_v27, %v4018_v48  ;;  %v4156_v42 = vmul.f32 %v5813_v63, %v7722_v38  ;;  %v5911_v17 = vpop.f32.mrf.mxu1 }
 0x1cf   : > { %v3642_v23 = vpop.f32.mrf.mxu0  ;;  %v7921_v41 = vadd.f32 %v3012_v20, %v1440_v22  ;;  %v4282_v14 = vmax.f32 %v4218_v35, 0.0 }
 0x1d0   : > { %5357 = vst [vmem:[%s7561_s21 + $0xb0] sm:$0xff] %v5289_v8   ;;  %v4281_v32 = vmax.f32 %v4217_v12, 0.0  ;;  %v4220_v26 = vadd.f32 %v5911_v17, %v4156_v42  ;;  %v4155_v33 = vmul.f32 %v3642_v23, %v7732_v60  ;;  %v4028_v25 = vpop.f32.mrf.mxu1 }
 0x1d1   : > { %v5816_v51 = vpop.f32.mrf.mxu0 }
 0x1d2   : > { %v5294_v13 = vpack.c.bf16 %v4282_v14, %v4281_v32  ;;  %v4219_v3 = vadd.f32 %v4155_v33, %v4028_v25  ;;  %v4158_v47 = vmul.f32 %v5816_v51, %v7748_v36  ;;  %v5914_v31 = vpop.f32.mrf.mxu1  ;;  %v4284_v44 = vmax.f32 %v4220_v26, 0.0 }
 0x1d3   : > { %v3652_v38 = vpop.f32.mrf.mxu0 }
 0x1d4   : > { %5358 = vst [vmem:[%s7561_s21 + $0xb8] sm:$0xff] %v5294_v13   ;;  %v4283_v30 = vmax.f32 %v4219_v3, 0.0  ;;  %v4222_v40 = vadd.f32 %v5914_v31, %v4158_v47  ;;  %v4157_v59 = vmul.f32 %v3652_v38, %v7764_v29  ;;  %v4038_v1 = vpop.f32.mrf.mxu1 }
 0x1d5   : > { %v5819_v6 = vpop.f32.mrf.mxu0 }
 0x1d6   : > { %v5299_v19 = vpack.c.bf16 %v4284_v44, %v4283_v30  ;;  %v4221_v11 = vadd.f32 %v4157_v59, %v4038_v1  ;;  %v4160_v60 = vmul.f32 %v5819_v6, %v7778_v0  ;;  %v5917_v2 = vpop.f32.mrf.mxu1  ;;  %v4286_v45 = vmax.f32 %v4222_v40, 0.0 }
 0x1d7   : > { %v3662_v56 = vpop.f32.mrf.mxu0 }
 0x1d8   : > { %5359 = vst [vmem:[%s7561_s21 + $0xc0] sm:$0xff] %v5299_v19   ;;  %v4285_v36 = vmax.f32 %v4221_v11, 0.0  ;;  %v4224_v61 = vadd.f32 %v5917_v2, %v4160_v60  ;;  %v4159_v39 = vmul.f32 %v3662_v56, %v7786_v62  ;;  %v4048_v49 = vpop.f32.mrf.mxu1 }
 0x1d9   : > { %v5822_v58 = vpop.f32.mrf.mxu0 }
 0x1da   : > { %v5304_v7 = vpack.c.bf16 %v4286_v45, %v4285_v36  ;;  %v4223_v5 = vadd.f32 %v4159_v39, %v4048_v49  ;;  %v4162_v29 = vmul.f32 %v5822_v58, %v7801_v28  ;;  %v5920_v37 = vpop.f32.mrf.mxu1  ;;  %v4288_v43 = vmax.f32 %v4224_v61, 0.0 }
 0x1db   : > { %v3672_v57 = vpop.f32.mrf.mxu0 }
 0x1dc   : > { %5360 = vst [vmem:[%s7561_s21 + $0xc8] sm:$0xff] %v5304_v7   ;;  %v4287_v0 = vmax.f32 %v4223_v5, 0.0  ;;  %v4226_v34 = vadd.f32 %v5920_v37, %v4162_v29  ;;  %v4161_v15 = vmul.f32 %v3672_v57, %v7815_v9  ;;  %v4058_v50 = vpop.f32.mrf.mxu1 }
 0x1dd   : > { %v5825_v21 = vpop.f32.mrf.mxu0 }
 0x1de   : > { %v5309_v10 = vpack.c.bf16 %v4288_v43, %v4287_v0  ;;  %v4225_v18 = vadd.f32 %v4161_v15, %v4058_v50  ;;  %v4164_v62 = vmul.f32 %v5825_v21, %v7831_v16  ;;  %v5923_v35 = vpop.f32.mrf.mxu1  ;;  %v4290_v48 = vmax.f32 %v4226_v34, 0.0 }
 0x1df   : > { %v3682_v27 = vpop.f32.mrf.mxu0 }
 0x1e0   : > { %5361 = vst [vmem:[%s7561_s21 + $0xd0] sm:$0xff] %v5309_v10   ;;  %v4289_v28 = vmax.f32 %v4225_v18, 0.0  ;;  %v4228_v20 = vadd.f32 %v5923_v35, %v4164_v62  ;;  %v4163_v46 = vmul.f32 %v3682_v27, %v7848_v54  ;;  %v4068_v22 = vpop.f32.mrf.mxu1 }
 0x1e1   : > { %v5828_v63 = vpop.f32.mrf.mxu0 }
 0x1e2   : > { %v5314_v8 = vpack.c.bf16 %v4290_v48, %v4289_v28  ;;  %v4227_v12 = vadd.f32 %v4163_v46, %v4068_v22  ;;  %v4166_v9 = vmul.f32 %v5828_v63, %v7858_v24  ;;  %v5926_v42 = vpop.f32.mrf.mxu1  ;;  %v4292_v23 = vmax.f32 %v4228_v20, 0.0 }
 0x1e3   : > { %v3692_v17 = vpop.f32.mrf.mxu0 }
 0x1e4   : > { %5362 = vst [vmem:[%s7561_s21 + $0xd8] sm:$0xff] %v5314_v8   ;;  %v4291_v16 = vmax.f32 %v4227_v12, 0.0  ;;  %v4230_v14 = vadd.f32 %v5926_v42, %v4166_v9  ;;  %v4165_v32 = vmul.f32 %v3692_v17, %v7874_v53  ;;  %v4078_v26 = vpop.f32.mrf.mxu1 }
 0x1e5   : > { %v5831_v33 = vpop.f32.mrf.mxu0 }
 0x1e6   : > { %v5319_v25 = vpack.c.bf16 %v4292_v23, %v4291_v16  ;;  %v4229_v51 = vadd.f32 %v4165_v32, %v4078_v26  ;;  %v4168_v54 = vmul.f32 %v5831_v33, %v7890_v52  ;;  %v5929_v13 = vpop.f32.mrf.mxu1  ;;  %v4294_v47 = vmax.f32 %v4230_v14, 0.0 }
 0x1e7   : > { %v3702_v3 = vpop.f32.mrf.mxu0 }
 0x1e8   : > { %5363 = vst [vmem:[%s7561_s21 + $0xe0] sm:$0xff] %v5319_v25   ;;  %v4293_v24 = vmax.f32 %v4229_v51, 0.0  ;;  %v4232_v31 = vadd.f32 %v5929_v13, %v4168_v54  ;;  %v4167_v38 = vmul.f32 %v3702_v3, %v7908_v4  ;;  %v4088_v44 = vpop.f32.mrf.mxu1 }
 0x1e9   : > { %v5834_v30 = vpop.f32.mrf.mxu0 }
 0x1ea   : > { %v5324_v40 = vpack.c.bf16 %v4294_v47, %v4293_v24  ;;  %v4231_v53 = vadd.f32 %v4167_v38, %v4088_v44  ;;  %v4170_v59 = vmul.f32 %v5834_v30, %v7915_v55  ;;  %v5932_v1 = vpop.f32.mrf.mxu1  ;;  %v4296_v52 = vmax.f32 %v4232_v31, 0.0 }
 0x1eb   : > { %v3712_v6 = vpop.f32.mrf.mxu0 }
 0x1ec   : > { %5364 = vst [vmem:[%s7561_s21 + $0xe8] sm:$0xff] %v5324_v40   ;;  %v4295_v19 = vmax.f32 %v4231_v53, 0.0  ;;  %v4234_v11 = vadd.f32 %v5932_v1, %v4170_v59  ;;  %v4169_v60 = vmul.f32 %v3712_v6, %v7921_v41  ;;  %v4098_v2 = vpop.f32.mrf.mxu1 }
 0x1ee   : > { %v5329_v56 = vpack.c.bf16 %v4296_v52, %v4295_v19  ;;  %v4233_v45 = vadd.f32 %v4169_v60, %v4098_v2  ;;  %v4298_v4 = vmax.f32 %v4234_v11, 0.0 }
 0x1f0   : > { %5365 = vst [vmem:[%s7561_s21 + $0xf0] sm:$0xff] %v5329_v56   ;;  %v4297_v36 = vmax.f32 %v4233_v45, 0.0 }
 0x1f2   : > { %v5334_v61 = vpack.c.bf16 %v4298_v4, %v4297_v36 }
 0x1f4   : > { %5366 = vst [vmem:[%s7561_s21 + $0xf8] sm:$0xff] %v5334_v61  }
 0x1f5 PF: > { %s19_s11 = sadd.s32 1, %s6157_s11   ;;  %s8125_s30 = smov %s6153_s10 }
 0x1f6   : > { %p16_p5 = scmp.ge.s32.totalorder %s19_s11, 4   ;;  %s8126_s10 = smov %s8128_s12 }
 0x1f8   :  { %18 = sbr.rel (!%p16_p5) target bundleno = 2 (0x2), region = 118 }

// kernel: eq.15
= control target key start
LH: loop header
LB: loop body
LE: loop exit
PB: predicated region body
PF: predicated region fallthrough
CT: control target
= control target key end

     0   :  { %s7_s8 = smov 3  ;;  %vm9_vm0 = vcmask 523264   ;;  %s27_s9 = smov 64   ;;  %vm16_vm1 = vcmask 1048064   ;;  %s44_s0 = inlined_call_operand.vmem [shape: s32[4,64], index: 0, kind: input, shape index: {}]   ;;  %s45_s1 = inlined_call_operand.vmem [shape: s32[256], index: 1, kind: output, shape index: {}]  }
   0x1   :  { %v5_v0 = vld [vmem:[%s44_s0] sm:$0xf]  ;;  %s12_s0 = smov 3 }
   0x2   :  { %6 = vst [vmem:[#allocation1] sm:$0xf] %v5_v0 }
   0x9   :  { %v13_v1 = vld [vmem:[#allocation1 + $0x1] ss:$2 sm:%s12_s0]   ;;  %v8_v2 = vld [vmem:[#allocation1] ss:$2 sm:%s7_s8]  }
   0xa   :  { %14 = vrot.lane.b32.xlu0 %v13_v1, %s27_s9  ;;  %10 = vst.msk [vmem:[#allocation0] sm:$0x3] %vm9_vm0, %v8_v2  }
  0x7c   :  { %v15_v3 = vpop.permute.xlu0 %14  }
  0x7d   :  { %17 = vst.msk [vmem:[#allocation0] sm:$0x3] %vm16_vm1, %v15_v3  }
  0x84   :  { %v22_v4 = vld [vmem:[#allocation0] sm:$0x3] }
  0x85   :  { %25 = vst [vmem:[%s45_s1] sm:$0x3] %v22_v4 }

// kernel: multihead_film_cnn_forward.5
= control target key start
LH: loop header
LB: loop body
LE: loop exit
PB: predicated region body
PF: predicated region fallthrough
CT: control target
= control target key end

     0   :  { %vm1434_vm0 = vcmask 64512   ;;  %s4017_s1 = inlined_call_operand.vmem [shape: bf16[128,128], index: 1, kind: input, shape index: {}]   ;;  %s4018_s2 = inlined_call_operand.vmem [shape: bf16[128,128], index: 2, kind: input, shape index: {}]   ;;  %s4019_s0 = inlined_call_operand.vmem [shape: bf16[256,128], index: 0, kind: input, shape index: {}]   ;;  %s4020_s6 = inlined_call_operand.vmem [shape: f32[8,128], index: 6, kind: input, shape index: {}]   ;;  %s4021_s7 = inlined_call_operand.vmem [shape: f32[8,128], index: 7, kind: input, shape index: {}]   ;;  %s4022_s5 = inlined_call_operand.vmem [shape: f32[256,8], index: 5, kind: input, shape index: {}]   ;;  %s4023_s4 = inlined_call_operand.vmem [shape: f32[1,128], index: 4, kind: input, shape index: {}]   ;;  %s4024_s3 = inlined_call_operand.vmem [shape: f32[1,128], index: 3, kind: input, shape index: {}]   ;;  %s4025_s8 = inlined_call_operand.vmem [shape: f32[256,128], index: 8, kind: input, shape index: {}]   ;;  %s4026_s9 = inlined_call_operand.vmem [shape: bf16[256,128], index: 9, kind: output, shape index: {}]  }
   0x1   :  { %v2825_v0 = vld [vmem:[%s4017_s1 + $0x38] sm:$0xff]   ;;  %v2827_v2 = vld [vmem:[%s4017_s1 + $0x30] sm:$0xff]   ;;  %v2829_v4 = vld [vmem:[%s4017_s1 + $0x28] sm:$0xff]  }
   0x2   :  { %v2826_v1 = vld [vmem:[%s4018_s2 + $0x38] sm:$0xff]   ;;  %2629 = vmatprep.subr.bf16.mxu0 %v2825_v0  ;;  %v2828_v3 = vld [vmem:[%s4018_s2 + $0x30] sm:$0xff]   ;;  %v2830_v5 = vld [vmem:[%s4018_s2 + $0x28] sm:$0xff]  }
   0x3   :  { %2677 = vmatprep.subr.bf16.mxu1 %v2826_v1  ;;  %2630 = vmatpush3.bf16.msra.mxu0 %v2825_v0  ;;  %v2831_v6 = vld [vmem:[%s4017_s1 + $0x20] sm:$0xff]   ;;  %v2833_v8 = vld [vmem:[%s4017_s1 + $0x18] sm:$0xff]   ;;  %v2835_v10 = vld [vmem:[%s4017_s1 + $0x10] sm:$0xff]  }
   0x4   :  { %2678 = vmatpush3.bf16.msra.mxu1 %v2826_v1  ;;  %2631 = vmatprep.subr.bf16.mxu0 %v2827_v2  ;;  %v2832_v7 = vld [vmem:[%s4018_s2 + $0x20] sm:$0xff]   ;;  %v2834_v9 = vld [vmem:[%s4018_s2 + $0x18] sm:$0xff]   ;;  %v2836_v13 = vld [vmem:[%s4018_s2 + $0x10] sm:$0xff]  }
   0x5   :  { %2679 = vmatprep.subr.bf16.mxu1 %v2828_v3  ;;  %v116_v11 = vld [vmem:[%s4019_s0] sm:$0xf]  ;;  %v117_v12 = vld [vmem:[%s4019_s0 + $0x4] sm:$0xf]  ;;  %v2837_v18 = vld [vmem:[%s4017_s1 + $0x8] sm:$0xff]  }
   0x6   :  { %v2244_v14 = vcombine.low %v116_v11, %v117_v12  ;;  %v597_v15 = vmul.bf16 %v116_v11, %v116_v11  ;;  %v598_v16 = vmul.bf16 %v117_v12, %v117_v12  ;;  %v2838_v19 = vld [vmem:[%s4018_s2 + $0x8] sm:$0xff]   ;;  %v2839_v20 = vld [vmem:[%s4017_s1] sm:$0xff]   ;;  %v120_v24 = vld [vmem:[%s4019_s0 + $0x10] sm:$0xf] }
   0x7   :  { %2632 = vmatpush3.bf16.msra.mxu0 %v2827_v2  ;;  %v118_v21 = vld [vmem:[%s4019_s0 + $0x8] sm:$0xf]  ;;  %v119_v22 = vld [vmem:[%s4019_s0 + $0xc] sm:$0xf]  ;;  %v2840_v23 = vld [vmem:[%s4018_s2] sm:$0xff]   ;;  %v601_v29 = vmul.bf16 %v120_v24, %v120_v24 }
   0x8   :  { %2680 = vmatpush3.bf16.msra.mxu1 %v2828_v3  ;;  %2633 = vmatprep.subr.bf16.mxu0 %v2829_v4  ;;  %v2268_v17 = vcombine.low %v597_v15, %v598_v16  ;;  %v121_v25 = vld [vmem:[%s4019_s0 + $0x14] sm:$0xf]  ;;  %v599_v26 = vmul.bf16 %v118_v21, %v118_v21  ;;  %v600_v27 = vmul.bf16 %v119_v22, %v119_v22  ;;  %v1433_v28 = vld [vmem:[%s4020_s6] sm:$0xff]  ;;  %v122_v35 = vld [vmem:[%s4019_s0 + $0x18] sm:$0xf] }
   0x9   :  { %2681 = vmatprep.subr.bf16.mxu1 %v2830_v5  ;;  %2645 = vmatprep.mubr.bf16.mxu0 %v2244_v14  ;;  %v602_v30 = vmul.bf16 %v121_v25, %v121_v25  ;;  %v2245_v31 = vcombine.low %v118_v21, %v119_v22  ;;  %v1756_v32 = vld [vmem:[%s4021_s7] sm:$0xff]  ;;  %v2246_v34 = vcombine.low %v120_v24, %v121_v25  ;;  %v123_v36 = vld [vmem:[%s4019_s0 + $0x1c] sm:$0xf]  ;;  %v126_v48 = vld [vmem:[%s4019_s0 + $0x28] sm:$0xf] }
   0xa   :  { %2693 = vmatprep.mubr.bf16.mxu1 %v2268_v17  ;;  %v2269_v33 = vcombine.low %v599_v26, %v600_v27  ;;  %v124_v38 = vld [vmem:[%s4019_s0 + $0x20] sm:$0xf]  ;;  %v125_v39 = vld [vmem:[%s4019_s0 + $0x24] sm:$0xf]  ;;  %v603_v40 = vmul.bf16 %v122_v35, %v122_v35  ;;  %v604_v41 = vmul.bf16 %v123_v36, %v123_v36  ;;  %v2247_v44 = vcombine.low %v122_v35, %v123_v36  ;;  %v127_v49 = vld [vmem:[%s4019_s0 + $0x2c] sm:$0xf] }
   0xb   :  { %2634 = vmatpush3.bf16.msra.mxu0 %v2829_v4  ;;  %v2270_v37 = vcombine.low %v601_v29, %v602_v30  ;;  %v605_v42 = vmul.bf16 %v124_v38, %v124_v38  ;;  %v606_v43 = vmul.bf16 %v125_v39, %v125_v39  ;;  %v2248_v46 = vcombine.low %v124_v38, %v125_v39  ;;  %v128_v50 = vld [vmem:[%s4019_s0 + $0x30] sm:$0xf]  ;;  %v129_v51 = vld [vmem:[%s4019_s0 + $0x34] sm:$0xf]  ;;  %v130_v60 = vld [vmem:[%s4019_s0 + $0x38] sm:$0xf] }
   0xc   :  { %2682 = vmatpush3.bf16.msra.mxu1 %v2830_v5  ;;  %2635 = vmatprep.subr.bf16.mxu0 %v2831_v6  ;;  %v2271_v45 = vcombine.low %v603_v40, %v604_v41  ;;  %v607_v52 = vmul.bf16 %v126_v48, %v126_v48  ;;  %v608_v53 = vmul.bf16 %v127_v49, %v127_v49  ;;  %v131_v61 = vld [vmem:[%s4019_s0 + $0x3c] sm:$0xf]  ;;  %v132_v62 = vld [vmem:[%s4019_s0 + $0x40] sm:$0xf]  ;;  %v133_v63 = vld [vmem:[%s4019_s0 + $0x44] sm:$0xf] }
   0xd   :  { %2683 = vmatprep.subr.bf16.mxu1 %v2832_v7  ;;  %v2272_v47 = vcombine.low %v605_v42, %v606_v43  ;;  %v609_v54 = vmul.bf16 %v128_v50, %v128_v50  ;;  %v610_v55 = vmul.bf16 %v129_v51, %v129_v51  ;;  %v2249_v56 = vcombine.low %v126_v48, %v127_v49  ;;  %v137_v11 = vld [vmem:[%s4019_s0 + $0x54] sm:$0xf]  ;;  %v139_v21 = vld [vmem:[%s4019_s0 + $0x5c] sm:$0xf]  ;;  %v140_v22 = vld [vmem:[%s4019_s0 + $0x60] sm:$0xf] }
   0xe   :  { %v2273_v57 = vcombine.low %v607_v52, %v608_v53  ;;  %v2250_v58 = vcombine.low %v128_v50, %v129_v51  ;;  %v611_v0 = vmul.bf16 %v130_v60, %v130_v60  ;;  %v612_v1 = vmul.bf16 %v131_v61, %v131_v61  ;;  %v145_v35 = vld [vmem:[%s4019_s0 + $0x74] sm:$0xf]  ;;  %v1401_v50 = vld [vmem:[%s4022_s5] sm:$0xff]  ;;  %v1402_v51 = vld [vmem:[%s4022_s5 + $0x8] sm:$0xff] }
   0xf   :  { %2636 = vmatpush3.bf16.msra.mxu0 %v2831_v6  ;;  %v2274_v59 = vcombine.low %v609_v54, %v610_v55  ;;  %v613_v2 = vmul.bf16 %v132_v62, %v132_v62  ;;  %v614_v3 = vmul.bf16 %v133_v63, %v133_v63  ;;  %v2251_v4 = vcombine.low %v130_v60, %v131_v61  ;;  %v1403_v52 = vld [vmem:[%s4022_s5 + $0x10] sm:$0xff]  ;;  %v1404_v53 = vld [vmem:[%s4022_s5 + $0x18] sm:$0xff]  ;;  %v1405_v54 = vld [vmem:[%s4022_s5 + $0x20] sm:$0xff] }
  0x10   :  { %2684 = vmatpush3.bf16.msra.mxu1 %v2832_v7  ;;  %2637 = vmatprep.subr.bf16.mxu0 %v2833_v8  ;;  %v2275_v5 = vcombine.low %v611_v0, %v612_v1  ;;  %v2252_v6 = vcombine.low %v132_v62, %v133_v63  ;;  %v618_v15 = vmul.bf16 %v137_v11, %v137_v11  ;;  %v1406_v55 = vld [vmem:[%s4022_s5 + $0x28] sm:$0xff]  ;;  %v1411_v60 = vld [vmem:[%s4022_s5 + $0x50] sm:$0xff]  ;;  %v1412_v61 = vld [vmem:[%s4022_s5 + $0x58] sm:$0xff] }
  0x11   :  { %2685 = vmatprep.subr.bf16.mxu1 %v2834_v9  ;;  %v2276_v7 = vcombine.low %v613_v2, %v614_v3  ;;  %v620_v25 = vmul.bf16 %v139_v21, %v139_v21  ;;  %v621_v26 = vmul.bf16 %v140_v22, %v140_v22  ;;  %v626_v39 = vmul.bf16 %v145_v35, %v145_v35  ;;  %v1413_v62 = vld [vmem:[%s4022_s5 + $0x60] sm:$0xff]  ;;  %v1414_v63 = vld [vmem:[%s4022_s5 + $0x68] sm:$0xff]  ;;  %v1415_v0 = vld [vmem:[%s4022_s5 + $0x70] sm:$0xff] }
  0x12   :  { %v1416_v1 = vld [vmem:[%s4022_s5 + $0x78] sm:$0xff]  ;;  %v1417_v2 = vld [vmem:[%s4022_s5 + $0x80] sm:$0xff]  ;;  %v1418_v3 = vld [vmem:[%s4022_s5 + $0x88] sm:$0xff] }
  0x13   :  { %2638 = vmatpush3.bf16.msra.mxu0 %v2833_v8  ;;  %v134_v8 = vld [vmem:[%s4019_s0 + $0x48] sm:$0xf] }
  0x14   :  { %2686 = vmatpush3.bf16.msra.mxu1 %v2834_v9  ;;  %2639 = vmatprep.subr.bf16.mxu0 %v2835_v10  ;;  %v135_v9 = vld [vmem:[%s4019_s0 + $0x4c] sm:$0xf]  ;;  %v615_v12 = vmul.bf16 %v134_v8, %v134_v8 }
  0x15   :  { %2687 = vmatprep.subr.bf16.mxu1 %v2836_v13  ;;  %v2253_v16 = vcombine.low %v134_v8, %v135_v9  ;;  %v1423_v8 = vld [vmem:[%s4022_s5 + $0xb0] sm:$0xff] }
  0x17   :  { %2640 = vmatpush3.bf16.msra.mxu0 %v2835_v10  ;;  %v136_v10 = vld [vmem:[%s4019_s0 + $0x50] sm:$0xf] }
  0x18   :  { %2688 = vmatpush3.bf16.msra.mxu1 %v2836_v13  ;;  %2641 = vmatprep.subr.bf16.mxu0 %v2837_v18  ;;  %v616_v13 = vmul.bf16 %v135_v9, %v135_v9  ;;  %v617_v14 = vmul.bf16 %v136_v10, %v136_v10  ;;  %v1424_v9 = vld [vmem:[%s4022_s5 + $0xb8] sm:$0xff] }
  0x19   :  { %2689 = vmatprep.subr.bf16.mxu1 %v2838_v19 }
  0x1a   :  { %v2277_v17 = vcombine.low %v615_v12, %v616_v13  ;;  %v1427_v12 = vld [vmem:[%s4022_s5 + $0xd0] sm:$0xff]  ;;  %v1428_v13 = vld [vmem:[%s4022_s5 + $0xd8] sm:$0xff] }
  0x1b   :  { %2642 = vmatpush3.bf16.msra.mxu0 %v2837_v18  ;;  %v2254_v18 = vcombine.low %v136_v10, %v137_v11  ;;  %v1425_v10 = vld [vmem:[%s4022_s5 + $0xc0] sm:$0xff]  ;;  %v1426_v11 = vld [vmem:[%s4022_s5 + $0xc8] sm:$0xff] }
  0x1c   :  { %2690 = vmatpush3.bf16.msra.mxu1 %v2838_v19  ;;  %2643 = vmatprep.subr.bf16.mxu0 %v2839_v20  ;;  %v2278_v19 = vcombine.low %v617_v14, %v618_v15  ;;  %v1429_v14 = vld [vmem:[%s4022_s5 + $0xe0] sm:$0xff]  ;;  %v1430_v15 = vld [vmem:[%s4022_s5 + $0xe8] sm:$0xff] }
  0x1d   :  { %2691 = vmatprep.subr.bf16.mxu1 %v2840_v23 }
  0x1f   :  { %2644 = vmatpush3.bf16.msra.mxu0 %v2839_v20  ;;  %v138_v20 = vld [vmem:[%s4019_s0 + $0x58] sm:$0xf] }
  0x20   :  { %2692 = vmatpush3.bf16.msra.mxu1 %v2840_v23  ;;  %2725 = vmatprep.subr.mxu0 %v1433_v28  ;;  %v141_v23 = vld [vmem:[%s4019_s0 + $0x64] sm:$0xf]  ;;  %v619_v24 = vmul.bf16 %v138_v20, %v138_v20 }
  0x21   :  { %2775 = vmatprep.subr.mxu1 %v1756_v32  ;;  %v622_v27 = vmul.bf16 %v141_v23, %v141_v23  ;;  %v2256_v30 = vcombine.low %v140_v22, %v141_v23 }
  0x22   :  { %2646 = vmatmul.mubr.bf16.vlgmr.msra.gmra.mxu0 %v2245_v31  ;;  %v2279_v29 = vcombine.low %v619_v24, %v620_v25 }
  0x23   :  { %2694 = vmatmul.mubr.bf16.vlgmr.msra.gmra.mxu1 %v2269_v33  ;;  %2726 = vmatpush3.msra.mxu0 %v1433_v28  ;;  %v2255_v28 = vcombine.low %v138_v20, %v139_v21  ;;  %v2280_v31 = vcombine.low %v621_v26, %v622_v27  ;;  %v143_v33 = vld [vmem:[%s4019_s0 + $0x6c] sm:$0xf] }
  0x24   :  { %2776 = vmatpush3.msra.mxu1 %v1756_v32  ;;  %2649 = vmatprep.mubr.bf16.mxu0 %v2246_v34  ;;  %v142_v32 = vld [vmem:[%s4019_s0 + $0x68] sm:$0xf]  ;;  %v144_v34 = vld [vmem:[%s4019_s0 + $0x70] sm:$0xf] }
  0x25   :  { %2697 = vmatprep.mubr.bf16.mxu1 %v2270_v37  ;;  %v623_v36 = vmul.bf16 %v142_v32, %v142_v32  ;;  %v624_v37 = vmul.bf16 %v143_v33, %v143_v33  ;;  %v625_v38 = vmul.bf16 %v144_v34, %v144_v34  ;;  %v2257_v40 = vcombine.low %v142_v32, %v143_v33 }
  0x26   :  { %v2258_v42 = vcombine.low %v144_v34, %v145_v35 }
  0x27   :  { %v2281_v41 = vcombine.low %v623_v36, %v624_v37  ;;  %v2282_v43 = vcombine.low %v625_v38, %v626_v39  ;;  %v3309_v37 = vld [vmem:[%s4024_s3] ss:$0 sm:$0xff] }
  0x2a   :  { %2650 = vmatmul.mubr.bf16.gmra.mxu0 %v2247_v44  ;;  %v146_v44 = vld [vmem:[%s4019_s0 + $0x78] sm:$0xf] }
  0x2b   :  { %2698 = vmatmul.mubr.bf16.gmra.mxu1 %v2271_v45  ;;  %2653 = vmatprep.mubr.bf16.mxu0 %v2248_v46  ;;  %v147_v45 = vld [vmem:[%s4019_s0 + $0x7c] sm:$0xf]  ;;  %v627_v46 = vmul.bf16 %v146_v44, %v146_v44 }
  0x2c   :  { %2701 = vmatprep.mubr.bf16.mxu1 %v2272_v47  ;;  %v628_v47 = vmul.bf16 %v147_v45, %v147_v45  ;;  %v2259_v48 = vcombine.low %v146_v44, %v147_v45 }
  0x2e   :  { %v2283_v49 = vcombine.low %v627_v46, %v628_v47 }
  0x32   :  { %2654 = vmatmul.mubr.bf16.gmra.mxu0 %v2249_v56  ;;  %v1407_v56 = vld [vmem:[%s4022_s5 + $0x30] sm:$0xff] }
  0x33   :  { %2702 = vmatmul.mubr.bf16.gmra.mxu1 %v2273_v57  ;;  %2657 = vmatprep.mubr.bf16.mxu0 %v2250_v58  ;;  %v1408_v57 = vld [vmem:[%s4022_s5 + $0x38] sm:$0xff]  ;;  %v1409_v58 = vld [vmem:[%s4022_s5 + $0x40] sm:$0xff] }
  0x34   :  { %2705 = vmatprep.mubr.bf16.mxu1 %v2274_v59  ;;  %v1410_v59 = vld [vmem:[%s4022_s5 + $0x48] sm:$0xff] }
  0x3a   :  { %2658 = vmatmul.mubr.bf16.gmra.mxu0 %v2251_v4  ;;  %v1419_v4 = vld [vmem:[%s4022_s5 + $0x90] sm:$0xff] }
  0x3b   :  { %2706 = vmatmul.mubr.bf16.gmra.mxu1 %v2275_v5  ;;  %2661 = vmatprep.mubr.bf16.mxu0 %v2252_v6  ;;  %v1420_v5 = vld [vmem:[%s4022_s5 + $0x98] sm:$0xff]  ;;  %v1421_v6 = vld [vmem:[%s4022_s5 + $0xa0] sm:$0xff] }
  0x3c   :  { %2709 = vmatprep.mubr.bf16.mxu1 %v2276_v7  ;;  %v1422_v7 = vld [vmem:[%s4022_s5 + $0xa8] sm:$0xff] }
  0x42   :  { %2662 = vmatmul.mubr.bf16.gmra.mxu0 %v2253_v16  ;;  %v1431_v16 = vld [vmem:[%s4022_s5 + $0xf0] sm:$0xff] }
  0x43   :  { %2710 = vmatmul.mubr.bf16.gmra.mxu1 %v2277_v17  ;;  %2665 = vmatprep.mubr.bf16.mxu0 %v2254_v18  ;;  %v1432_v17 = vld [vmem:[%s4022_s5 + $0xf8] sm:$0xff]  ;;  %v2243_v18 = vld [vmem:[%s4023_s4] ss:$0 sm:$0xff] }
  0x44   :  { %2713 = vmatprep.mubr.bf16.mxu1 %v2278_v19  ;;  %v3285_v19 = vadd.f32 1e-09, %v2243_v18 }
  0x4a   :  { %2666 = vmatmul.mubr.bf16.gmra.mxu0 %v2255_v28 }
  0x4b   :  { %2714 = vmatmul.mubr.bf16.gmra.mxu1 %v2279_v29  ;;  %2669 = vmatprep.mubr.bf16.mxu0 %v2256_v30 }
  0x4c   :  { %2717 = vmatprep.mubr.bf16.mxu1 %v2280_v31 }
  0x52   :  { %2670 = vmatmul.mubr.bf16.gmra.mxu0 %v2257_v40 }
  0x53   :  { %2718 = vmatmul.mubr.bf16.gmra.mxu1 %v2281_v41  ;;  %2673 = vmatprep.mubr.bf16.mxu0 %v2258_v42 }
  0x54   :  { %2721 = vmatprep.mubr.bf16.mxu1 %v2282_v43 }
  0x5a   :  { %2674 = vmatmul.mubr.bf16.gmra.mxu0 %v2259_v48 }
  0x5b   :  { %2722 = vmatmul.mubr.bf16.gmra.mxu1 %v2283_v49  ;;  %2727 = vmatprep.mubr.msk.f32.mxu0 %vm1434_vm0, %v1401_v50 }
  0x5c   :  { %2777 = vmatprep.mubr.msk.f32.mxu1 %vm1434_vm0, %v1401_v50 }
  0x62   :  { %2728 = vmatmul.mubr.msk.f32.vlgmr.msra.gmra.mxu0 %vm1434_vm0, %v1402_v51 }
  0x63   :  { %2778 = vmatmul.mubr.msk.f32.vlgmr.msra.gmra.mxu1 %vm1434_vm0, %v1402_v51  ;;  %2730 = vmatprep.mubr.msk.f32.mxu0 %vm1434_vm0, %v1403_v52 }
  0x64   :  { %2780 = vmatprep.mubr.msk.f32.mxu1 %vm1434_vm0, %v1403_v52 }
  0x66   :  { %2731 = vmatmul.mubr.msk.f32.gmra.mxu0 %vm1434_vm0, %v1404_v53 }
  0x67   :  { %2781 = vmatmul.mubr.msk.f32.gmra.mxu1 %vm1434_vm0, %v1404_v53  ;;  %2733 = vmatprep.mubr.msk.f32.mxu0 %vm1434_vm0, %v1405_v54 }
  0x68   :  { %2783 = vmatprep.mubr.msk.f32.mxu1 %vm1434_vm0, %v1405_v54 }
  0x6a   :  { %2734 = vmatmul.mubr.msk.f32.gmra.mxu0 %vm1434_vm0, %v1406_v55 }
  0x6b   :  { %2784 = vmatmul.mubr.msk.f32.gmra.mxu1 %vm1434_vm0, %v1406_v55  ;;  %2736 = vmatprep.mubr.msk.f32.mxu0 %vm1434_vm0, %v1407_v56 }
  0x6c   :  { %2786 = vmatprep.mubr.msk.f32.mxu1 %vm1434_vm0, %v1407_v56 }
  0x6e   :  { %2737 = vmatmul.mubr.msk.f32.gmra.mxu0 %vm1434_vm0, %v1408_v57 }
  0x6f   :  { %2787 = vmatmul.mubr.msk.f32.gmra.mxu1 %vm1434_vm0, %v1408_v57  ;;  %2739 = vmatprep.mubr.msk.f32.mxu0 %vm1434_vm0, %v1409_v58 }
  0x70   :  { %2789 = vmatprep.mubr.msk.f32.mxu1 %vm1434_vm0, %v1409_v58 }
  0x72   :  { %2740 = vmatmul.mubr.msk.f32.gmra.mxu0 %vm1434_vm0, %v1410_v59 }
  0x73   :  { %2790 = vmatmul.mubr.msk.f32.gmra.mxu1 %vm1434_vm0, %v1410_v59  ;;  %2742 = vmatprep.mubr.msk.f32.mxu0 %vm1434_vm0, %v1411_v60 }
  0x74   :  { %2792 = vmatprep.mubr.msk.f32.mxu1 %vm1434_vm0, %v1411_v60 }
  0x76   :  { %2743 = vmatmul.mubr.msk.f32.gmra.mxu0 %vm1434_vm0, %v1412_v61 }
  0x77   :  { %2793 = vmatmul.mubr.msk.f32.gmra.mxu1 %vm1434_vm0, %v1412_v61  ;;  %2745 = vmatprep.mubr.msk.f32.mxu0 %vm1434_vm0, %v1413_v62 }
  0x78   :  { %2795 = vmatprep.mubr.msk.f32.mxu1 %vm1434_vm0, %v1413_v62 }
  0x7a   :  { %2746 = vmatmul.mubr.msk.f32.gmra.mxu0 %vm1434_vm0, %v1414_v63 }
  0x7b   :  { %2796 = vmatmul.mubr.msk.f32.gmra.mxu1 %vm1434_vm0, %v1414_v63  ;;  %2748 = vmatprep.mubr.msk.f32.mxu0 %vm1434_vm0, %v1415_v0 }
  0x7c   :  { %2798 = vmatprep.mubr.msk.f32.mxu1 %vm1434_vm0, %v1415_v0 }
  0x7e   :  { %2749 = vmatmul.mubr.msk.f32.gmra.mxu0 %vm1434_vm0, %v1416_v1 }
  0x7f   :  { %2799 = vmatmul.mubr.msk.f32.gmra.mxu1 %vm1434_vm0, %v1416_v1  ;;  %2751 = vmatprep.mubr.msk.f32.mxu0 %vm1434_vm0, %v1417_v2 }
  0x80   :  { %2801 = vmatprep.mubr.msk.f32.mxu1 %vm1434_vm0, %v1417_v2 }
  0x82   :  { %2752 = vmatmul.mubr.msk.f32.gmra.mxu0 %vm1434_vm0, %v1418_v3 }
  0x83   :  { %2802 = vmatmul.mubr.msk.f32.gmra.mxu1 %vm1434_vm0, %v1418_v3  ;;  %2754 = vmatprep.mubr.msk.f32.mxu0 %vm1434_vm0, %v1419_v4 }
  0x84   :  { %2804 = vmatprep.mubr.msk.f32.mxu1 %vm1434_vm0, %v1419_v4 }
  0x86   :  { %2755 = vmatmul.mubr.msk.f32.gmra.mxu0 %vm1434_vm0, %v1420_v5 }
  0x87   :  { %2805 = vmatmul.mubr.msk.f32.gmra.mxu1 %vm1434_vm0, %v1420_v5  ;;  %2757 = vmatprep.mubr.msk.f32.mxu0 %vm1434_vm0, %v1421_v6 }
  0x88   :  { %2807 = vmatprep.mubr.msk.f32.mxu1 %vm1434_vm0, %v1421_v6 }
  0x8a   :  { %2758 = vmatmul.mubr.msk.f32.gmra.mxu0 %vm1434_vm0, %v1422_v7 }
  0x8b   :  { %2808 = vmatmul.mubr.msk.f32.gmra.mxu1 %vm1434_vm0, %v1422_v7  ;;  %2760 = vmatprep.mubr.msk.f32.mxu0 %vm1434_vm0, %v1423_v8 }
  0x8c   :  { %2810 = vmatprep.mubr.msk.f32.mxu1 %vm1434_vm0, %v1423_v8 }
  0x8e   :  { %2761 = vmatmul.mubr.msk.f32.gmra.mxu0 %vm1434_vm0, %v1424_v9 }
  0x8f   :  { %2811 = vmatmul.mubr.msk.f32.gmra.mxu1 %vm1434_vm0, %v1424_v9  ;;  %2763 = vmatprep.mubr.msk.f32.mxu0 %vm1434_vm0, %v1425_v10 }
  0x90   :  { %2813 = vmatprep.mubr.msk.f32.mxu1 %vm1434_vm0, %v1425_v10 }
  0x92   :  { %2764 = vmatmul.mubr.msk.f32.gmra.mxu0 %vm1434_vm0, %v1426_v11 }
  0x93   :  { %2814 = vmatmul.mubr.msk.f32.gmra.mxu1 %vm1434_vm0, %v1426_v11  ;;  %2766 = vmatprep.mubr.msk.f32.mxu0 %vm1434_vm0, %v1427_v12 }
  0x94   :  { %2816 = vmatprep.mubr.msk.f32.mxu1 %vm1434_vm0, %v1427_v12 }
  0x96   :  { %2767 = vmatmul.mubr.msk.f32.gmra.mxu0 %vm1434_vm0, %v1428_v13 }
  0x97   :  { %2817 = vmatmul.mubr.msk.f32.gmra.mxu1 %vm1434_vm0, %v1428_v13  ;;  %2769 = vmatprep.mubr.msk.f32.mxu0 %vm1434_vm0, %v1429_v14  ;;  %v1307_v13 = vld [vmem:[%s4025_s8 + $0x10] sm:$0xff] }
  0x98   :  { %2819 = vmatprep.mubr.msk.f32.mxu1 %vm1434_vm0, %v1429_v14 }
  0x9a   :  { %2770 = vmatmul.mubr.msk.f32.gmra.mxu0 %vm1434_vm0, %v1430_v15 }
  0x9b   :  { %2820 = vmatmul.mubr.msk.f32.gmra.mxu1 %vm1434_vm0, %v1430_v15  ;;  %2772 = vmatprep.mubr.msk.f32.mxu0 %vm1434_vm0, %v1431_v16 }
  0x9c   :  { %2822 = vmatprep.mubr.msk.f32.mxu1 %vm1434_vm0, %v1431_v16 }
  0x9e   :  { %2773 = vmatmul.mubr.msk.f32.gmra.mxu0 %vm1434_vm0, %v1432_v17 }
  0x9f   :  { %2823 = vmatmul.mubr.msk.f32.gmra.mxu1 %vm1434_vm0, %v1432_v17 }
  0xe2   :  { %v2647_v20 = vpop.f32.mrf.mxu0 }
  0xe3   :  { %v2695_v21 = vpop.f32.mrf.mxu1  ;;  %v3320_v43 = vadd.f32 %v2647_v20, %v3309_v37 }
  0xe4   :  { %v3288_v22 = vadd.f32 %v2695_v21, %v3285_v19  ;;  %v374_v23 = vpop.f32.mrf.mxu0 }
  0xe5   :  { %v823_v24 = vpop.f32.mrf.mxu1  ;;  %v3323_v45 = vadd.f32 %v3309_v37, %v374_v23 }
  0xe6   :  { %2857 = vrsqrt.f32 %v3288_v22  ;;  %v3292_v25 = vadd.f32 %v823_v24, %v3285_v19  ;;  %v2648_v26 = vpop.f32.mrf.mxu0  ;;  %vm1097_vm1 = vcmp.eq.f32.partialorder %v3288_v22, inf  ;;  %vm1099_vm3 = vcmp.eq.f32.partialorder %v3288_v22, 0.0 }
  0xe7   :  { %v2696_v27 = vpop.f32.mrf.mxu1  ;;  %v3331_v49 = vadd.f32 %v2648_v26, %v3309_v37  ;;  %v1100_v51 = vand.u32 2147483648, %v3288_v22 }
  0xe8   :  { %2859 = vrsqrt.f32 %v3292_v25  ;;  %v3296_v28 = vadd.f32 %v2696_v27, %v3285_v19  ;;  %v377_v29 = vpop.f32.mrf.mxu0  ;;  %vm1083_vm2 = vcmp.eq.f32.partialorder %v3292_v25, inf  ;;  %vm1085_vm4 = vcmp.eq.f32.partialorder %v3292_v25, 0.0 }
  0xe9   :  { %v826_v30 = vpop.f32.mrf.mxu1  ;;  %v3337_v52 = vadd.f32 %v3309_v37, %v377_v29  ;;  %v1086_v58 = vand.u32 2147483648, %v3292_v25 }
  0xea   :  { %2861 = vrsqrt.f32 %v3296_v28  ;;  %v3300_v31 = vadd.f32 %v826_v30, %v3285_v19  ;;  %v2651_v32 = vpop.f32.mrf.mxu0  ;;  %vm1104_vm5 = vcmp.eq.f32.partialorder %v3296_v28, inf  ;;  %v1107_v59 = vand.u32 2147483648, %v3296_v28 }
  0xeb   :  { %v2699_v33 = vpop.f32.mrf.mxu1  ;;  %v3343_v56 = vadd.f32 %v2651_v32, %v3309_v37  ;;  %vm1106_vm8 = vcmp.eq.f32.partialorder %v3296_v28, 0.0 }
  0xec   :  { %2863 = vrsqrt.f32 %v3300_v31  ;;  %v3304_v34 = vadd.f32 %v2699_v33, %v3285_v19  ;;  %v390_v35 = vpop.f32.mrf.mxu0  ;;  %vm1090_vm6 = vcmp.eq.f32.partialorder %v3300_v31, inf  ;;  %vm1092_vm7 = vcmp.eq.f32.partialorder %v3300_v31, 0.0 }
  0xed   :  { %v839_v36 = vpop.f32.mrf.mxu1  ;;  %v3357_v1 = vadd.f32 %v3309_v37, %v390_v35  ;;  %v1093_v4 = vand.u32 2147483648, %v3300_v31  ;;  %v1305_v35 = vld [vmem:[%s4025_s8] sm:$0xff] }
  0xee   :  { %2865 = vrsqrt.f32 %v3304_v34  ;;  %v3313_v38 = vadd.f32 %v839_v36, %v3285_v19  ;;  %v2652_v39 = vpop.f32.mrf.mxu0  ;;  %vm1125_vm10 = vcmp.eq.f32.partialorder %v3304_v34, inf  ;;  %v1128_v7 = vand.u32 2147483648, %v3304_v34 }
  0xef   :  { %v2700_v40 = vpop.f32.mrf.mxu1  ;;  %v3360_v2 = vadd.f32 %v2652_v39, %v3309_v37  ;;  %vm1127_vm13 = vcmp.eq.f32.partialorder %v3304_v34, 0.0 }
  0xf0   :  { %2867 = vrsqrt.f32 %v3313_v38  ;;  %v3317_v41 = vadd.f32 %v2700_v40, %v3285_v19  ;;  %v393_v42 = vpop.f32.mrf.mxu0  ;;  %vm1111_vm9 = vcmp.eq.f32.partialorder %v3313_v38, inf  ;;  %vm1113_vm11 = vcmp.eq.f32.partialorder %v3313_v38, 0.0 }
  0xf1   :  { %v842_v44 = vpop.f32.mrf.mxu1  ;;  %v3391_v20 = vadd.f32 %v3309_v37, %v393_v42  ;;  %v1114_v23 = vand.u32 2147483648, %v3313_v38 }
  0xf2   :  { %2869 = vrsqrt.f32 %v3317_v41  ;;  %v3327_v46 = vadd.f32 %v842_v44, %v3285_v19  ;;  %v2655_v47 = vpop.f32.mrf.mxu0  ;;  %vm1132_vm12 = vcmp.eq.f32.partialorder %v3317_v41, inf  ;;  %v1135_v29 = vand.u32 2147483648, %v3317_v41 }
  0xf3   :  { %v2858_v48 = vpop.eup %2857  ;;  %v2703_v50 = vpop.f32.mrf.mxu1  ;;  %v3394_v21 = vadd.f32 %v2655_v47, %v3309_v37  ;;  %vm1134_vm14 = vcmp.eq.f32.partialorder %v3317_v41, 0.0 }
  0xf4   :  { %2871 = vrsqrt.f32 %v3327_v46  ;;  %v406_v53 = vpop.f32.mrf.mxu0  ;;  %v1096_v54 = vmul.f32 %v2858_v48, %v3288_v22  ;;  %v3373_v9 = vadd.f32 %v2703_v50, %v3285_v19  ;;  %vm1118_vm15 = vcmp.eq.f32.partialorder %v3327_v46, inf }
  0xf5   :  { %v2860_v55 = vpop.eup %2859  ;;  %v855_v57 = vpop.f32.mrf.mxu1  ;;  %v3416_v40 = vadd.f32 %v3309_v37, %v406_v53  ;;  %v1121_v44 = vand.u32 2147483648, %v3327_v46  ;;  %vm1120_vm0 = vcmp.eq.f32.partialorder %v3327_v46, 0.0 }
  0xf6   :  { %v3349_v60 = vadd.f32 %v855_v57, %v3285_v19  ;;  %v2656_v61 = vpop.f32.mrf.mxu0  ;;  %v1082_v62 = vmul.f32 %v2860_v55, %v3292_v25  ;;  %v1098_v63 = vsel %vm1097_vm1, %v3288_v22, %v1096_v54  ;;  %v1306_v54 = vld [vmem:[%s4025_s8 + $0x8] sm:$0xff] }
  0xf7   :  { %v2862_v0 = vpop.eup %2861  ;;  %v2704_v3 = vpop.f32.mrf.mxu1  ;;  %v1101_v12 = vsel %vm1099_vm3, %v1100_v51, %v1098_v63  ;;  %v3419_v42 = vadd.f32 %v2656_v61, %v3309_v37 }
  0xf8   :  { %2873 = vrsqrt.f32 %v3349_v60  ;;  %v3367_v5 = vadd.f32 %v2704_v3, %v3285_v19  ;;  %v409_v6 = vpop.f32.mrf.mxu0  ;;  %v1103_v11 = vmul.f32 %v2862_v0, %v3296_v28  ;;  %v1084_v17 = vsel %vm1083_vm2, %v3292_v25, %v1082_v62 }
  0xf9   :  { %v2864_v8 = vpop.eup %2863  ;;  %v858_v10 = vpop.f32.mrf.mxu1  ;;  %v1339_v27 = vmul.f32 %v1307_v13, %v1101_v12  ;;  %v1087_v33 = vsel %vm1085_vm4, %v1086_v58, %v1084_v17  ;;  %v3424_v48 = vadd.f32 %v3309_v37, %v409_v6  ;;  %vm1139_vm1 = vcmp.eq.f32.partialorder %v3349_v60, inf  ;;  %v1309_v13 = vld [vmem:[%s4025_s8 + $0x20] sm:$0xff] }
  0xfa   :  { %2875 = vrsqrt.f32 %v3367_v5  ;;  %v3384_v14 = vadd.f32 %v858_v10, %v3285_v19  ;;  %v2659_v15 = vpop.f32.mrf.mxu0  ;;  %v1089_v16 = vmul.f32 %v2864_v8, %v3300_v31  ;;  %v1105_v36 = vsel %vm1104_vm5, %v3296_v28, %v1103_v11 }
  0xfb   :  { %v2866_v18 = vpop.eup %2865  ;;  %v2707_v22 = vpop.f32.mrf.mxu1  ;;  %v3437_v57 = vadd.f32 %v2659_v15, %v3309_v37  ;;  %v1337_v61 = vmul.f32 %v1305_v35, %v1087_v33  ;;  %v1108_v62 = vsel %vm1106_vm8, %v1107_v59, %v1105_v36  ;;  %v3447_v63 = vadd.f32 %v1339_v27, %v3320_v43  ;;  %v1311_v27 = vld [vmem:[%s4025_s8 + $0x30] sm:$0xff] }
  0xfc   :  { %2877 = vrsqrt.f32 %v3384_v14  ;;  %v422_v24 = vpop.f32.mrf.mxu0  ;;  %v1091_v26 = vsel %vm1090_vm6, %v3300_v31, %v1089_v16  ;;  %v1124_v39 = vmul.f32 %v2866_v18, %v3304_v34  ;;  %v1308_v31 = vld [vmem:[%s4025_s8 + $0x18] sm:$0xff]  ;;  %v3450_v3 = vadd.f32 %v2707_v22, %v3285_v19 }
  0xfd   :  { %v2868_v30 = vpop.eup %2867  ;;  %2879 = vrsqrt.f32 %v3373_v9  ;;  %v871_v32 = vpop.f32.mrf.mxu1  ;;  %v1094_v53 = vsel %vm1092_vm7, %v1093_v4, %v1091_v26  ;;  %v1340_v17 = vmul.f32 %v1308_v31, %v1108_v62  ;;  %vm1141_vm2 = vcmp.eq.f32.partialorder %v3349_v60, 0.0 }
  0xfe   :  { %v2660_v25 = vpop.f32.mrf.mxu0  ;;  %v3427_v50 = vadd.f32 %v871_v32, %v3285_v19  ;;  %v1110_v55 = vmul.f32 %v2868_v30, %v3313_v38  ;;  %v1126_v28 = vsel %vm1125_vm10, %v3304_v34, %v1124_v39  ;;  %v1338_v10 = vmul.f32 %v1306_v54, %v1094_v53  ;;  %v1312_v39 = vld [vmem:[%s4025_s8 + $0x38] sm:$0xff] }
  0xff   :  { %v2870_v47 = vpop.eup %2869  ;;  %v2708_v51 = vpop.f32.mrf.mxu1  ;;  %v1129_v26 = vsel %vm1127_vm13, %v1128_v7, %v1126_v28  ;;  %v3499_v35 = vadd.f32 %v2660_v25, %v3309_v37  ;;  %vm1146_vm3 = vcmp.eq.f32.partialorder %v3384_v14, inf  ;;  %vm1153_vm4 = vcmp.eq.f32.partialorder %v3373_v9, inf }
 0x100   :  { %v425_v58 = vpop.f32.mrf.mxu0  ;;  %v1112_v6 = vsel %vm1111_vm9, %v3313_v38, %v1110_v55  ;;  %v1131_v8 = vmul.f32 %v2870_v47, %v3317_v41  ;;  %2881 = vrsqrt.f32 %v3427_v50  ;;  %v3471_v15 = vadd.f32 %v2708_v51, %v3285_v19 }
 0x101   :  { %v2872_v0 = vpop.eup %2871  ;;  %v874_v4 = vpop.f32.mrf.mxu1  ;;  %v1115_v12 = vsel %vm1113_vm11, %v1114_v23, %v1112_v6  ;;  %v3478_v38 = vadd.f32 %v3309_v37, %v422_v24  ;;  %v3482_v23 = vadd.f32 %v1337_v61, %v3323_v45  ;;  %v3502_v7 = vadd.f32 %v1338_v10, %v3337_v52 }
 0x102   :  { %v3461_v43 = vadd.f32 %v874_v4, %v3285_v19  ;;  %v2663_v59 = vpop.f32.mrf.mxu0  ;;  %v1117_v11 = vmul.f32 %v2872_v0, %v3327_v46  ;;  %v1133_v18 = vsel %vm1132_vm12, %v3317_v41, %v1131_v8  ;;  %v1341_v33 = vmul.f32 %v1309_v13, %v1115_v12 }
 0x103   :  { %v2711_v16 = vpop.f32.mrf.mxu1  ;;  %v1136_v36 = vsel %vm1134_vm14, %v1135_v29, %v1133_v18  ;;  %v3514_v25 = vadd.f32 %v3309_v37, %v425_v58  ;;  %v3517_v52 = vadd.f32 %v1340_v17, %v3331_v49  ;;  %v1343_v53 = vmul.f32 %v1311_v27, %v1129_v26  ;;  %v1310_v49 = vld [vmem:[%s4025_s8 + $0x28] sm:$0xff] }
 0x104   :  { %2883 = vrsqrt.f32 %v3461_v43  ;;  %v438_v22 = vpop.f32.mrf.mxu0  ;;  %v3493_v24 = vadd.f32 %v2711_v16, %v3285_v19  ;;  %v1119_v45 = vsel %vm1118_vm15, %v3327_v46, %v1117_v11  ;;  %v3521_v41 = vadd.f32 %v2663_v59, %v3309_v37 }
 0x105   :  { %v2874_v30 = vpop.eup %2873  ;;  %2885 = vrsqrt.f32 %v3450_v3  ;;  %v887_v32 = vpop.f32.mrf.mxu1  ;;  %v3524_v29 = vadd.f32 %v3309_v37, %v438_v22  ;;  %v1122_v55 = vsel %vm1120_vm0, %v1121_v44, %v1119_v45  ;;  %v3536_v31 = vadd.f32 %v1341_v33, %v3357_v1 }
 0x106   :  { %v2664_v34 = vpop.f32.mrf.mxu0  ;;  %2887 = vrsqrt.f32 %v3471_v15  ;;  %v1138_v58 = vmul.f32 %v2874_v30, %v3349_v60  ;;  %v1344_v0 = vmul.f32 %v1312_v39, %v1136_v36  ;;  %v1142_v4 = vand.u32 2147483648, %v3349_v60  ;;  %v1314_v30 = vld [vmem:[%s4025_s8 + $0x48] sm:$0xff] }
 0x107   :  { %v2876_v47 = vpop.eup %2875  ;;  %v2712_v51 = vpop.f32.mrf.mxu1  ;;  %2889 = vrsqrt.f32 %v3493_v24  ;;  %vm1155_vm5 = vcmp.eq.f32.partialorder %v3373_v9, 0.0  ;;  %v3549_v1 = vadd.f32 %v887_v32, %v3285_v19  ;;  %v1342_v11 = vmul.f32 %v1310_v49, %v1122_v55 }
 0x108   :  { %v441_v54 = vpop.f32.mrf.mxu0  ;;  %v1140_v28 = vsel %vm1139_vm1, %v3349_v60, %v1138_v58  ;;  %v1159_v59 = vmul.f32 %v2876_v47, %v3367_v5  ;;  %v3552_v12 = vadd.f32 %v1343_v53, %v3343_v56  ;;  %v1149_v13 = vand.u32 2147483648, %v3384_v14  ;;  %v1313_v56 = vld [vmem:[%s4025_s8 + $0x40] sm:$0xff] }
 0x109   :  { %v2878_v61 = vpop.eup %2877  ;;  %v890_v62 = vpop.f32.mrf.mxu1  ;;  %v3556_v16 = vadd.f32 %v2712_v51, %v3285_v19  ;;  %vm1148_vm6 = vcmp.eq.f32.partialorder %v3384_v14, 0.0  ;;  %v1143_v22 = vsel %vm1141_vm2, %v1142_v4, %v1140_v28  ;;  %vm1160_vm7 = vcmp.eq.f32.partialorder %v3367_v5, inf  ;;  %v1316_v4 = vld [vmem:[%s4025_s8 + $0x58] sm:$0xff] }
 0x10a   :  { %v2880_v6 = vpop.eup %2879  ;;  %v3540_v46 = vadd.f32 %v890_v62, %v3285_v19  ;;  %v2667_v44 = vpop.f32.mrf.mxu0  ;;  %v1145_v8 = vmul.f32 %v2878_v61, %v3384_v14  ;;  %v3580_v33 = vadd.f32 %v1344_v0, %v3360_v2  ;;  %v1161_v36 = vsel %vm1160_vm7, %v3367_v5, %v1159_v59 }
 0x10b   :  { %v2715_v10 = vpop.f32.mrf.mxu1  ;;  %v1152_v32 = vmul.f32 %v2880_v6, %v3373_v9  ;;  %v3585_v47 = vadd.f32 %v1342_v11, %v3391_v20  ;;  %v1345_v51 = vmul.f32 %v1313_v56, %v1143_v22  ;;  %v1163_v53 = vand.u32 2147483648, %v3367_v5 }
 0x10c   :  { %v454_v17 = vpop.f32.mrf.mxu0  ;;  %v1147_v18 = vsel %vm1146_vm3, %v3384_v14, %v1145_v8  ;;  %2891 = vrsqrt.f32 %v3540_v46  ;;  %v3574_v14 = vadd.f32 %v2664_v34, %v3309_v37  ;;  %v3577_v60 = vadd.f32 %v2715_v10, %v3285_v19 }
 0x10d   :  { %v903_v26 = vpop.f32.mrf.mxu1  ;;  %v1150_v27 = vsel %vm1148_vm6, %v1149_v13, %v1147_v18  ;;  %2893 = vrsqrt.f32 %v3549_v1  ;;  %v2882_v34 = vpop.eup %2881  ;;  %vm1162_vm8 = vcmp.eq.f32.partialorder %v3367_v5, 0.0  ;;  %v1154_v2 = vsel %vm1153_vm4, %v3373_v9, %v1152_v32 }
 0x10e   :  { %v2668_v45 = vpop.f32.mrf.mxu0  ;;  %v3589_v55 = vadd.f32 %v903_v26, %v3285_v19  ;;  %v1346_v58 = vmul.f32 %v1314_v30, %v1150_v27  ;;  %2895 = vrsqrt.f32 %v3556_v16  ;;  %v3597_v20 = vadd.f32 %v3309_v37, %v441_v54 }
 0x10f   :  { %v2716_v39 = vpop.f32.mrf.mxu1  ;;  %v1164_v0 = vsel %vm1162_vm8, %v1163_v53, %v1161_v36  ;;  %v1156_v6 = vand.u32 2147483648, %v3373_v9  ;;  %v3604_v5 = vadd.f32 %v2667_v44, %v3309_v37  ;;  %2897 = vrsqrt.f32 %v3577_v60  ;;  %v1315_v44 = vld [vmem:[%s4025_s8 + $0x50] sm:$0xff] }
 0x110   :  { %v457_v49 = vpop.f32.mrf.mxu0  ;;  %v3608_v28 = vadd.f32 %v3309_v37, %v454_v17  ;;  %v3611_v54 = vadd.f32 %v2716_v39, %v3285_v19  ;;  %v3614_v11 = vadd.f32 %v1345_v51, %v3416_v40  ;;  %v1166_v17 = vmul.f32 %v2882_v34, %v3427_v50 }
 0x111   :  { %v2884_v61 = vpop.eup %2883  ;;  %v906_v62 = vpop.f32.mrf.mxu1  ;;  %v1157_v13 = vsel %vm1155_vm5, %v1156_v6, %v1154_v2  ;;  %2899 = vrsqrt.f32 %v3589_v55  ;;  %v3625_v56 = vadd.f32 %v2668_v45, %v3309_v37  ;;  %v3628_v40 = vadd.f32 %v1346_v58, %v3424_v48 }
 0x112   :  { %v2886_v8 = vpop.eup %2885  ;;  %v2671_v59 = vpop.f32.mrf.mxu0  ;;  %v1173_v18 = vmul.f32 %v2884_v61, %v3461_v43  ;;  %v1348_v9 = vmul.f32 %v1316_v4, %v1164_v0  ;;  %v3631_v27 = vadd.f32 %v3309_v37, %v457_v49  ;;  %v3634_v30 = vadd.f32 %v906_v62, %v3285_v19 }
 0x113   :  { %v2719_v10 = vpop.f32.mrf.mxu1  ;;  %v2888_v22 = vpop.eup %2887  ;;  %vm1174_vm9 = vcmp.eq.f32.partialorder %v3461_v43, inf  ;;  %vm1176_vm10 = vcmp.eq.f32.partialorder %v3461_v43, 0.0  ;;  %2901 = vrsqrt.f32 %v3611_v54  ;;  %v1347_v39 = vmul.f32 %v1315_v44, %v1157_v13 }
 0x114   :  { %v470_v26 = vpop.f32.mrf.mxu0  ;;  %v3638_v36 = vpop.eup %2889  ;;  %v1175_v48 = vsel %vm1174_vm9, %v3461_v43, %v1173_v18  ;;  %vm1167_vm11 = vcmp.eq.f32.partialorder %v3427_v50, inf  ;;  %v3644_v51 = vadd.f32 %v2719_v10, %v3285_v19  ;;  %v1177_v34 = vand.u32 2147483648, %v3461_v43  ;;  %v1318_v10 = vld [vmem:[%s4025_s8 + $0x68] sm:$0xff]  ;;  %v1317_v43 = vld [vmem:[%s4025_s8 + $0x60] sm:$0xff] }
 0x115   :  { %v919_v32 = vpop.f32.mrf.mxu1  ;;  %v1168_v49 = vsel %vm1167_vm11, %v3427_v50, %v1166_v17  ;;  %v1187_v58 = vmul.f32 %v2888_v22, %v3471_v15  ;;  %v3650_v2 = vadd.f32 %v2671_v59, %v3309_v37  ;;  %v3653_v62 = vadd.f32 %v1348_v9, %v3419_v42 }
 0x116   :  { %v2672_v45 = vpop.f32.mrf.mxu0  ;;  %v1170_v0 = vand.u32 2147483648, %v3427_v50  ;;  %vm1188_vm12 = vcmp.eq.f32.partialorder %v3471_v15, inf  ;;  %2903 = vrsqrt.f32 %v3634_v30  ;;  %v1178_v6 = vsel %vm1176_vm10, %v1177_v34, %v1175_v48 }
 0x117   :  { %v2720_v53 = vpop.f32.mrf.mxu1  ;;  %4029 = vst [vmem:[#allocation4_spill] sm:$0xff] %v3650_v2  ;;  %vm1169_vm13 = vcmp.eq.f32.partialorder %v3427_v50, 0.0  ;;  %v1189_v59 = vsel %vm1188_vm12, %v3471_v15, %v1187_v58  ;;  %v3668_v44 = vadd.f32 %v1347_v39, %v3394_v21  ;;  %v1191_v17 = vand.u32 2147483648, %v3471_v15  ;;  %v1320_v21 = vld [vmem:[%s4025_s8 + $0x78] sm:$0xff] }
 0x118   :  { %v473_v61 = vpop.f32.mrf.mxu0  ;;  %v1171_v18 = vsel %vm1169_vm13, %v1170_v0, %v1168_v49  ;;  %v1180_v22 = vmul.f32 %v2886_v8, %v3450_v3  ;;  %2905 = vrsqrt.f32 %v3644_v51  ;;  %v3677_v50 = vadd.f32 %v3309_v37, %v470_v26 }
 0x119   :  { %v922_v4 = vpop.f32.mrf.mxu1  ;;  %v2892_v42 = vpop.eup %2891  ;;  %v3680_v9 = vadd.f32 %v919_v32, %v3285_v19  ;;  %vm1190_vm14 = vcmp.eq.f32.partialorder %v3471_v15, 0.0  ;;  %v3687_v34 = vadd.f32 %v2720_v53, %v3285_v19  ;;  %v1350_v49 = vmul.f32 %v1318_v10, %v1178_v6 }
 0x11a   :  { %v3665_v13 = vpop.f32.mrf.mxu0  ;;  %4031 = vst [vmem:[#allocation6_spill] sm:$0xff] %v3677_v50  ;;  %v2894_v39 = vpop.eup %2893  ;;  %v1192_v58 = vsel %vm1190_vm14, %v1191_v17, %v1189_v59  ;;  %vm1181_vm15 = vcmp.eq.f32.partialorder %v3450_v3, inf  ;;  %v3693_v26 = vadd.f32 %v922_v4, %v3285_v19  ;;  %v1349_v0 = vmul.f32 %v1317_v43, %v1171_v18 }
 0x11b   :  { %4030 = vst [vmem:[#allocation5_spill] sm:$0xff] %v3665_v13  ;;  %v2723_v48 = vpop.f32.mrf.mxu1  ;;  %v1182_v15 = vsel %vm1181_vm15, %v3450_v3, %v1180_v22  ;;  %v1201_v13 = vmul.f32 %v2892_v42, %v3540_v46  ;;  %v2896_v2 = vpop.eup %2895  ;;  %v3698_v50 = vadd.f32 %v2672_v45, %v3309_v37  ;;  %v1352_v10 = vmul.f32 %v1320_v21, %v1192_v58 }
 0x11c   :  { %v3689_v8 = vpop.f32.mrf.mxu0  ;;  %v3701_v53 = vadd.f32 %v2723_v48, %v3285_v19  ;;  %v1184_v59 = vand.u32 2147483648, %v3450_v3  ;;  %v3706_v4 = vpop.eup %2897  ;;  %2907 = vrsqrt.f32 %v3680_v9  ;;  %v3710_v18 = vadd.f32 %v3309_v37, %v473_v61  ;;  %v1319_v48 = vld [vmem:[%s4025_s8 + $0x70] sm:$0xff] }
 0x11d   :  { %4032 = vst [vmem:[#allocation7_spill] sm:$0xff] %v3689_v8  ;;  %v935_v32 = vpop.f32.mrf.mxu1  ;;  %4033 = vst [vmem:[#allocation8_spill] sm:$0xff] %v3698_v50  ;;  %vm1183_vm0 = vcmp.eq.f32.partialorder %v3450_v3, 0.0  ;;  %2909 = vrsqrt.f32 %v3687_v34  ;;  %v3720_v17 = vadd.f32 %v1350_v49, %v3514_v25  ;;  %vm1202_vm1 = vcmp.eq.f32.partialorder %v3540_v46, inf }
 0x11e   :  { %4034 = vst [vmem:[#allocation9_spill] sm:$0xff] %v3701_v53  ;;  %v3703_v6 = vpop.f32.mrf.mxu0  ;;  %v3713_v42 = vadd.f32 %v935_v32, %v3285_v19  ;;  %v1185_v22 = vsel %vm1183_vm0, %v1184_v59, %v1182_v15  ;;  %v3726_v37 = vpop.eup %2899  ;;  %2911 = vrsqrt.f32 %v3693_v26  ;;  %v3730_v3 = vadd.f32 %v1349_v0, %v3478_v38 }
 0x11f   :  { %4035 = vst [vmem:[#allocation10_spill] sm:$0xff] %v3703_v6  ;;  %v2724_v45 = vpop.f32.mrf.mxu1  ;;  %v1203_v21 = vsel %vm1202_vm1, %v3540_v46, %v1201_v13  ;;  %v1194_v25 = vmul.f32 %v2894_v39, %v3549_v1  ;;  %2913 = vrsqrt.f32 %v3701_v53  ;;  %v3736_v58 = vadd.f32 %v1352_v10, %v3499_v35  ;;  %v1322_v35 = vld [vmem:[%s4025_s8 + $0x88] sm:$0xff] }
 0x120   :  { %v3717_v43 = vpop.f32.mrf.mxu0  ;;  %vm1204_vm2 = vcmp.eq.f32.partialorder %v3540_v46, 0.0  ;;  %v1205_v32 = vand.u32 2147483648, %v3540_v46  ;;  %v3740_v15 = vpop.eup %2901  ;;  %2915 = vrsqrt.f32 %v3713_v42  ;;  %v3744_v38 = vadd.f32 %v2724_v45, %v3285_v19 }
 0x121   :  { %4036 = vst [vmem:[#allocation11_spill] sm:$0xff] %v3717_v43  ;;  %v938_v61 = vpop.f32.mrf.mxu1  ;;  %v3747_v0 = vmul.f32 %v1319_v48, %v1185_v22  ;;  %vm1195_vm3 = vcmp.eq.f32.partialorder %v3549_v1, inf  ;;  %vm1197_vm4 = vcmp.eq.f32.partialorder %v3549_v1, 0.0  ;;  %v1215_v46 = vmul.f32 %v2896_v2, %v3556_v16 }
 0x122   :  { %v2729_v49 = vpop.f32.mrf.mxu0  ;;  %v1206_v6 = vsel %vm1204_vm2, %v1205_v32, %v1203_v21  ;;  %vm1216_vm5 = vcmp.eq.f32.partialorder %v3556_v16, inf  ;;  %v3759_v48 = vadd.f32 %v938_v61, %v3285_v19  ;;  %v1208_v2 = vmul.f32 %v3638_v36, %v3493_v24 }
 0x123   :  { %v1983_v13 = vmul.f32 %v2729_v49, %v3502_v7  ;;  %v2779_v39 = vpop.f32.mrf.mxu1  ;;  %v1196_v7 = vsel %vm1195_vm3, %v3549_v1, %v1194_v25  ;;  %v2904_v22 = vpop.eup %2903  ;;  %v1198_v49 = vand.u32 2147483648, %v3549_v1  ;;  %v1217_v32 = vsel %vm1216_vm5, %v3556_v16, %v1215_v46 }
 0x124   :  { %v1597_v59 = vpop.f32.mrf.mxu0  ;;  %v1219_v25 = vand.u32 2147483648, %v3556_v16  ;;  %vm1218_vm6 = vcmp.eq.f32.partialorder %v3556_v16, 0.0  ;;  %vm1209_vm7 = vcmp.eq.f32.partialorder %v3493_v24, inf  ;;  %vm1211_vm8 = vcmp.eq.f32.partialorder %v3493_v24, 0.0 }
 0x125   :  { %v2015_v10 = vadd.f32 %v2779_v39, %v1983_v13  ;;  %v1982_v45 = vmul.f32 %v1597_v59, %v3482_v23  ;;  %v1823_v8 = vpop.f32.mrf.mxu1  ;;  %v1354_v59 = vmul.f32 %v1322_v35, %v1206_v6  ;;  %v3767_v43 = vpop.eup %2905  ;;  %v1199_v61 = vsel %vm1197_vm4, %v1198_v49, %v1196_v7 }
 0x126   :  { %v2732_v21 = vpop.f32.mrf.mxu0  ;;  %v1210_v35 = vsel %vm1209_vm7, %v3493_v24, %v1208_v2  ;;  %v1229_v1 = vmul.f32 %v2904_v22, %v3634_v30  ;;  %vm1230_vm9 = vcmp.eq.f32.partialorder %v3634_v30, inf  ;;  %vm1232_vm10 = vcmp.eq.f32.partialorder %v3634_v30, 0.0 }
 0x127   :  { %v2014_v13 = vadd.f32 %v1982_v45, %v1823_v8  ;;  %v1985_v23 = vmul.f32 %v2732_v21, %v3517_v52  ;;  %v2782_v39 = vpop.f32.mrf.mxu1  ;;  %v2047_v50 = vmax.f32 %v2015_v10, 0.0  ;;  %v1220_v45 = vsel %vm1218_vm6, %v1219_v25, %v1217_v32  ;;  %v1324_v32 = vld [vmem:[%s4025_s8 + $0x98] sm:$0xff] }
 0x128   :  { %v1607_v19 = vpop.f32.mrf.mxu0  ;;  %v1212_v10 = vand.u32 2147483648, %v3493_v24  ;;  %2917 = vrsqrt.f32 %v3744_v38  ;;  %v1326_v24 = vld [vmem:[%s4025_s8 + $0xa8] sm:$0xff]  ;;  %vm1223_vm11 = vcmp.eq.f32.partialorder %v3589_v55, inf  ;;  %vm1225_vm12 = vcmp.eq.f32.partialorder %v3589_v55, 0.0 }
 0x129   :  { %v2046_v46 = vmax.f32 %v2014_v13, 0.0  ;;  %v2017_v36 = vadd.f32 %v2782_v39, %v1985_v23  ;;  %v1984_v8 = vmul.f32 %v1607_v19, %v3447_v63  ;;  %v1833_v52 = vpop.f32.mrf.mxu1  ;;  %v1321_v63 = vld [vmem:[%s4025_s8 + $0x80] sm:$0xff]  ;;  %v3786_v2 = vpop.eup %2907  ;;  %2919 = vrsqrt.f32 %v3759_v48 }
 0x12a   :  { %v2735_v6 = vpop.f32.mrf.mxu0  ;;  %v3791_v22 = vpop.eup %2909  ;;  %vm1244_vm13 = vcmp.eq.f32.partialorder %v3611_v54, inf  ;;  %vm1246_vm14 = vcmp.eq.f32.partialorder %v3611_v54, 0.0  ;;  %vm1237_vm15 = vcmp.eq.f32.partialorder %v3577_v60, inf  ;;  %vm1239_vm0 = vcmp.eq.f32.partialorder %v3577_v60, 0.0 }
 0x12b   :  { %v2423_v7 = vpack.c.bf16 %v2047_v50, %v2046_v46  ;;  %v2016_v21 = vadd.f32 %v1984_v8, %v1833_v52  ;;  %v1987_v16 = vmul.f32 %v2735_v6, %v3585_v47  ;;  %v2785_v49 = vpop.f32.mrf.mxu1  ;;  %v2049_v13 = vmax.f32 %v2017_v36, 0.0  ;;  %v1323_v8 = vld [vmem:[%s4025_s8 + $0x90] sm:$0xff]  ;;  %v2912_v52 = vpop.eup %2911 }
 0x12c   :  { %v1617_v23 = vpop.f32.mrf.mxu0  ;;  %v1231_v50 = vsel %vm1230_vm9, %v3634_v30, %v1229_v1  ;;  %v1233_v47 = vand.u32 2147483648, %v3634_v30  ;;  %v1213_v36 = vsel %vm1211_vm8, %v1212_v10, %v1210_v35  ;;  %v1353_v6 = vmul.f32 %v1321_v63, %v1199_v61 }
 0x12d   :  { %2424 = vst [vmem:[%s4026_s9] sm:$0xff] %v2423_v7   ;;  %v2048_v39 = vmax.f32 %v2016_v21, 0.0  ;;  %v2019_v25 = vadd.f32 %v2785_v49, %v1987_v16  ;;  %v1986_v19 = vmul.f32 %v1617_v23, %v3536_v31  ;;  %v1843_v46 = vpop.f32.mrf.mxu1  ;;  %v1356_v1 = vmul.f32 %v1324_v32, %v1220_v45  ;;  %v3803_v7 = vpop.eup %2913 }
 0x12e   :  { %v2738_v30 = vpop.f32.mrf.mxu0  ;;  %v1234_v53 = vsel %vm1232_vm10, %v1233_v47, %v1231_v50  ;;  %v1222_v35 = vmul.f32 %v3726_v37, %v3589_v55  ;;  %v3811_v10 = vpop.eup %2915  ;;  %v3816_v45 = vadd.f32 %v3747_v0, %v3437_v57  ;;  %v3819_v63 = vadd.f32 %v1354_v59, %v3597_v20 }
 0x12f   :  { %v2428_v21 = vpack.c.bf16 %v2049_v13, %v2048_v39  ;;  %v2018_v16 = vadd.f32 %v1986_v19, %v1843_v46  ;;  %v1989_v31 = vmul.f32 %v2738_v30, %v3580_v33  ;;  %v2788_v49 = vpop.f32.mrf.mxu1  ;;  %v1355_v33 = vmul.f32 %v1323_v8, %v1213_v36 }
 0x130   :  { %v1627_v61 = vpop.f32.mrf.mxu0  ;;  %v2051_v32 = vmax.f32 %v2019_v25, 0.0  ;;  %v3826_v39 = vadd.f32 %v1353_v6, %v3524_v29  ;;  %v3829_v57 = vadd.f32 %v1356_v1, %v3574_v14  ;;  %v1358_v20 = vmul.f32 %v1326_v24, %v1234_v53 }
 0x131   :  { %2500 = vst [vmem:[%s4026_s9 + $0x8] sm:$0xff] %v2428_v21   ;;  %v2050_v13 = vmax.f32 %v2018_v16, 0.0  ;;  %v2021_v37 = vadd.f32 %v2788_v49, %v1989_v31  ;;  %v1988_v23 = vmul.f32 %v1627_v61, %v3552_v12  ;;  %v1853_v50 = vpop.f32.mrf.mxu1  ;;  %v1224_v46 = vsel %vm1223_vm11, %v3589_v55, %v1222_v35 }
 0x132   :  { %v2741_v47 = vpop.f32.mrf.mxu0  ;;  %v3835_v12 = vadd.f32 %v1355_v33, %v3521_v41  ;;  %v1226_v29 = vand.u32 2147483648, %v3589_v55  ;;  %v1243_v14 = vmul.f32 %v3740_v15, %v3611_v54  ;;  %v3846_v41 = vadd.f32 %v1358_v20, %v3631_v27 }
 0x133   :  { %v2433_v0 = vpack.c.bf16 %v2051_v32, %v2050_v13  ;;  %v2020_v59 = vadd.f32 %v1988_v23, %v1853_v50  ;;  %v1991_v19 = vmul.f32 %v2741_v47, %v3628_v40  ;;  %v2791_v25 = vpop.f32.mrf.mxu1  ;;  %v2053_v53 = vmax.f32 %v2021_v37, 0.0 }
 0x134   :  { %v1637_v36 = vpop.f32.mrf.mxu0  ;;  %v1227_v21 = vsel %vm1225_vm12, %v1226_v29, %v1224_v46  ;;  %v1236_v55 = vmul.f32 %v3706_v4, %v3577_v60  ;;  %v1247_v35 = vand.u32 2147483648, %v3611_v54  ;;  %v1257_v27 = vmul.f32 %v2912_v52, %v3693_v26 }
 0x135   :  { %2501 = vst [vmem:[%s4026_s9 + $0x10] sm:$0xff] %v2433_v0   ;;  %v2052_v40 = vmax.f32 %v2020_v59, 0.0  ;;  %v2023_v8 = vadd.f32 %v2791_v25, %v1991_v19  ;;  %v1990_v30 = vmul.f32 %v1637_v36, %v3614_v11  ;;  %v1863_v6 = vpop.f32.mrf.mxu1  ;;  %v1245_v11 = vsel %vm1244_vm13, %v3611_v54, %v1243_v14  ;;  %v3865_v52 = vpop.eup %2917  ;;  %v1327_v54 = vld [vmem:[%s4025_s8 + $0xb0] sm:$0xff] }
 0x136   :  { %v2744_v1 = vpop.f32.mrf.mxu0  ;;  %v1238_v37 = vsel %vm1237_vm15, %v3577_v60, %v1236_v55  ;;  %v1240_v23 = vand.u32 2147483648, %v3577_v60  ;;  %vm1258_vm1 = vcmp.eq.f32.partialorder %v3693_v26, inf  ;;  %vm1260_vm2 = vcmp.eq.f32.partialorder %v3693_v26, 0.0  ;;  %v3873_v36 = vpop.eup %2919  ;;  %v1330_v60 = vld [vmem:[%s4025_s8 + $0xc8] sm:$0xff] }
 0x137   :  { %v2438_v15 = vpack.c.bf16 %v2053_v53, %v2052_v40  ;;  %v2022_v16 = vadd.f32 %v1990_v30, %v1863_v6  ;;  %v1993_v31 = vmul.f32 %v2744_v1, %v3653_v62  ;;  %v2794_v49 = vpop.f32.mrf.mxu1  ;;  %v2055_v4 = vmax.f32 %v2023_v8, 0.0  ;;  %v1325_v40 = vld [vmem:[%s4025_s8 + $0xa0] sm:$0xff] }
 0x138   :  { %v1647_v24 = vpop.f32.mrf.mxu0  ;;  %v1259_v59 = vsel %vm1258_vm1, %v3693_v26, %v1257_v27  ;;  %v1261_v25 = vand.u32 2147483648, %v3693_v26  ;;  %v1250_v46 = vmul.f32 %v3786_v2, %v3680_v9  ;;  %vm1251_vm3 = vcmp.eq.f32.partialorder %v3680_v9, inf }
 0x139   :  { %2502 = vst [vmem:[%s4026_s9 + $0x18] sm:$0xff] %v2438_v15   ;;  %v2054_v61 = vmax.f32 %v2022_v16, 0.0  ;;  %v2025_v33 = vadd.f32 %v2794_v49, %v1993_v31  ;;  %v1992_v62 = vmul.f32 %v1647_v24, %v3668_v44  ;;  %v1873_v32 = vpop.f32.mrf.mxu1  ;;  %v1248_v2 = vsel %vm1246_vm14, %v1247_v35, %v1245_v11  ;;  %v1328_v16 = vld [vmem:[%s4025_s8 + $0xb8] sm:$0xff] }
 0x13a   :  { %v2747_v13 = vpop.f32.mrf.mxu0  ;;  %v1241_v8 = vsel %vm1239_vm0, %v1240_v23, %v1238_v37  ;;  %v1262_v30 = vsel %vm1260_vm2, %v1261_v25, %v1259_v59  ;;  %v1252_v6 = vsel %vm1251_vm3, %v3680_v9, %v1250_v46  ;;  %v1254_v31 = vand.u32 2147483648, %v3680_v9 }
 0x13b   :  { %v2443_v50 = vpack.c.bf16 %v2055_v4, %v2054_v61  ;;  %v2024_v47 = vadd.f32 %v1992_v62, %v1873_v32  ;;  %v1995_v20 = vmul.f32 %v2747_v13, %v3720_v17  ;;  %v2797_v0 = vpop.f32.mrf.mxu1  ;;  %v2057_v44 = vmax.f32 %v2025_v33, 0.0  ;;  %v1329_v62 = vld [vmem:[%s4025_s8 + $0xc0] sm:$0xff] }
 0x13c   :  { %v1657_v19 = vpop.f32.mrf.mxu0  ;;  %v1357_v11 = vmul.f32 %v1325_v40, %v1227_v21  ;;  %vm1253_vm4 = vcmp.eq.f32.partialorder %v3680_v9, 0.0  ;;  %v1360_v32 = vmul.f32 %v1328_v16, %v1248_v2  ;;  %v1359_v9 = vmul.f32 %v1327_v54, %v1241_v8  ;;  %v1332_v8 = vld [vmem:[%s4025_s8 + $0xd8] sm:$0xff] }
 0x13d   :  { %2503 = vst [vmem:[%s4026_s9 + $0x20] sm:$0xff] %v2443_v50   ;;  %v2056_v29 = vmax.f32 %v2024_v47, 0.0  ;;  %v2027_v17 = vadd.f32 %v2797_v0, %v1995_v20  ;;  %v1994_v14 = vmul.f32 %v1657_v19, %v3730_v3  ;;  %v1883_v53 = vpop.f32.mrf.mxu1  ;;  %v1255_v33 = vsel %vm1253_vm4, %v1254_v31, %v1252_v6 }
 0x13e   :  { %v2750_v26 = vpop.f32.mrf.mxu0  ;;  %v1362_v13 = vmul.f32 %v1330_v60, %v1262_v30  ;;  %vm1272_vm5 = vcmp.eq.f32.partialorder %v3687_v34, inf  ;;  %v1361_v20 = vmul.f32 %v1329_v62, %v1255_v33  ;;  %vm1274_vm6 = vcmp.eq.f32.partialorder %v3687_v34, 0.0 }
 0x13f   :  { %v2448_v1 = vpack.c.bf16 %v2057_v44, %v2056_v29  ;;  %v2026_v55 = vadd.f32 %v1994_v14, %v1883_v53  ;;  %v1997_v3 = vmul.f32 %v2750_v26, %v3736_v58  ;;  %v2800_v15 = vpop.f32.mrf.mxu1  ;;  %v2059_v49 = vmax.f32 %v2027_v17, 0.0 }
 0x140   :  { %v1667_v24 = vpop.f32.mrf.mxu0  ;;  %v1271_v58 = vmul.f32 %v3791_v22, %v3687_v34  ;;  %v1275_v0 = vand.u32 2147483648, %v3687_v34  ;;  %v1264_v59 = vmul.f32 %v3767_v43, %v3644_v51  ;;  %v1389_v17 = vadd.f32 %v1357_v11, %v3608_v28  ;;  %v4037_v28 = vld [vmem:[#allocation6_spill] sm:$0xff] }
 0x141   :  { %2504 = vst [vmem:[%s4026_s9 + $0x28] sm:$0xff] %v2448_v1   ;;  %v2058_v35 = vmax.f32 %v2026_v55, 0.0  ;;  %v2029_v27 = vadd.f32 %v2800_v15, %v1997_v3  ;;  %v1996_v4 = vmul.f32 %v1667_v24, %v3816_v45  ;;  %v1893_v61 = vpop.f32.mrf.mxu1  ;;  %v1392_v14 = vadd.f32 %v1360_v32, %v3625_v56 }
 0x142   :  { %v2753_v21 = vpop.f32.mrf.mxu0  ;;  %v1273_v47 = vsel %vm1272_vm5, %v3687_v34, %v1271_v58  ;;  %v1391_v34 = vadd.f32 %v1359_v9, %v3604_v5  ;;  %vm1265_vm7 = vcmp.eq.f32.partialorder %v3644_v51, inf  ;;  %v1394_v30 = vadd.f32 %v1362_v13, %v3710_v18 }
 0x143   :  { %v2453_v22 = vpack.c.bf16 %v2059_v49, %v2058_v35  ;;  %v2028_v37 = vadd.f32 %v1996_v4, %v1893_v61  ;;  %v1999_v23 = vmul.f32 %v2753_v21, %v3819_v63  ;;  %v2803_v50 = vpop.f32.mrf.mxu1  ;;  %v2061_v44 = vmax.f32 %v2029_v27, 0.0 }
 0x144   :  { %v1677_v45 = vpop.f32.mrf.mxu0  ;;  %v1276_v53 = vsel %vm1274_vm6, %v1275_v0, %v1273_v47  ;;  %v3930_v6 = vadd.f32 %v1361_v20, %v4037_v28  ;;  %v1266_v5 = vsel %vm1265_vm7, %v3644_v51, %v1264_v59  ;;  %v1285_v56 = vmul.f32 %v3873_v36, %v3759_v48 }
 0x145   :  { %2505 = vst [vmem:[%s4026_s9 + $0x30] sm:$0xff] %v2453_v22   ;;  %v2060_v19 = vmax.f32 %v2028_v37, 0.0  ;;  %v2031_v25 = vadd.f32 %v2803_v50, %v1999_v23  ;;  %v1998_v63 = vmul.f32 %v1677_v45, %v3826_v39  ;;  %v1903_v46 = vpop.f32.mrf.mxu1  ;;  %v1364_v18 = vmul.f32 %v1332_v8, %v1276_v53  ;;  %v1331_v22 = vld [vmem:[%s4025_s8 + $0xd0] sm:$0xff] }
 0x146   :  { %v2756_v29 = vpop.f32.mrf.mxu0  ;;  %vm1267_vm8 = vcmp.eq.f32.partialorder %v3644_v51, 0.0  ;;  %v1268_v54 = vand.u32 2147483648, %v3644_v51  ;;  %v1278_v60 = vmul.f32 %v3811_v10, %v3713_v42  ;;  %vm1286_vm9 = vcmp.eq.f32.partialorder %v3759_v48, inf }
 0x147   :  { %v2458_v40 = vpack.c.bf16 %v2061_v44, %v2060_v19  ;;  %v2030_v43 = vadd.f32 %v1998_v63, %v1903_v46  ;;  %v2001_v26 = vmul.f32 %v2756_v29, %v3829_v57  ;;  %v2806_v2 = vpop.f32.mrf.mxu1  ;;  %v2063_v57 = vmax.f32 %v2031_v25, 0.0  ;;  %v1334_v44 = vld [vmem:[%s4025_s8 + $0xe8] sm:$0xff]  ;;  %v4039_v63 = vld [vmem:[#allocation8_spill] sm:$0xff] }
 0x148   :  { %v1687_v39 = vpop.f32.mrf.mxu0  ;;  %v1269_v58 = vsel %vm1267_vm8, %v1268_v54, %v1266_v5  ;;  %vm1288_vm10 = vcmp.eq.f32.partialorder %v3759_v48, 0.0  ;;  %vm1279_vm11 = vcmp.eq.f32.partialorder %v3713_v42, inf  ;;  %v1289_v61 = vand.u32 2147483648, %v3759_v48  ;;  %v4038_v19 = vld [vmem:[#allocation9_spill] sm:$0xff] }
 0x149   :  { %2506 = vst [vmem:[%s4026_s9 + $0x38] sm:$0xff] %v2458_v40   ;;  %v2062_v1 = vmax.f32 %v2030_v43, 0.0  ;;  %v2033_v55 = vadd.f32 %v2806_v2, %v2001_v26  ;;  %v2000_v3 = vmul.f32 %v1687_v39, %v3835_v12  ;;  %v1913_v15 = vpop.f32.mrf.mxu1  ;;  %v1287_v12 = vsel %vm1286_vm9, %v3759_v48, %v1285_v56  ;;  %v1333_v26 = vld [vmem:[%s4025_s8 + $0xe0] sm:$0xff]  ;;  %v1336_v56 = vld [vmem:[%s4025_s8 + $0xf8] sm:$0xff] }
 0x14a   :  { %v2759_v16 = vpop.f32.mrf.mxu0  ;;  %v1280_v33 = vsel %vm1279_vm11, %v3713_v42, %v1278_v60  ;;  %vm1281_vm12 = vcmp.eq.f32.partialorder %v3713_v42, 0.0  ;;  %v1299_v62 = vmul.f32 %v3865_v52, %v3744_v38  ;;  %vm1300_vm13 = vcmp.eq.f32.partialorder %v3744_v38, inf }
 0x14b   :  { %v2463_v36 = vpack.c.bf16 %v2063_v57, %v2062_v1  ;;  %v2032_v31 = vadd.f32 %v2000_v3, %v1913_v15  ;;  %v2003_v49 = vmul.f32 %v2759_v16, %v3846_v41  ;;  %v2809_v24 = vpop.f32.mrf.mxu1  ;;  %v2065_v51 = vmax.f32 %v2033_v55, 0.0  ;;  %v2921_v57 = vld [vmem:[%s4024_s3] ss:$0 sm:$0xff]  ;;  %v4040_v1 = vld [vmem:[#allocation11_spill] sm:$0xff] }
 0x14c   :  { %v1697_v11 = vpop.f32.mrf.mxu0  ;;  %v1290_v50 = vsel %vm1288_vm10, %v1289_v61, %v1287_v12  ;;  %v1282_v47 = vand.u32 2147483648, %v3713_v42  ;;  %v1301_v45 = vsel %vm1300_vm13, %v3744_v38, %v1299_v62  ;;  %v1292_v48 = vmul.f32 %v3803_v7, %v4038_v19  ;;  %v4041_v15 = vld [vmem:[#allocation4_spill] sm:$0xff] }
 0x14d   :  { %2507 = vst [vmem:[%s4026_s9 + $0x40] sm:$0xff] %v2463_v36   ;;  %v2064_v10 = vmax.f32 %v2032_v31, 0.0  ;;  %v2035_v35 = vadd.f32 %v2809_v24, %v2003_v49  ;;  %v2002_v27 = vmul.f32 %v1697_v11, %v1389_v17  ;;  %v1923_v41 = vpop.f32.mrf.mxu1  ;;  %v1396_v46 = vadd.f32 %v1364_v18, %v4039_v63  ;;  %v4042_v49 = vld [vmem:[#allocation7_spill] sm:$0xff] }
 0x14e   :  { %v2762_v4 = vpop.f32.mrf.mxu0  ;;  %v1363_v29 = vmul.f32 %v1331_v22, %v1269_v58  ;;  %v1283_v17 = vsel %vm1281_vm12, %v1282_v47, %v1280_v33  ;;  %vm1302_vm14 = vcmp.eq.f32.partialorder %v3744_v38, 0.0  ;;  %v1366_v8 = vmul.f32 %v1334_v44, %v1290_v50  ;;  %v4043_v33 = vld [vmem:[#allocation10_spill] sm:$0xff]  ;;  %v4044_v50 = vld [vmem:[#allocation5_spill] sm:$0xff] }
 0x14f   :  { %v2468_v21 = vpack.c.bf16 %v2065_v51, %v2064_v10  ;;  %v2034_v32 = vadd.f32 %v2002_v27, %v1923_v41  ;;  %v2005_v9 = vmul.f32 %v2762_v4, %v1392_v14  ;;  %v2812_v13 = vpop.f32.mrf.mxu1  ;;  %v2067_v37 = vmax.f32 %v2035_v35, 0.0  ;;  %v1335_v10 = vld [vmem:[%s4025_s8 + $0xf0] sm:$0xff] }
 0x150   :  { %v1707_v23 = vpop.f32.mrf.mxu0  ;;  %v1303_v14 = vand.u32 2147483648, %v3744_v38  ;;  %vm1293_vm15 = vcmp.eq.f32.partialorder %v4038_v19, inf  ;;  %v530_v55 = vadd.f32 %v2921_v57, %v4040_v1  ;;  %v1395_v16 = vadd.f32 %v1363_v29, %v4041_v15 }
 0x151   :  { %2508 = vst [vmem:[%s4026_s9 + $0x48] sm:$0xff] %v2468_v21   ;;  %v2066_v52 = vmax.f32 %v2034_v32, 0.0  ;;  %v2037_v20 = vadd.f32 %v2812_v13, %v2005_v9  ;;  %v2004_v0 = vmul.f32 %v1707_v23, %v1391_v34  ;;  %v1933_v59 = vpop.f32.mrf.mxu1  ;;  %v1294_v38 = vsel %vm1293_vm15, %v4038_v19, %v1292_v48 }
 0x152   :  { %v2765_v25 = vpop.f32.mrf.mxu0  ;;  %v1304_v39 = vsel %vm1302_vm14, %v1303_v14, %v1301_v45  ;;  %v1365_v18 = vmul.f32 %v1333_v26, %v1283_v17  ;;  %v1296_v54 = vand.u32 2147483648, %v4038_v19  ;;  %vm1295_vm0 = vcmp.eq.f32.partialorder %v4038_v19, 0.0 }
 0x153   :  { %v2473_v53 = vpack.c.bf16 %v2067_v37, %v2066_v52  ;;  %v2036_v40 = vadd.f32 %v2004_v0, %v1933_v59  ;;  %v2007_v34 = vmul.f32 %v2765_v25, %v1394_v30  ;;  %v2815_v43 = vpop.f32.mrf.mxu1  ;;  %v2069_v7 = vmax.f32 %v2037_v20, 0.0 }
 0x154   :  { %v1717_v2 = vpop.f32.mrf.mxu0  ;;  %v529_v24 = vadd.f32 %v2921_v57, %v4042_v49  ;;  %v1398_v58 = vadd.f32 %v1366_v8, %v530_v55  ;;  %v1368_v12 = vmul.f32 %v1336_v56, %v1304_v39  ;;  %v1297_v51 = vsel %vm1295_vm0, %v1296_v54, %v1294_v38 }
 0x155   :  { %2509 = vst [vmem:[%s4026_s9 + $0x50] sm:$0xff] %v2473_v53   ;;  %v2068_v42 = vmax.f32 %v2036_v40, 0.0  ;;  %v2039_v28 = vadd.f32 %v2815_v43, %v2007_v34  ;;  %v2006_v30 = vmul.f32 %v1717_v2, %v3930_v6  ;;  %v1943_v5 = vpop.f32.mrf.mxu1  ;;  %v532_v62 = vadd.f32 %v2921_v57, %v4043_v33 }
 0x156   :  { %v2768_v3 = vpop.f32.mrf.mxu0  ;;  %v1397_v32 = vadd.f32 %v1365_v18, %v529_v24  ;;  %v1367_v23 = vmul.f32 %v1335_v10, %v1297_v51  ;;  %v531_v47 = vadd.f32 %v2921_v57, %v4044_v50 }
 0x157   :  { %v2478_v6 = vpack.c.bf16 %v2069_v7, %v2068_v42  ;;  %v2038_v60 = vadd.f32 %v2006_v30, %v1943_v5  ;;  %v2009_v36 = vmul.f32 %v2768_v3, %v1396_v46  ;;  %v2818_v31 = vpop.f32.mrf.mxu1  ;;  %v2071_v35 = vmax.f32 %v2039_v28, 0.0 }
 0x158   :  { %v1727_v11 = vpop.f32.mrf.mxu0  ;;  %v1400_v52 = vadd.f32 %v1368_v12, %v532_v62  ;;  %v1399_v17 = vadd.f32 %v1367_v23, %v531_v47 }
 0x159   :  { %2510 = vst [vmem:[%s4026_s9 + $0x58] sm:$0xff] %v2478_v6   ;;  %v2070_v27 = vmax.f32 %v2038_v60, 0.0  ;;  %v2041_v41 = vadd.f32 %v2818_v31, %v2009_v36  ;;  %v2008_v4 = vmul.f32 %v1727_v11, %v1395_v16  ;;  %v1953_v61 = vpop.f32.mrf.mxu1 }
 0x15a   :  { %v2771_v21 = vpop.f32.mrf.mxu0 }
 0x15b   :  { %v2483_v9 = vpack.c.bf16 %v2071_v35, %v2070_v27  ;;  %v2040_v13 = vadd.f32 %v2008_v4, %v1953_v61  ;;  %v2011_v22 = vmul.f32 %v2771_v21, %v1398_v58  ;;  %v2821_v37 = vpop.f32.mrf.mxu1  ;;  %v2073_v20 = vmax.f32 %v2041_v41, 0.0 }
 0x15c   :  { %v1737_v45 = vpop.f32.mrf.mxu0 }
 0x15d   :  { %2511 = vst [vmem:[%s4026_s9 + $0x60] sm:$0xff] %v2483_v9   ;;  %v2072_v0 = vmax.f32 %v2040_v13, 0.0  ;;  %v2043_v59 = vadd.f32 %v2821_v37, %v2011_v22  ;;  %v2010_v44 = vmul.f32 %v1737_v45, %v1397_v32  ;;  %v1963_v19 = vpop.f32.mrf.mxu1 }
 0x15e   :  { %v2774_v48 = vpop.f32.mrf.mxu0 }
 0x15f   :  { %v2488_v25 = vpack.c.bf16 %v2073_v20, %v2072_v0  ;;  %v2042_v63 = vadd.f32 %v2010_v44, %v1963_v19  ;;  %v2013_v46 = vmul.f32 %v2774_v48, %v1400_v52  ;;  %v2824_v29 = vpop.f32.mrf.mxu1  ;;  %v2075_v53 = vmax.f32 %v2043_v59, 0.0 }
 0x160   :  { %v1747_v14 = vpop.f32.mrf.mxu0 }
 0x161   :  { %2512 = vst [vmem:[%s4026_s9 + $0x68] sm:$0xff] %v2488_v25   ;;  %v2074_v40 = vmax.f32 %v2042_v63, 0.0  ;;  %v2045_v34 = vadd.f32 %v2824_v29, %v2013_v46  ;;  %v2012_v43 = vmul.f32 %v1747_v14, %v1399_v17  ;;  %v1973_v26 = vpop.f32.mrf.mxu1 }
 0x163   :  { %v2493_v7 = vpack.c.bf16 %v2075_v53, %v2074_v40  ;;  %v2044_v2 = vadd.f32 %v2012_v43, %v1973_v26  ;;  %v2077_v8 = vmax.f32 %v2045_v34, 0.0 }
 0x165   :  { %2513 = vst [vmem:[%s4026_s9 + $0x70] sm:$0xff] %v2493_v7   ;;  %v2076_v39 = vmax.f32 %v2044_v2, 0.0 }
 0x167   :  { %v2498_v42 = vpack.c.bf16 %v2077_v8, %v2076_v39 }
 0x169   :  { %2514 = vst [vmem:[%s4026_s9 + $0x78] sm:$0xff] %v2498_v42  }

// kernel: multihead_film_cnn_forward.7
= control target key start
LH: loop header
LB: loop body
LE: loop exit
PB: predicated region body
PF: predicated region fallthrough
CT: control target
= control target key end

     0   :  { %v427_v0 = vmov 0.0   ;;  %vm428_vm0 = vmmov 0   ;;  %s551_s2 = inlined_call_operand.vmem [shape: bf16[128,128], index: 2, kind: input, shape index: {}]   ;;  %s552_s5 = inlined_call_operand.vmem [shape: f32[16,8], index: 5, kind: input, shape index: {}]   ;;  %s553_s6 = inlined_call_operand.vmem [shape: f32[8,128], index: 6, kind: input, shape index: {}]   ;;  %s554_s7 = inlined_call_operand.vmem [shape: f32[8,128], index: 7, kind: input, shape index: {}]   ;;  %s555_s1 = inlined_call_operand.vmem [shape: bf16[128,128], index: 1, kind: input, shape index: {}]   ;;  %s556_s0 = inlined_call_operand.vmem [shape: bf16[16,128], index: 0, kind: input, shape index: {}]   ;;  %s557_s4 = inlined_call_operand.vmem [shape: f32[1,128], index: 4, kind: input, shape index: {}]   ;;  %s558_s3 = inlined_call_operand.vmem [shape: f32[1,128], index: 3, kind: input, shape index: {}]   ;;  %s559_s8 = inlined_call_operand.vmem [shape: f32[16,128], index: 8, kind: input, shape index: {}]   ;;  %s560_s9 = inlined_call_operand.vmem [shape: f32[16,128], index: 9, kind: output, shape index: {}]  }
   0x1   :  { %384 = vmatprep.subr.bf16.mxu1 %v427_v0  ;;  %v406_v1 = vld [vmem:[%s551_s2 + $0x38] sm:$0xff]   ;;  %364 = vmatprep.subr.bf16.mxu0 %v427_v0  ;;  %v407_v2 = vld [vmem:[%s551_s2 + $0x30] sm:$0xff]   ;;  %v408_v4 = vld [vmem:[%s551_s2 + $0x28] sm:$0xff]  }
   0x2   :  { %400 = vmatprep.mubr.msk.bf16.mxu1 %vm428_vm0, %v427_v0  ;;  %380 = vmatprep.mubr.msk.bf16.mxu0 %vm428_vm0, %v427_v0  ;;  %v410_v3 = vld [vmem:[%s555_s1 + $0x38] sm:$0xff]   ;;  %v412_v5 = vld [vmem:[%s555_s1 + $0x30] sm:$0xff]   ;;  %v409_v6 = vld [vmem:[%s551_s2 + $0x20] sm:$0xff]  }
   0x3   :  { %385 = vmatpush3.bf16.msra.mxu1 %v406_v1  ;;  %365 = vmatpush3.bf16.msra.mxu0 %v410_v3  ;;  %v414_v7 = vld [vmem:[%s555_s1 + $0x28] sm:$0xff]   ;;  %v411_v8 = vld [vmem:[%s551_s2 + $0x18] sm:$0xff]   ;;  %v416_v9 = vld [vmem:[%s555_s1 + $0x20] sm:$0xff]  }
   0x4   :  { %386 = vmatprep.subr.bf16.mxu1 %v427_v0  ;;  %366 = vmatprep.subr.bf16.mxu0 %v427_v0  ;;  %v413_v10 = vld [vmem:[%s551_s2 + $0x10] sm:$0xff]   ;;  %v418_v11 = vld [vmem:[%s555_s1 + $0x18] sm:$0xff]   ;;  %v415_v12 = vld [vmem:[%s551_s2 + $0x8] sm:$0xff]  }
   0x5   :  { %v55_v13 = vld [vmem:[%s556_s0] sm:$0xf]  ;;  %v56_v14 = vld [vmem:[%s556_s0 + $0x4] sm:$0xf]  ;;  %v419_v15 = vld [vmem:[%s555_s1 + $0x10] sm:$0xff]  }
   0x6   :  { %v176_v16 = vmul.bf16 %v55_v13, %v55_v13  ;;  %v177_v17 = vmul.bf16 %v56_v14, %v56_v14  ;;  %v417_v18 = vld [vmem:[%s551_s2] sm:$0xff]   ;;  %v420_v19 = vld [vmem:[%s555_s1 + $0x8] sm:$0xff]   ;;  %v328_v22 = vcombine.low %v55_v13, %v56_v14 }
   0x7   :  { %387 = vmatpush3.bf16.msra.mxu1 %v407_v2  ;;  %367 = vmatpush3.bf16.msra.mxu0 %v412_v5  ;;  %v421_v21 = vld [vmem:[%s555_s1] sm:$0xff]   ;;  %v315_v46 = vld [vmem:[%s559_s8 + $0x8] sm:$0xff] }
   0x8   :  { %388 = vmatprep.subr.bf16.mxu1 %v427_v0  ;;  %368 = vmatprep.subr.bf16.mxu0 %v427_v0  ;;  %v337_v20 = vcombine.low %v176_v16, %v177_v17  ;;  %v327_v23 = vld [vmem:[%s557_s4] ss:$0 sm:$0xff] }
   0x9   :  { %v326_v35 = vld [vmem:[%s558_s3] ss:$0 sm:$0xff] }
   0xa   :  { %v314_v38 = vld [vmem:[%s559_s8] sm:$0xff] }
   0xb   :  { %389 = vmatpush3.bf16.msra.mxu1 %v408_v4  ;;  %369 = vmatpush3.bf16.msra.mxu0 %v414_v7 }
   0xc   :  { %390 = vmatprep.subr.bf16.mxu1 %v427_v0  ;;  %370 = vmatprep.subr.bf16.mxu0 %v427_v0 }
   0xf   :  { %391 = vmatpush3.bf16.msra.mxu1 %v409_v6  ;;  %371 = vmatpush3.bf16.msra.mxu0 %v416_v9 }
  0x10   :  { %392 = vmatprep.subr.bf16.mxu1 %v427_v0  ;;  %372 = vmatprep.subr.bf16.mxu0 %v427_v0 }
  0x13   :  { %393 = vmatpush3.bf16.msra.mxu1 %v411_v8  ;;  %373 = vmatpush3.bf16.msra.mxu0 %v418_v11 }
  0x14   :  { %394 = vmatprep.subr.bf16.mxu1 %v427_v0  ;;  %374 = vmatprep.subr.bf16.mxu0 %v427_v0 }
  0x17   :  { %395 = vmatpush3.bf16.msra.mxu1 %v413_v10  ;;  %375 = vmatpush3.bf16.msra.mxu0 %v419_v15 }
  0x18   :  { %396 = vmatprep.subr.bf16.mxu1 %v427_v0  ;;  %376 = vmatprep.subr.bf16.mxu0 %v427_v0 }
  0x1b   :  { %397 = vmatpush3.bf16.msra.mxu1 %v415_v12  ;;  %377 = vmatpush3.bf16.msra.mxu0 %v420_v19 }
  0x1c   :  { %398 = vmatprep.subr.bf16.mxu1 %v427_v0  ;;  %378 = vmatprep.subr.bf16.mxu0 %v427_v0 }
  0x1f   :  { %399 = vmatpush3.bf16.msra.mxu1 %v417_v18  ;;  %379 = vmatpush3.bf16.msra.mxu0 %v421_v21 }
  0x22   :  { %401 = vmatmul.mubr.bf16.vlgmr.msra.gmra.mxu1 %v337_v20  ;;  %381 = vmatmul.mubr.bf16.vlgmr.msra.gmra.mxu0 %v328_v22 }
  0xe2   :  { %v282_v24 = vpop.f32.mrf.mxu1  ;;  %v163_v28 = vpop.f32.mrf.mxu0 }
  0xe3   :  { %v289_v25 = vadd.f32 %v327_v23, %v282_v24  ;;  %v170_v39 = vadd.f32 %v326_v35, %v163_v28 }
  0xe4   :  { %v402_v26 = vpop.f32.mrf.mxu1  ;;  %v382_v31 = vpop.f32.mrf.mxu0 }
  0xe5   :  { %423 = vrsqrt.f32 %v289_v25  ;;  %vm302_vm1 = vcmp.eq.f32.partialorder %v289_v25, inf  ;;  %v305_v37 = vand.u32 2147483648, %v289_v25  ;;  %vm304_vm2 = vcmp.eq.f32.partialorder %v289_v25, 0.0 }
  0xe6   :  { %v285_v27 = vpop.f32.mrf.mxu1  ;;  %v166_v32 = vpop.f32.mrf.mxu0 }
  0xe7   :  { %v290_v29 = vadd.f32 %v327_v23, %v285_v27  ;;  %v171_v50 = vadd.f32 %v326_v35, %v166_v32 }
  0xe8   :  { %v403_v30 = vpop.f32.mrf.mxu1  ;;  %v383_v33 = vpop.f32.mrf.mxu0 }
  0xe9   :  { %425 = vrsqrt.f32 %v290_v29  ;;  %vm309_vm3 = vcmp.eq.f32.partialorder %v290_v29, inf  ;;  %v312_v45 = vand.u32 2147483648, %v290_v29  ;;  %vm311_vm4 = vcmp.eq.f32.partialorder %v290_v29, 0.0 }
  0xf2   :  { %v424_v34 = vpop.eup %423 }
  0xf3   :  { %v301_v36 = vmul.f32 %v424_v34, %v289_v25 }
  0xf5   :  { %v303_v40 = vsel %vm302_vm1, %v289_v25, %v301_v36 }
  0xf6   :  { %v426_v41 = vpop.eup %425  ;;  %v306_v42 = vsel %vm304_vm2, %v305_v37, %v303_v40 }
  0xf7   :  { %v316_v43 = vmul.f32 %v314_v38, %v306_v42  ;;  %v308_v44 = vmul.f32 %v426_v41, %v290_v29 }
  0xf9   :  { %v318_v47 = vadd.f32 %v316_v43, %v170_v39  ;;  %v310_v48 = vsel %vm309_vm3, %v290_v29, %v308_v44 }
  0xfa   :  { %v313_v49 = vsel %vm311_vm4, %v312_v45, %v310_v48 }
  0xfb   :  { %320 = vst [vmem:[%s560_s9] sm:$0xff] %v318_v47  ;;  %v317_v51 = vmul.f32 %v315_v46, %v313_v49 }
  0xfd   :  { %v319_v52 = vadd.f32 %v317_v51, %v171_v50 }
  0xff   :  { %321 = vst [vmem:[%s560_s9 + $0x8] sm:$0xff] %v319_v52 }

// kernel: multihead_film_cnn_forward.6
= control target key start
LH: loop header
LB: loop body
LE: loop exit
PB: predicated region body
PF: predicated region fallthrough
CT: control target
= control target key end

     0   :  { %vm459_vm0 = vcmask 64512   ;;  %s969_s2 = inlined_call_operand.vmem [shape: bf16[256,128], index: 2, kind: input, shape index: {}]   ;;  %s970_s1 = inlined_call_operand.vmem [shape: bf16[256,128], index: 1, kind: input, shape index: {}]   ;;  %s971_s0 = inlined_call_operand.vmem [shape: bf16[16,256], index: 0, kind: input, shape index: {}]   ;;  %s972_s7 = inlined_call_operand.vmem [shape: f32[8,128], index: 7, kind: input, shape index: {}]   ;;  %s973_s5 = inlined_call_operand.vmem [shape: f32[16,8], index: 5, kind: input, shape index: {}]   ;;  %s974_s6 = inlined_call_operand.vmem [shape: f32[8,128], index: 6, kind: input, shape index: {}]   ;;  %s975_s4 = inlined_call_operand.vmem [shape: f32[1,128], index: 4, kind: input, shape index: {}]   ;;  %s976_s3 = inlined_call_operand.vmem [shape: f32[1,128], index: 3, kind: input, shape index: {}]   ;;  %s977_s8 = inlined_call_operand.vmem [shape: f32[16,128], index: 8, kind: input, shape index: {}]   ;;  %s978_s9 = inlined_call_operand.vmem [shape: bf16[16,128], index: 9, kind: output, shape index: {}]  }
   0x1   :  { %v748_v0 = vld [vmem:[%s969_s2 + $0x78] sm:$0xff]   ;;  %v750_v2 = vld [vmem:[%s969_s2 + $0x70] sm:$0xff]   ;;  %v752_v4 = vld [vmem:[%s969_s2 + $0x68] sm:$0xff]  }
   0x2   :  { %v749_v1 = vld [vmem:[%s969_s2 + $0x38] sm:$0xff]   ;;  %710 = vmatprep.subr.bf16.mxu1 %v748_v0  ;;  %v751_v3 = vld [vmem:[%s969_s2 + $0x30] sm:$0xff]   ;;  %v753_v5 = vld [vmem:[%s969_s2 + $0x28] sm:$0xff]  }
   0x3   :  { %711 = vmatpush3.bf16.msra.mxu1 %v749_v1  ;;  %v754_v6 = vld [vmem:[%s969_s2 + $0x60] sm:$0xff]   ;;  %v756_v7 = vld [vmem:[%s970_s1 + $0x78] sm:$0xff]   ;;  %v760_v11 = vld [vmem:[%s970_s1 + $0x70] sm:$0xff]  }
   0x4   :  { %712 = vmatprep.subr.bf16.mxu1 %v750_v2  ;;  %v757_v8 = vld [vmem:[%s970_s1 + $0x38] sm:$0xff]   ;;  %v755_v9 = vld [vmem:[%s969_s2 + $0x20] sm:$0xff]   ;;  %688 = vmatprep.subr.bf16.mxu0 %v756_v7  ;;  %v761_v12 = vld [vmem:[%s970_s1 + $0x30] sm:$0xff]  }
   0x5   :  { %689 = vmatpush3.bf16.msra.mxu0 %v757_v8  ;;  %v758_v10 = vld [vmem:[%s969_s2 + $0x58] sm:$0xff]   ;;  %v762_v14 = vld [vmem:[%s969_s2 + $0x50] sm:$0xff]   ;;  %v764_v15 = vld [vmem:[%s970_s1 + $0x68] sm:$0xff]  }
   0x6   :  { %v759_v13 = vld [vmem:[%s969_s2 + $0x18] sm:$0xff]   ;;  %690 = vmatprep.subr.bf16.mxu0 %v760_v11  ;;  %v765_v16 = vld [vmem:[%s970_s1 + $0x28] sm:$0xff]   ;;  %v763_v17 = vld [vmem:[%s969_s2 + $0x10] sm:$0xff]  }
   0x7   :  { %713 = vmatpush3.bf16.msra.mxu1 %v751_v3  ;;  %v766_v18 = vld [vmem:[%s969_s2 + $0x48] sm:$0xff]   ;;  %v768_v19 = vld [vmem:[%s970_s1 + $0x60] sm:$0xff]   ;;  %v772_v23 = vld [vmem:[%s970_s1 + $0x58] sm:$0xff]  }
   0x8   :  { %714 = vmatprep.subr.bf16.mxu1 %v752_v4  ;;  %v769_v20 = vld [vmem:[%s970_s1 + $0x20] sm:$0xff]   ;;  %v767_v21 = vld [vmem:[%s969_s2 + $0x8] sm:$0xff]   ;;  %v773_v25 = vld [vmem:[%s970_s1 + $0x18] sm:$0xff]  }
   0x9   :  { %691 = vmatpush3.bf16.msra.mxu0 %v761_v12  ;;  %v770_v22 = vld [vmem:[%s969_s2 + $0x40] sm:$0xff]   ;;  %v56_v27 = vld [vmem:[%s971_s0 + $0x8] sm:$0xff]  ;;  %v774_v30 = vld [vmem:[%s970_s1 + $0x50] sm:$0xff]  }
   0xa   :  { %692 = vmatprep.subr.bf16.mxu0 %v764_v15  ;;  %v771_v24 = vld [vmem:[%s969_s2] sm:$0xff]   ;;  %v245_v29 = vmul.bf16 %v56_v27, %v56_v27  ;;  %v775_v32 = vld [vmem:[%s970_s1 + $0x10] sm:$0xff]   ;;  %v776_v34 = vld [vmem:[%s970_s1 + $0x48] sm:$0xff]  }
   0xb   :  { %715 = vmatpush3.bf16.msra.mxu1 %v753_v5  ;;  %v55_v26 = vld [vmem:[%s971_s0] sm:$0xff]  ;;  %v777_v36 = vld [vmem:[%s970_s1 + $0x8] sm:$0xff]  }
   0xc   :  { %716 = vmatprep.subr.bf16.mxu1 %v754_v6  ;;  %v244_v28 = vmul.bf16 %v55_v26, %v55_v26  ;;  %v640_v31 = vcombine.high %v55_v26, %v56_v27  ;;  %v778_v37 = vld [vmem:[%s970_s1 + $0x40] sm:$0xff]   ;;  %v639_v42 = vcombine.low %v55_v26, %v56_v27  ;;  %v457_v43 = vld [vmem:[%s973_s5 + $0x8] sm:$0xff] }
   0xd   :  { %693 = vmatpush3.bf16.msra.mxu0 %v765_v16  ;;  %v541_v38 = vld [vmem:[%s972_s7] sm:$0xff]  ;;  %v451_v8 = vld [vmem:[%s977_s8 + $0x8] sm:$0xff] }
   0xe   :  { %694 = vmatprep.subr.bf16.mxu0 %v768_v19  ;;  %v658_v33 = vcombine.high %v244_v28, %v245_v29  ;;  %229 = vmatprep.mubr.bf16.mxu0 %v640_v31  ;;  %v657_v35 = vcombine.low %v244_v28, %v245_v29  ;;  %v456_v39 = vld [vmem:[%s973_s5] sm:$0xff] }
   0xf   :  { %717 = vmatpush3.bf16.msra.mxu1 %v755_v9  ;;  %v779_v40 = vld [vmem:[%s970_s1] sm:$0xff]  }
  0x10   :  { %718 = vmatprep.subr.bf16.mxu1 %v758_v10  ;;  %416 = vmatprep.mubr.bf16.mxu1 %v658_v33  ;;  %v458_v41 = vld [vmem:[%s974_s6] sm:$0xff] }
  0x11   :  { %695 = vmatpush3.bf16.msra.mxu0 %v769_v20  ;;  %v638_v45 = vld [vmem:[%s975_s4] ss:$0 sm:$0xff] }
  0x12   :  { %696 = vmatprep.subr.bf16.mxu0 %v772_v23  ;;  %v637_v60 = vld [vmem:[%s976_s3] ss:$0 sm:$0xff] }
  0x13   :  { %719 = vmatpush3.bf16.msra.mxu1 %v759_v13  ;;  %v450_v63 = vld [vmem:[%s977_s8] sm:$0xff] }
  0x14   :  { %720 = vmatprep.subr.bf16.mxu1 %v762_v14 }
  0x15   :  { %697 = vmatpush3.bf16.msra.mxu0 %v773_v25 }
  0x16   :  { %698 = vmatprep.subr.bf16.mxu0 %v774_v30 }
  0x17   :  { %721 = vmatpush3.bf16.msra.mxu1 %v763_v17 }
  0x18   :  { %722 = vmatprep.subr.bf16.mxu1 %v766_v18 }
  0x19   :  { %699 = vmatpush3.bf16.msra.mxu0 %v775_v32 }
  0x1a   :  { %700 = vmatprep.subr.bf16.mxu0 %v776_v34 }
  0x1b   :  { %723 = vmatpush3.bf16.msra.mxu1 %v767_v21 }
  0x1c   :  { %724 = vmatprep.subr.bf16.mxu1 %v770_v22 }
  0x1d   :  { %701 = vmatpush3.bf16.msra.mxu0 %v777_v36 }
  0x1e   :  { %702 = vmatprep.subr.bf16.mxu0 %v778_v37 }
  0x1f   :  { %725 = vmatpush3.bf16.msra.mxu1 %v771_v24 }
  0x20   :  { %743 = vmatprep.subr.mxu1 %v541_v38 }
  0x21   :  { %703 = vmatpush3.bf16.msra.mxu0 %v779_v40 }
  0x22   :  { %417 = vmatmul.mubr.bf16.vlgmr.msra.gmra.mxu1 %v657_v35  ;;  %738 = vmatprep.subr.mxu0 %v458_v41 }
  0x23   :  { %744 = vmatpush3.msra.mxu1 %v541_v38  ;;  %745 = vmatprep.mubr.msk.f32.mxu1 %vm459_vm0, %v456_v39 }
  0x24   :  { %230 = vmatmul.mubr.bf16.vlgmr.msra.gmra.mxu0 %v639_v42 }
  0x25   :  { %739 = vmatpush3.msra.mxu0 %v458_v41  ;;  %740 = vmatprep.mubr.msk.f32.mxu0 %vm459_vm0, %v456_v39 }
  0x2a   :  { %746 = vmatmul.mubr.msk.f32.vlgmr.msra.gmra.mxu1 %vm459_vm0, %v457_v43 }
  0x2c   :  { %741 = vmatmul.mubr.msk.f32.vlgmr.msra.gmra.mxu0 %vm459_vm0, %v457_v43 }
  0xe2   :  { %v726_v44 = vpop.f32.mrf.mxu1 }
  0xe4   :  { %v727_v46 = vpop.f32.mrf.mxu1  ;;  %v704_v53 = vpop.f32.mrf.mxu0 }
  0xe5   :  { %v728_v47 = vadd.f32 %v727_v46, %v726_v44 }
  0xe6   :  { %v729_v48 = vpop.f32.mrf.mxu1  ;;  %v705_v54 = vpop.f32.mrf.mxu0 }
  0xe7   :  { %v425_v49 = vadd.f32 %v728_v47, %v638_v45  ;;  %v706_v58 = vadd.f32 %v705_v54, %v704_v53 }
  0xe8   :  { %v730_v50 = vpop.f32.mrf.mxu1  ;;  %v707_v55 = vpop.f32.mrf.mxu0 }
  0xe9   :  { %782 = vrsqrt.f32 %v425_v49  ;;  %v731_v51 = vadd.f32 %v730_v50, %v729_v48  ;;  %vm438_vm1 = vcmp.eq.f32.partialorder %v425_v49, inf  ;;  %v441_v62 = vand.u32 2147483648, %v425_v49 }
  0xea   :  { %v708_v57 = vpop.f32.mrf.mxu0  ;;  %vm440_vm2 = vcmp.eq.f32.partialorder %v425_v49, 0.0  ;;  %v238_v3 = vadd.f32 %v706_v58, %v637_v60  ;;  %v747_v10 = vpop.f32.mrf.mxu1 }
  0xeb   :  { %v426_v52 = vadd.f32 %v731_v51, %v638_v45  ;;  %v709_v4 = vadd.f32 %v708_v57, %v707_v55 }
  0xec   :  { %v742_v61 = vpop.f32.mrf.mxu0  ;;  %v608_v17 = vpop.f32.mrf.mxu1 }
  0xed   :  { %784 = vrsqrt.f32 %v426_v52  ;;  %vm445_vm3 = vcmp.eq.f32.partialorder %v426_v52, inf  ;;  %v448_v7 = vand.u32 2147483648, %v426_v52  ;;  %vm447_vm4 = vcmp.eq.f32.partialorder %v426_v52, 0.0 }
  0xee   :  { %v532_v9 = vpop.f32.mrf.mxu0  ;;  %v239_v14 = vadd.f32 %v709_v4, %v637_v60 }
  0xf6   :  { %v783_v56 = vpop.eup %782 }
  0xf7   :  { %v437_v59 = vmul.f32 %v783_v56, %v425_v49 }
  0xf9   :  { %v439_v0 = vsel %vm438_vm1, %v425_v49, %v437_v59 }
  0xfa   :  { %v785_v1 = vpop.eup %784  ;;  %v442_v2 = vsel %vm440_vm2, %v441_v62, %v439_v0 }
  0xfb   :  { %v444_v5 = vmul.f32 %v785_v1, %v426_v52  ;;  %v452_v6 = vmul.f32 %v450_v63, %v442_v2 }
  0xfd   :  { %v446_v11 = vsel %vm445_vm3, %v426_v52, %v444_v5  ;;  %v454_v12 = vadd.f32 %v452_v6, %v238_v3 }
  0xfe   :  { %v449_v13 = vsel %vm447_vm4, %v448_v7, %v446_v11 }
  0xff   :  { %v453_v15 = vmul.f32 %v451_v8, %v449_v13  ;;  %v617_v16 = vmul.f32 %v532_v9, %v454_v12 }
 0x101   :  { %v455_v18 = vadd.f32 %v453_v15, %v239_v14  ;;  %v619_v20 = vadd.f32 %v617_v16, %v608_v17 }
 0x103   :  { %v618_v19 = vmul.f32 %v742_v61, %v455_v18  ;;  %v621_v23 = vmax.f32 %v619_v20, 0.0 }
 0x105   :  { %v620_v21 = vadd.f32 %v747_v10, %v618_v19 }
 0x107   :  { %v622_v22 = vmax.f32 %v620_v21, 0.0 }
 0x109   :  { %v686_v24 = vpack.c.bf16 %v622_v22, %v621_v23 }
 0x10b   :  { %687 = vst [vmem:[%s978_s9] sm:$0xff] %v686_v24  }

</bundles_post_ra>
